<compile_context>
chip_gen: v5e
topology: v5e:2x2
jax: 0.10.0
libtpu: 0.0.40
codegen_flags: <defaults>
</compile_context>

<pallas_src>
import functools
import math

import jax
import jax.numpy as jnp
from jax import lax
from jax.experimental import pallas as pl
from jax.experimental.pallas import tpu as pltpu


# ----------------------------------------------------------------------------
# Kernel 1: K-tiled matmul with f32 accumulator (c_attn and c_proj)
# ----------------------------------------------------------------------------
def _matmul_kernel(x_ref, w_ref, o_ref, acc_ref):
    @pl.when(pl.program_id(2) == 0)
    def _init():
        acc_ref[...] = jnp.zeros_like(acc_ref)

    acc_ref[...] += jnp.dot(
        x_ref[...], w_ref[...], preferred_element_type=jnp.float32
    )

    @pl.when(pl.program_id(2) == pl.num_programs(2) - 1)
    def _store():
        o_ref[...] = acc_ref[...].astype(o_ref.dtype)


def pallas_matmul(x, w, *, bm=256, bn=256, bk=128):
    """x: (M, K), w: (K, N) -> (M, N).  Operands feed the MXU in their own dtype
    (bf16 recommended); accumulation is f32."""
    M, K = x.shape
    K2, N = w.shape
    assert K == K2
    bm, bn, bk = min(bm, M), min(bn, N), min(bk, K)
    assert M % bm == 0 and N % bn == 0 and K % bk == 0, (M, N, K, bm, bn, bk)
    return pl.pallas_call(
        _matmul_kernel,
        out_shape=jax.ShapeDtypeStruct((M, N), x.dtype),
        grid=(M // bm, N // bn, K // bk),
        in_specs=[
            pl.BlockSpec((bm, bk), lambda i, j, k: (i, k)),
            pl.BlockSpec((bk, bn), lambda i, j, k: (k, j)),
        ],
        out_specs=pl.BlockSpec((bm, bn), lambda i, j, k: (i, j)),
        scratch_shapes=[pltpu.VMEM((bm, bn), jnp.float32)],
        compiler_params=pltpu.CompilerParams(
            dimension_semantics=("parallel", "parallel", "arbitrary")
        ),
    )(x, w)


# ----------------------------------------------------------------------------
# Kernel 2: flash-attention style scaled dot product attention
# ----------------------------------------------------------------------------
def _flash_kernel(q_ref, k_ref, v_ref, o_ref, m_sc, l_sc, acc_sc, *,
                  scale, causal, block_q, block_k):
    qi = pl.program_id(2)
    ki = pl.program_id(3)

    @pl.when(ki == 0)
    def _init():
        m_sc[...] = jnp.full(m_sc.shape, -jnp.inf, dtype=m_sc.dtype)
        l_sc[...] = jnp.zeros(l_sc.shape, dtype=l_sc.dtype)
        acc_sc[...] = jnp.zeros(acc_sc.shape, dtype=acc_sc.dtype)

    def _compute():
        # Fold 1/sqrt(D) into q (tq*D muls instead of tq*tk); keep bf16 operands.
        q = q_ref[0, 0] * scale                           # (tq, D), input dtype
        k = k_ref[0, 0]                                   # (tk, D)
        # QK^T via dot_general contracting D on both sides (no k.T / XLU pass).
        s = lax.dot_general(q, k, (((1,), (1,)), ((), ())),
                            preferred_element_type=jnp.float32)   # (tq, tk) f32
        if causal:
            row = qi * block_q + lax.broadcasted_iota(jnp.int32, s.shape, 0)
            col = ki * block_k + lax.broadcasted_iota(jnp.int32, s.shape, 1)
            s = jnp.where(col <= row, s, -jnp.inf)

        m_prev = m_sc[...]
        m_new = jnp.maximum(m_prev, jnp.max(s, axis=-1, keepdims=True))
        alpha = jnp.exp(m_prev - m_new)
        p = jnp.exp(s - m_new)
        l_sc[...] = alpha * l_sc[...] + jnp.sum(p, axis=-1, keepdims=True)
        acc_sc[...] = alpha * acc_sc[...] + lax.dot_general(
            p.astype(v_ref.dtype), v_ref[0, 0], (((1,), (0,)), ((), ())),
            preferred_element_type=jnp.float32)
        m_sc[...] = m_new

    if causal:
        # Skip KV tiles that lie entirely above the diagonal for this q tile.
        pl.when(ki * block_k <= qi * block_q + (block_q - 1))(_compute)
    else:
        _compute()

    @pl.when(ki == pl.num_programs(3) - 1)
    def _finalize():
        o_ref[0, 0] = (
            acc_sc[...] * pl.reciprocal(l_sc[...], approx=True)
        ).astype(o_ref.dtype)


def flash_attention(q, k, v, *, is_causal=False, block_q=128, block_k=128):
    """q, k, v: (B, H, S, D) -> (B, H, S, D). Online-softmax flash attention."""
    B, H, S, D = q.shape
    block_q = min(block_q, S)
    block_k = min(block_k, S)
    assert S % block_q == 0 and S % block_k == 0, (S, block_q, block_k)
    scale = 1.0 / math.sqrt(D)

    kernel = functools.partial(
        _flash_kernel, scale=scale, causal=bool(is_causal),
        block_q=block_q, block_k=block_k)

    q_spec = pl.BlockSpec((1, 1, block_q, D), lambda b, h, qi, ki: (b, h, qi, 0))
    kv_spec = pl.BlockSpec((1, 1, block_k, D), lambda b, h, qi, ki: (b, h, ki, 0))
    o_spec = pl.BlockSpec((1, 1, block_q, D), lambda b, h, qi, ki: (b, h, qi, 0))

    return pl.pallas_call(
        kernel,
        out_shape=jax.ShapeDtypeStruct((B, H, S, D), q.dtype),
        grid=(B, H, S // block_q, S // block_k),
        in_specs=[q_spec, kv_spec, kv_spec],
        out_specs=o_spec,
        scratch_shapes=[
            pltpu.VMEM((block_q, 1), jnp.float32),   # running max
            pltpu.VMEM((block_q, 1), jnp.float32),   # running sum
            pltpu.VMEM((block_q, D), jnp.float32),   # output accumulator
        ],
        compiler_params=pltpu.CompilerParams(
            dimension_semantics=("parallel", "parallel", "parallel", "arbitrary")
        ),
    )(q, k, v)


# ----------------------------------------------------------------------------
# Module wrapper: CausalSelfAttention forward
# ----------------------------------------------------------------------------
def causal_self_attention_forward(x, w_attn_t, w_proj_t, *, num_heads,
                                  is_causal=False, training=False,
                                  block_q=128, block_k=128):
    """x: (B, S, E); w_attn_t: (E, 3E); w_proj_t: (E, E).

    Weights are the PyTorch Linear weights pre-transposed ONCE outside this
    function (PyTorch stores (out_features, in_features)).
    Eval mode (training=False) matches the tutorial: dropout=0, is_causal=False.
    """
    B, S, E = x.shape
    H = num_heads
    D = E // H
    use_causal = bool(is_causal and training)

    # c_attn: Linear(E, 3E, bias=False)
    qkv = pallas_matmul(x.reshape(B * S, E), w_attn_t)          # (B*S, 3E)

    # Split heads: (B, S, 3, H, D) -> (3, B, H, S, D)  (one XLA transpose pass)
    qkv = qkv.reshape(B, S, 3, H, D).transpose(2, 0, 3, 1, 4)
    q, k, v = qkv[0], qkv[1], qkv[2]                            # each (B, H, S, D)

    y = flash_attention(q, k, v, is_causal=use_causal,
                        block_q=block_q, block_k=block_k)       # (B, H, S, D)

    # Merge heads: (B, H, S, D) -> (B*S, E)
    y = y.transpose(0, 2, 1, 3).reshape(B * S, E)

    # c_proj: Linear(E, E, bias=False)
    out = pallas_matmul(y, w_proj_t)
    return out.reshape(B, S, E)


# ----------------------------------------------------------------------------
# Pure-JAX f32 reference (for correctness checking)
# ----------------------------------------------------------------------------
def reference_forward(x, w_attn, w_proj, *, num_heads, is_causal):
    xf = x.astype(jnp.float32)
    wa = w_attn.astype(jnp.float32)
    wp = w_proj.astype(jnp.float32)
    B, S, E = x.shape
    H = num_heads
    D = E // H
    qkv = xf @ wa.T
    q, k, v = jnp.split(qkv, 3, axis=-1)

    def heads(t):
        return t.reshape(B, S, H, D).transpose(0, 2, 1, 3)

    q, k, v = heads(q), heads(k), heads(v)
    s = jnp.einsum("bhqd,bhkd->bhqk", q, k) / jnp.sqrt(jnp.float32(D))
    if is_causal:
        mask = jnp.tril(jnp.ones((S, S), dtype=bool))
        s = jnp.where(mask, s, -jnp.inf)
    p = jax.nn.softmax(s, axis=-1)
    y = jnp.einsum("bhqk,bhkd->bhqd", p, v)
    y = y.transpose(0, 2, 1, 3).reshape(B, S, E)
    return y @ wp.T


if __name__ == "__main__":
    # Scaled-down shapes consistent with the tutorial module
    # (tutorial: B=32, H=8, head_dim=64, E=512, S=256, fp16 -> bf16 on TPU).
    B, H, D, S = 2, 4, 64, 256
    E = H * D  # 256
    dtype = jnp.bfloat16

    key = jax.random.PRNGKey(0)
    kx, ka, kp = jax.random.split(key, 3)
    x = jax.random.uniform(kx, (B, S, E), dtype=jnp.float32).astype(dtype)
    # nn.Linear weight layout: (out_features, in_features), bias=False.
    w_attn = (jax.random.normal(ka, (3 * E, E), dtype=jnp.float32) * 0.02).astype(dtype)
    w_proj = (jax.random.normal(kp, (E, E), dtype=jnp.float32) * 0.02).astype(dtype)

    # Hoist the weight transposes out of the forward (done once).
    w_attn_t = jnp.asarray(w_attn.T)    # (E, 3E)
    w_proj_t = jnp.asarray(w_proj.T)    # (E, E)

    fwd_eval = jax.jit(functools.partial(
        causal_self_attention_forward, num_heads=H, is_causal=True, training=False))
    fwd_train = jax.jit(functools.partial(
        causal_self_attention_forward, num_heads=H, is_causal=True, training=True))

    out_eval = jax.block_until_ready(fwd_eval(x, w_attn_t, w_proj_t))
    out_causal = jax.block_until_ready(fwd_train(x, w_attn_t, w_proj_t))

    ref_eval = reference_forward(x, w_attn, w_proj, num_heads=H, is_causal=False)
    ref_causal = reference_forward(x, w_attn, w_proj, num_heads=H, is_causal=True)

    assert out_eval.shape == (B, S, E)
    assert jnp.allclose(out_eval.astype(jnp.float32), ref_eval,
                        atol=2e-2, rtol=2e-2), "eval (non-causal) mismatch"
    assert jnp.allclose(out_causal.astype(jnp.float32), ref_causal,
                        atol=2e-2, rtol=2e-2), "training (causal) mismatch"

    print("KERNEL_OK")
</pallas_src>

<mosaic_0001>
module attributes {stable_mosaic.version = 11 : i64} {
  func.func @_matmul_kernel(%arg0: i32, %arg1: i32, %arg2: i32, %arg3: memref<256x128xbf16, #tpu.memory_space<vmem>>, %arg4: memref<128x256xbf16, #tpu.memory_space<vmem>>, %arg5: memref<256x256xbf16, #tpu.memory_space<vmem>>, %arg6: memref<256x256xf32, #tpu.memory_space<vmem>>) attributes {dimension_semantics = [#tpu.dimension_semantics<parallel>, #tpu.dimension_semantics<parallel>, #tpu.dimension_semantics<arbitrary>], iteration_bounds = array<i64: 2, 3, 2>, scalar_prefetch = 0 : i64, scratch_operands = 1 : i64, tpu.core_type = #tpu.core_type<tc>, window_params = [{transform_indices = @transform_0, window_bounds = array<i64: 256, 128>}, {transform_indices = @transform_1, window_bounds = array<i64: 128, 256>}, {transform_indices = @transform_2, window_bounds = array<i64: 256, 256>}]} {
    %c0_i32 = arith.constant 0 : i32
    %0 = arith.cmpi eq, %arg2, %c0_i32 : i32
    %1 = arith.extui %0 : i1 to i32
    %c0_i32_0 = arith.constant 0 : i32
    %2 = arith.cmpi ne, %1, %c0_i32_0 : i32
    scf.if %2 {
      %cst_9 = arith.constant 0.000000e+00 : f32
      %12 = vector.broadcast %cst_9 : f32 to vector<256x256xf32>
      %c0_10 = arith.constant 0 : index
      %c0_11 = arith.constant 0 : index
      %13 = vector.load %arg6[%c0_10, %c0_11] : memref<256x256xf32, #tpu.memory_space<vmem>>, vector<256x256xf32>
      tpu.vector_store %arg6[%c0_10, %c0_11], %12 {strides = array<i32>} : memref<256x256xf32, #tpu.memory_space<vmem>>, vector<256x256xf32>,
    } else {
    }
    %c0 = arith.constant 0 : index
    %c0_1 = arith.constant 0 : index
    %3 = vector.load %arg6[%c0, %c0_1] : memref<256x256xf32, #tpu.memory_space<vmem>>, vector<256x256xf32>
    %c0_2 = arith.constant 0 : index
    %c0_3 = arith.constant 0 : index
    %4 = vector.load %arg3[%c0_2, %c0_3] : memref<256x128xbf16, #tpu.memory_space<vmem>>, vector<256x128xbf16>
    %c0_4 = arith.constant 0 : index
    %c0_5 = arith.constant 0 : index
    %5 = vector.load %arg4[%c0_4, %c0_5] : memref<128x256xbf16, #tpu.memory_space<vmem>>, vector<128x256xbf16>
    %cst = arith.constant dense<0.000000e+00> : vector<256x256xf32>
    %6 = tpu.matmul %4, %5, %cst {dimension_numbers = #tpu.dot_dimension_numbers<[1], [0], [0], [1], [0, 0, 1, 1], [], []>} : vector<256x128xbf16>, vector<128x256xbf16>, vector<256x256xf32> -> vector<256x256xf32>
    %7 = arith.addf %3, %6 : vector<256x256xf32>
    %c0_6 = arith.constant 0 : index
    %c0_7 = arith.constant 0 : index
    %8 = vector.load %arg6[%c0_6, %c0_7] : memref<256x256xf32, #tpu.memory_space<vmem>>, vector<256x256xf32>
    tpu.vector_store %arg6[%c0_6, %c0_7], %7 {strides = array<i32>} : memref<256x256xf32, #tpu.memory_space<vmem>>, vector<256x256xf32>,
    %c1_i32 = arith.constant 1 : i32
    %9 = arith.cmpi eq, %arg2, %c1_i32 : i32
    %10 = arith.extui %9 : i1 to i32
    %c0_i32_8 = arith.constant 0 : i32
    %11 = arith.cmpi ne, %10, %c0_i32_8 : i32
    scf.if %11 {
      %c0_9 = arith.constant 0 : index
      %c0_10 = arith.constant 0 : index
      %12 = vector.load %arg6[%c0_9, %c0_10] : memref<256x256xf32, #tpu.memory_space<vmem>>, vector<256x256xf32>
      %13 = arith.truncf %12 : vector<256x256xf32> to vector<256x256xbf16>
      %c0_11 = arith.constant 0 : index
      %c0_12 = arith.constant 0 : index
      %14 = vector.load %arg5[%c0_11, %c0_12] : memref<256x256xbf16, #tpu.memory_space<vmem>>, vector<256x256xbf16>
      tpu.vector_store %arg5[%c0_11, %c0_12], %13 {strides = array<i32>} : memref<256x256xbf16, #tpu.memory_space<vmem>>, vector<256x256xbf16>,
    } else {
    }
    return
  }
  func.func @transform_0(%arg0: i32, %arg1: i32, %arg2: i32) -> (i32, i32) {
    %c0_i32 = arith.constant 0 : i32
    return %arg0, %arg2 : i32, i32
  }
  func.func @transform_1(%arg0: i32, %arg1: i32, %arg2: i32) -> (i32, i32) {
    %c0_i32 = arith.constant 0 : i32
    return %arg2, %arg1 : i32, i32
  }
  func.func @transform_2(%arg0: i32, %arg1: i32, %arg2: i32) -> (i32, i32) {
    %c0_i32 = arith.constant 0 : i32
    return %arg0, %arg1 : i32, i32
  }
}

module attributes {stable_mosaic.version = 11 : i64} {
  func.func @_flash_kernel(%arg0: i32, %arg1: i32, %arg2: i32, %arg3: i32, %arg4: memref<1x1x128x64xbf16, #tpu.memory_space<vmem>>, %arg5: memref<1x1x128x64xbf16, #tpu.memory_space<vmem>>, %arg6: memref<1x1x128x64xbf16, #tpu.memory_space<vmem>>, %arg7: memref<1x1x128x64xbf16, #tpu.memory_space<vmem>>, %arg8: memref<128x1xf32, #tpu.memory_space<vmem>>, %arg9: memref<128x1xf32, #tpu.memory_space<vmem>>, %arg10: memref<128x64xf32, #tpu.memory_space<vmem>>) attributes {dimension_semantics = [#tpu.dimension_semantics<parallel>, #tpu.dimension_semantics<parallel>, #tpu.dimension_semantics<parallel>, #tpu.dimension_semantics<arbitrary>], iteration_bounds = array<i64: 2, 4, 2, 2>, scalar_prefetch = 0 : i64, scratch_operands = 3 : i64, tpu.core_type = #tpu.core_type<tc>, window_params = [{transform_indices = @transform_0, window_bounds = array<i64: 1, 1, 128, 64>}, {transform_indices = @transform_1, window_bounds = array<i64: 1, 1, 128, 64>}, {transform_indices = @transform_2, window_bounds = array<i64: 1, 1, 128, 64>}, {transform_indices = @transform_3, window_bounds = array<i64: 1, 1, 128, 64>}]} {
    %c0_i32 = arith.constant 0 : i32
    %0 = arith.cmpi eq, %arg3, %c0_i32 : i32
    %1 = arith.extui %0 : i1 to i32
    %c0_i32_0 = arith.constant 0 : i32
    %2 = arith.cmpi ne, %1, %c0_i32_0 : i32
    scf.if %2 {
      %cst_29 = arith.constant 0xFF800000 : f32
      %38 = vector.broadcast %cst_29 : f32 to vector<128x1xf32>
      %c0_30 = arith.constant 0 : index
      %c0_31 = arith.constant 0 : index
      %39 = vector.load %arg8[%c0_30, %c0_31] : memref<128x1xf32, #tpu.memory_space<vmem>>, vector<128x1xf32>
      tpu.vector_store %arg8[%c0_30, %c0_31], %38 {strides = array<i32>} : memref<128x1xf32, #tpu.memory_space<vmem>>, vector<128x1xf32>,
      %cst_32 = arith.constant 0.000000e+00 : f32
      %40 = vector.broadcast %cst_32 : f32 to vector<128x1xf32>
      %c0_33 = arith.constant 0 : index
      %c0_34 = arith.constant 0 : index
      %41 = vector.load %arg9[%c0_33, %c0_34] : memref<128x1xf32, #tpu.memory_space<vmem>>, vector<128x1xf32>
      tpu.vector_store %arg9[%c0_33, %c0_34], %40 {strides = array<i32>} : memref<128x1xf32, #tpu.memory_space<vmem>>, vector<128x1xf32>,
      %cst_35 = arith.constant 0.000000e+00 : f32
      %42 = vector.broadcast %cst_35 : f32 to vector<128x64xf32>
      %c0_36 = arith.constant 0 : index
      %c0_37 = arith.constant 0 : index
      %43 = vector.load %arg10[%c0_36, %c0_37] : memref<128x64xf32, #tpu.memory_space<vmem>>, vector<128x64xf32>
      tpu.vector_store %arg10[%c0_36, %c0_37], %42 {strides = array<i32>} : memref<128x64xf32, #tpu.memory_space<vmem>>, vector<128x64xf32>,
    } else {
    }
    %c0 = arith.constant 0 : index
    %c0_1 = arith.constant 0 : index
    %c0_2 = arith.constant 0 : index
    %c0_3 = arith.constant 0 : index
    %3 = vector.load %arg4[%c0, %c0_1, %c0_2, %c0_3] : memref<1x1x128x64xbf16, #tpu.memory_space<vmem>>, vector<1x1x128x64xbf16>
    %4 = vector.shape_cast %3 : vector<1x1x128x64xbf16> to vector<128x64xbf16>
    %cst = arith.constant 1.250000e-01 : bf16
    %5 = vector.broadcast %cst : bf16 to vector<128x64xbf16>
    %6 = arith.mulf %4, %5 : vector<128x64xbf16>
    %c0_4 = arith.constant 0 : index
    %c0_5 = arith.constant 0 : index
    %c0_6 = arith.constant 0 : index
    %c0_7 = arith.constant 0 : index
    %7 = vector.load %arg5[%c0_4, %c0_5, %c0_6, %c0_7] : memref<1x1x128x64xbf16, #tpu.memory_space<vmem>>, vector<1x1x128x64xbf16>
    %8 = vector.shape_cast %7 : vector<1x1x128x64xbf16> to vector<128x64xbf16>
    %cst_8 = arith.constant dense<0.000000e+00> : vector<128x128xf32>
    %9 = tpu.matmul %6, %8, %cst_8 {dimension_numbers = #tpu.dot_dimension_numbers<[1], [1], [0], [0], [0, 0, 1, 0], [], []>} : vector<128x64xbf16>, vector<128x64xbf16>, vector<128x128xf32> -> vector<128x128xf32>
    %c0_9 = arith.constant 0 : index
    %c0_10 = arith.constant 0 : index
    %10 = vector.load %arg8[%c0_9, %c0_10] : memref<128x1xf32, #tpu.memory_space<vmem>>, vector<128x1xf32>
    %cst_11 = arith.constant dense<0xFF800000> : vector<128xf32>
    %11 = vector.multi_reduction <maximumf>, %9, %cst_11 [1] : vector<128x128xf32> to vector<128xf32>
    %12 = vector.shape_cast %11 : vector<128xf32> to vector<128x1xf32>
    %13 = arith.maximumf %10, %12 : vector<128x1xf32>
    %14 = arith.subf %10, %13 : vector<128x1xf32>
    %15 = math.exp %14 : vector<128x1xf32>
    %16 = vector.broadcast %13 : vector<128x1xf32> to vector<128x128xf32>
    %17 = arith.subf %9, %16 : vector<128x128xf32>
    %18 = math.exp %17 : vector<128x128xf32>
    %c0_12 = arith.constant 0 : index
    %c0_13 = arith.constant 0 : index
    %19 = vector.load %arg9[%c0_12, %c0_13] : memref<128x1xf32, #tpu.memory_space<vmem>>, vector<128x1xf32>
    %20 = arith.mulf %15, %19 : vector<128x1xf32>
    %cst_14 = arith.constant dense<0.000000e+00> : vector<128xf32>
    %21 = vector.multi_reduction <add>, %18, %cst_14 [1] : vector<128x128xf32> to vector<128xf32>
    %22 = vector.shape_cast %21 : vector<128xf32> to vector<128x1xf32>
    %23 = arith.addf %20, %22 : vector<128x1xf32>
    %c0_15 = arith.constant 0 : index
    %c0_16 = arith.constant 0 : index
    %24 = vector.load %arg9[%c0_15, %c0_16] : memref<128x1xf32, #tpu.memory_space<vmem>>, vector<128x1xf32>
    tpu.vector_store %arg9[%c0_15, %c0_16], %23 {strides = array<i32>} : memref<128x1xf32, #tpu.memory_space<vmem>>, vector<128x1xf32>,
    %c0_17 = arith.constant 0 : index
    %c0_18 = arith.constant 0 : index
    %25 = vector.load %arg10[%c0_17, %c0_18] : memref<128x64xf32, #tpu.memory_space<vmem>>, vector<128x64xf32>
    %26 = vector.broadcast %15 : vector<128x1xf32> to vector<128x64xf32>
    %27 = arith.mulf %26, %25 : vector<128x64xf32>
    %28 = arith.truncf %18 : vector<128x128xf32> to vector<128x128xbf16>
    %c0_19 = arith.constant 0 : index
    %c0_20 = arith.constant 0 : index
    %c0_21 = arith.constant 0 : index
    %c0_22 = arith.constant 0 : index
    %29 = vector.load %arg6[%c0_19, %c0_20, %c0_21, %c0_22] : memref<1x1x128x64xbf16, #tpu.memory_space<vmem>>, vector<1x1x128x64xbf16>
    %30 = vector.shape_cast %29 : vector<1x1x128x64xbf16> to vector<128x64xbf16>
    %cst_23 = arith.constant dense<0.000000e+00> : vector<128x64xf32>
    %31 = tpu.matmul %28, %30, %cst_23 {dimension_numbers = #tpu.dot_dimension_numbers<[1], [0], [0], [1], [0, 0, 1, 1], [], []>} : vector<128x128xbf16>, vector<128x64xbf16>, vector<128x64xf32> -> vector<128x64xf32>
    %32 = arith.addf %27, %31 : vector<128x64xf32>
    %c0_24 = arith.constant 0 : index
    %c0_25 = arith.constant 0 : index
    %33 = vector.load %arg10[%c0_24, %c0_25] : memref<128x64xf32, #tpu.memory_space<vmem>>, vector<128x64xf32>
    tpu.vector_store %arg10[%c0_24, %c0_25], %32 {strides = array<i32>} : memref<128x64xf32, #tpu.memory_space<vmem>>, vector<128x64xf32>,
    %c0_26 = arith.constant 0 : index
    %c0_27 = arith.constant 0 : index
    %34 = vector.load %arg8[%c0_26, %c0_27] : memref<128x1xf32, #tpu.memory_space<vmem>>, vector<128x1xf32>
    tpu.vector_store %arg8[%c0_26, %c0_27], %13 {strides = array<i32>} : memref<128x1xf32, #tpu.memory_space<vmem>>, vector<128x1xf32>,
    %c1_i32 = arith.constant 1 : i32
    %35 = arith.cmpi eq, %arg3, %c1_i32 : i32
    %36 = arith.extui %35 : i1 to i32
    %c0_i32_28 = arith.constant 0 : i32
    %37 = arith.cmpi ne, %36, %c0_i32_28 : i32
    scf.if %37 {
      %c0_29 = arith.constant 0 : index
      %c0_30 = arith.constant 0 : index
      %38 = vector.load %arg10[%c0_29, %c0_30] : memref<128x64xf32, #tpu.memory_space<vmem>>, vector<128x64xf32>
      %c0_31 = arith.constant 0 : index
      %c0_32 = arith.constant 0 : index
      %39 = vector.load %arg9[%c0_31, %c0_32] : memref<128x1xf32, #tpu.memory_space<vmem>>, vector<128x1xf32>
      %40 = tpu.reciprocal %39 {approx = true} : vector<128x1xf32> -> vector<128x1xf32>
      %41 = vector.broadcast %40 : vector<128x1xf32> to vector<128x64xf32>
      %42 = arith.mulf %38, %41 : vector<128x64xf32>
      %43 = arith.truncf %42 : vector<128x64xf32> to vector<128x64xbf16>
      %c0_33 = arith.constant 0 : index
      %c0_34 = arith.constant 0 : index
      %c0_35 = arith.constant 0 : index
      %c0_36 = arith.constant 0 : index
      %44 = vector.load %arg7[%c0_33, %c0_34, %c0_35, %c0_36] : memref<1x1x128x64xbf16, #tpu.memory_space<vmem>>, vector<1x1x128x64xbf16>
      %45 = vector.shape_cast %44 : vector<1x1x128x64xbf16> to vector<128x64xbf16>
      %46 = vector.shape_cast %43 : vector<128x64xbf16> to vector<1x1x128x64xbf16>
      tpu.vector_store %arg7[%c0_33, %c0_34, %c0_35, %c0_36], %46 {strides = array<i32>} : memref<1x1x128x64xbf16, #tpu.memory_space<vmem>>, vector<1x1x128x64xbf16>,
    } else {
    }
    return
  }
  func.func @transform_0(%arg0: i32, %arg1: i32, %arg2: i32, %arg3: i32) -> (i32, i32, i32, i32) {
    %c0_i32 = arith.constant 0 : i32
    %c0_i32_0 = arith.constant 0 : i32
    return %arg0, %arg1, %arg2, %c0_i32 : i32, i32, i32, i32
  }
  func.func @transform_1(%arg0: i32, %arg1: i32, %arg2: i32, %arg3: i32) -> (i32, i32, i32, i32) {
    %c0_i32 = arith.constant 0 : i32
    %c0_i32_0 = arith.constant 0 : i32
    return %arg0, %arg1, %arg3, %c0_i32 : i32, i32, i32, i32
  }
  func.func @transform_2(%arg0: i32, %arg1: i32, %arg2: i32, %arg3: i32) -> (i32, i32, i32, i32) {
    %c0_i32 = arith.constant 0 : i32
    %c0_i32_0 = arith.constant 0 : i32
    return %arg0, %arg1, %arg3, %c0_i32 : i32, i32, i32, i32
  }
  func.func @transform_3(%arg0: i32, %arg1: i32, %arg2: i32, %arg3: i32) -> (i32, i32, i32, i32) {
    %c0_i32 = arith.constant 0 : i32
    %c0_i32_0 = arith.constant 0 : i32
    return %arg0, %arg1, %arg2, %c0_i32 : i32, i32, i32, i32
  }
}

module attributes {stable_mosaic.version = 11 : i64} {
  func.func @_matmul_kernel(%arg0: i32, %arg1: i32, %arg2: i32, %arg3: memref<256x128xbf16, #tpu.memory_space<vmem>>, %arg4: memref<128x256xbf16, #tpu.memory_space<vmem>>, %arg5: memref<256x256xbf16, #tpu.memory_space<vmem>>, %arg6: memref<256x256xf32, #tpu.memory_space<vmem>>) attributes {dimension_semantics = [#tpu.dimension_semantics<parallel>, #tpu.dimension_semantics<parallel>, #tpu.dimension_semantics<arbitrary>], iteration_bounds = array<i64: 2, 1, 2>, scalar_prefetch = 0 : i64, scratch_operands = 1 : i64, tpu.core_type = #tpu.core_type<tc>, window_params = [{transform_indices = @transform_0, window_bounds = array<i64: 256, 128>}, {transform_indices = @transform_1, window_bounds = array<i64: 128, 256>}, {transform_indices = @transform_2, window_bounds = array<i64: 256, 256>}]} {
    %c0_i32 = arith.constant 0 : i32
    %0 = arith.cmpi eq, %arg2, %c0_i32 : i32
    %1 = arith.extui %0 : i1 to i32
    %c0_i32_0 = arith.constant 0 : i32
    %2 = arith.cmpi ne, %1, %c0_i32_0 : i32
    scf.if %2 {
      %cst_9 = arith.constant 0.000000e+00 : f32
      %12 = vector.broadcast %cst_9 : f32 to vector<256x256xf32>
      %c0_10 = arith.constant 0 : index
      %c0_11 = arith.constant 0 : index
      %13 = vector.load %arg6[%c0_10, %c0_11] : memref<256x256xf32, #tpu.memory_space<vmem>>, vector<256x256xf32>
      tpu.vector_store %arg6[%c0_10, %c0_11], %12 {strides = array<i32>} : memref<256x256xf32, #tpu.memory_space<vmem>>, vector<256x256xf32>,
    } else {
    }
    %c0 = arith.constant 0 : index
    %c0_1 = arith.constant 0 : index
    %3 = vector.load %arg6[%c0, %c0_1] : memref<256x256xf32, #tpu.memory_space<vmem>>, vector<256x256xf32>
    %c0_2 = arith.constant 0 : index
    %c0_3 = arith.constant 0 : index
    %4 = vector.load %arg3[%c0_2, %c0_3] : memref<256x128xbf16, #tpu.memory_space<vmem>>, vector<256x128xbf16>
    %c0_4 = arith.constant 0 : index
    %c0_5 = arith.constant 0 : index
    %5 = vector.load %arg4[%c0_4, %c0_5] : memref<128x256xbf16, #tpu.memory_space<vmem>>, vector<128x256xbf16>
    %cst = arith.constant dense<0.000000e+00> : vector<256x256xf32>
    %6 = tpu.matmul %4, %5, %cst {dimension_numbers = #tpu.dot_dimension_numbers<[1], [0], [0], [1], [0, 0, 1, 1], [], []>} : vector<256x128xbf16>, vector<128x256xbf16>, vector<256x256xf32> -> vector<256x256xf32>
    %7 = arith.addf %3, %6 : vector<256x256xf32>
    %c0_6 = arith.constant 0 : index
    %c0_7 = arith.constant 0 : index
    %8 = vector.load %arg6[%c0_6, %c0_7] : memref<256x256xf32, #tpu.memory_space<vmem>>, vector<256x256xf32>
    tpu.vector_store %arg6[%c0_6, %c0_7], %7 {strides = array<i32>} : memref<256x256xf32, #tpu.memory_space<vmem>>, vector<256x256xf32>,
    %c1_i32 = arith.constant 1 : i32
    %9 = arith.cmpi eq, %arg2, %c1_i32 : i32
    %10 = arith.extui %9 : i1 to i32
    %c0_i32_8 = arith.constant 0 : i32
    %11 = arith.cmpi ne, %10, %c0_i32_8 : i32
    scf.if %11 {
      %c0_9 = arith.constant 0 : index
      %c0_10 = arith.constant 0 : index
      %12 = vector.load %arg6[%c0_9, %c0_10] : memref<256x256xf32, #tpu.memory_space<vmem>>, vector<256x256xf32>
      %13 = arith.truncf %12 : vector<256x256xf32> to vector<256x256xbf16>
      %c0_11 = arith.constant 0 : index
      %c0_12 = arith.constant 0 : index
      %14 = vector.load %arg5[%c0_11, %c0_12] : memref<256x256xbf16, #tpu.memory_space<vmem>>, vector<256x256xbf16>
      tpu.vector_store %arg5[%c0_11, %c0_12], %13 {strides = array<i32>} : memref<256x256xbf16, #tpu.memory_space<vmem>>, vector<256x256xbf16>,
    } else {
    }
    return
  }
  func.func @transform_0(%arg0: i32, %arg1: i32, %arg2: i32) -> (i32, i32) {
    %c0_i32 = arith.constant 0 : i32
    return %arg0, %arg2 : i32, i32
  }
  func.func @transform_1(%arg0: i32, %arg1: i32, %arg2: i32) -> (i32, i32) {
    %c0_i32 = arith.constant 0 : i32
    return %arg2, %arg1 : i32, i32
  }
  func.func @transform_2(%arg0: i32, %arg1: i32, %arg2: i32) -> (i32, i32) {
    %c0_i32 = arith.constant 0 : i32
    return %arg0, %arg1 : i32, i32
  }
}

</mosaic_0001>

<bundles_post_ra>
// kernel: causal_self_attention_forward.3
= control target key start
LH: loop header
LB: loop body
LE: loop exit
PB: predicated region body
PF: predicated region fallthrough
CT: control target
= control target key end

     0   :  { %s2348_s0 = inlined_call_operand.hbm [shape: bf16[512,256], index: 0, kind: input, shape index: {}]   ;;  %s2349_s1 = inlined_call_operand.hbm [shape: bf16[256,768], index: 1, kind: input, shape index: {}]   ;;  %s2350_s2 = inlined_call_operand.vmem [shape: bf16[512,768], index: 2, kind: output, shape index: {}]  }
   0x1   :  { %2358 = sst [smem:[#allocation20_spill]] %s2348_s0 }
   0x2   :  { %2359 = sst [smem:[#allocation21_spill]] %s2350_s2 }
   0x3   :  { %7 = vsyncpa [#allocation4], 0 }
   0x4   :  { %9 = vsyncpa [#allocation4 + $0x1], 0 }
   0x5   :  { %10 = vsyncpa [#allocation6], 0 }
   0x6   :  { %12 = vsyncpa [#allocation6 + $0x1], 0  ;;  %s1863_s9 = smov 0   ;;  %s1865_s10 = smov 0  }
   0x7   :  { %s1867_s11 = smov 0   ;;  %s1869_s12 = smov 0  }
   0x8   :  { %s1871_s13 = smov 0   ;;  %s1873_s14 = smov 0  }
   0x9   :  { %s1875_s15 = smov 0   ;;  %s1877_s16 = smov 0  }
   0xa   :  { %s1879_s17 = smov 0   ;;  %s1881_s18 = smov 0  }
   0xb   :  { %s1883_s19 = smov 0   ;;  %s1885_s20 = smov 0  }
   0xc   :  { %s1887_s21 = smov 0   ;;  %s1889_s22 = smov 0  }
   0xd   :  { %s1891_s23 = smov 0  }
   0xe LB: > { %2360 = sst [smem:[#allocation10_spill]] %s1784_s9  ;;  %s1311_s24 = sadd.s32 4294967295, %s1840_s23   ;;  %s1840_s23 = sphi %s1891_s23, %s18_s23   ;;  %s1836_s22 = sphi %s1889_s22, %s2409_s22   ;;  %s1832_s21 = sphi %s1887_s21, %s2408_s21   ;;  %s1828_s20 = sphi %s1885_s20, %s2407_s20   ;;  %s1824_s19 = sphi %s1883_s19, %s2406_s19   ;;  %s1820_s18 = sphi %s1881_s18, %s2391_s18   ;;  %s1816_s17 = sphi %s1879_s17, %s2405_s17   ;;  %s1812_s16 = sphi %s1877_s16, %s2404_s16   ;;  %s1808_s15 = sphi %s1875_s15, %s2403_s15   ;;  %s1804_s14 = sphi %s1873_s14, %s2402_s14   ;;  %s1800_s13 = sphi %s1871_s13, %s2401_s13   ;;  %s1796_s12 = sphi %s1869_s12, %s2400_s12   ;;  %s1792_s11 = sphi %s1867_s11, %s2399_s11   ;;  %s1788_s10 = sphi %s1865_s10, %s2398_s10   ;;  %s1784_s9 = sphi %s1863_s9, %s2397_s9  }
   0xf   : > { %2361 = sst [smem:[#allocation11_spill]] %s1816_s17  ;;  %s30_s25 = sadd.s32 1, %s1828_s20 }
  0x10   : > { %2362 = sst [smem:[#allocation12_spill]] %s1820_s18  ;;  %p1938_p0 = scmp.ge.s32.totalorder %s30_s25, 2 }
  0x11   : > { %2363 = sst [smem:[#allocation13_spill]] %s1824_s19  ;;  %p53_p1 = scmp.ne.s32.totalorder %s1812_s16, %s1808_s15 }
  0x12   : > { %2364 = sst [smem:[#allocation14_spill]] %s1832_s21  ;;  %s2411_s25 = smov (%p1938_p0, %s30_s25), 0 }
  0x13   : > { %2365 = sst [smem:[#allocation15_spill]] %s1836_s22  ;;  %p54_p2 = scmp.eq.s32.totalorder %s1840_s23, 0 }
  0x14   : > { %2367 = sst [smem:[#allocation16_spill]] %s2411_s25  ;;  %p59_p3 = scmp.ne.s32.totalorder %s1808_s15, %s1804_s14 }
  0x15   : > { %s1954_s29 = ssub.s32 %s1828_s20, %s2411_s25  ;;  %p1956_p4 = scmp.eq.s32.totalorder %s1311_s24, 0 }
  0x16   : > { %p1962_p5 = por %p54_p2, %p53_p1  ;;  %p1966_p6 = scmp.eq.s32.totalorder %s1311_s24, 11 }
  0x17   : > { %p1972_p7 = por %p1956_p4, %p59_p3  ;;  %p1527_p8 = scmp.lt.s32.totalorder %s1840_s23, 12 }
  0x18   : > { %s139_s6 = sand.u32 1, %s1812_s16   ;;  %s1465_s8 = sshll.u32 %s1836_s22, 6 }
  0x19   : > { %s1315_s7 = sshll.u32 %s139_s6, 7  ;;  %s148_s14 = sadd.s32 %s1828_s20, %s1465_s8 }
  0x1a   : > { %s143_s28 = scalar_lea.vmem [#allocation3], %s1315_s7  ;;  %s1318_s24 = sshll.u32 %s148_s14, 2 }
  0x1b   : > { %s153_s27 = sshll.u32 %s143_s28, 4  ;;  %s2372_s0 = sld [smem:[#allocation20_spill]]  ;;  %s154_s27 = int_to_ptr.vmem [resolvable:$true] %s153_s27 }
  0x1c   : > { %p1521_p9 = pnand %p1527_p8, %p1962_p5  ;;  %s140_s28 = scalar_lea.sflag [#allocation4], %s139_s6 }
  0x1d   : > { %s2352_s7 = smov 128   ;;  %s1843_s14 = smov 64  }
  0x1e   : > { %s1844_s18 = smov 4   ;;  %p1324_p10 = scmp.ge.s32.totalorder %s1840_s23, 1 }
  0x1f   : > { %p186_p11 = scmp.lt.s32.totalorder %s1840_s23, 13  ;;  %s74_s25 = sadd.s32 1, %s1800_s13 }
  0x20   : > { %p81_p13 = scmp.ne.s32.totalorder %s1800_s13, %s1796_s12  ;;  %p87_p3 = scmp.ne.s32.totalorder %s1796_s12, %s1792_s11 }
  0x21   : > { %s150_s19 = scalar_lea.hbm %s2372_s0, %s1318_s24  ;;  %p1990_p12 = pnand %p1324_p10, %p186_p11 }
  0x22   : > { %s151_s8 = sshll.u32 %s150_s19, 4  ;;  %s33_s19 = sadd.s32 1, %s1832_s21  ;;  %s152_s8 = int_to_ptr.hbm [resolvable:$true] %s151_s8 }
  0x23   : > { %1523 = dma.hbm_to_vmem [thread:$0]  (!%p1521_p9), %s152_s8, 2048, %s154_s27, %s140_s28, %s2352_s7, %s1843_s14, %s1844_s18  }
  0x24   : > { %s2413_s19 = smov (!%p1938_p0, %s33_s19), %s1832_s21  ;;  %p2005_p5 = por %p81_p13, %p54_p2 }
  0x25   : > { %p35_p1 = scmp.ge.s32.totalorder %s2413_s19, 3  ;;  %s102_s27 = sadd.s32 1, %s1788_s10 }
  0x26   : > { %s2376_s3 = sadd.s32 1, %s1836_s22  ;;  %p2019_p0 = por %p87_p3, %p1956_p4 }
  0x27   : > { %s2415_s19 = smov (%p35_p1, %s2413_s19), 0  ;;  %s2417_s3 = smov (!%p35_p1, %s2376_s3), %s1836_s22 }
  0x28   : > { %2375 = sst [smem:[#allocation17_spill]] %s2415_s19  ;;  %s70_s26 = ssub.s32 %s1832_s21, %s2415_s19 }
  0x29   : > { %p39_p2 = scmp.ge.s32.totalorder %s2417_s3, 2  ;;  %s71_s11 = sor.u32 %s70_s26, %s1954_s29 }
  0x2a   : > { %p72_p9 = scmp.eq.s32.totalorder %s71_s11, 0  ;;  %p112_p10 = scmp.ne.s32.totalorder %s1788_s10, %s1784_s9 }
  0x2b   : > { %s2419_s3 = smov (%p39_p2, %s2417_s3), 0  ;;  %s163_s7 = sand.u32 1, %s1800_s13  }
  0x2c   : > { %2378 = sst [smem:[#allocation18_spill]] %s2419_s3  ;;  %s41_s30 = ssub.s32 %s1836_s22, %s2419_s3 }
  0x2d   : > { %s2029_s24 = scalar_select %p72_p9, %s1800_s13, %s74_s25  }
  0x2e   : > { %p2035_p11 = por %p1966_p6, %p112_p10  ;;  %s43_s28 = sor.u32 %s1954_s29, %s41_s30 }
  0x2f   : > { %2379 = sst [smem:[#allocation19_spill]] %s2029_s24  ;;  %s99_s14 = sor.u32 %s70_s26, %s41_s30 }
  0x30   : > { %p44_p4 = scmp.eq.s32.totalorder %s43_s28, 0  ;;  %p100_p13 = scmp.eq.s32.totalorder %s99_s14, 0 }
  0x31   : > { %s1321_s11 = sshll.u32 %s1832_s21, 1  ;;  %s2381_s0 = sadd.s32 1, %s1812_s16 }
  0x32   : > { %s2045_s19 = scalar_select %p44_p4, %s1812_s16, %s2381_s0  }
  0x33   : > { %s2048_s17 = scalar_select %p100_p13, %s1788_s10, %s102_s27  }
  0x34   : > { %s1319_s9 = sshll.u32 %s163_s7, 7  ;;  %s1514_s25 = smul.u32 96, %s1828_s20 }
  0x35   : > { %s167_s24 = scalar_lea.vmem [#allocation5], %s1319_s9  ;;  %p1524_p6 = pnand %p1527_p8, %p2005_p5 }
  0x36   : > { %s178_s3 = sshll.u32 %s167_s24, 4  ;;  %s173_s4 = sadd.s32 %s1514_s25, %s1321_s11  ;;  %s179_s3 = int_to_ptr.vmem [resolvable:$true] %s178_s3 }
  0x37   : > { %s1323_s29 = sshll.u32 %s173_s4, 2  ;;  %s164_s0 = scalar_lea.sflag [#allocation6], %s163_s7 }
  0x38   : > { %s175_s28 = scalar_lea.hbm %s2349_s1, %s1323_s29  ;;  %s1845_s22 = smov 384  }
  0x39   : > { %s176_s14 = sshll.u32 %s175_s28, 4  ;;  %s1846_s27 = smov 8   ;;  %s177_s14 = int_to_ptr.hbm [resolvable:$true] %s176_s14 }
  0x3a   : > { %s2382_s21 = smov 128   ;;  %190 = sbr.rel (%p1990_p12) target bundleno = 517 (0x205), region = 28 }
  0x3b   : > { %1526 = dma.hbm_to_vmem [thread:$0]  (!%p1524_p6), %s177_s14, 2048, %s179_s3, %s164_s0, %s1845_s22, %s2382_s21, %s1846_s27  }
  0x3c   : > { %s192_s9 = sand.u32 (!%p1990_p12), 1, %s1808_s15  }
  0x3d   : > { %s1325_s18 = sshll.u32 (!%p1990_p12), %s192_s9, 7  ;;  %s193_s24 = scalar_lea.sflag (!%p1990_p12), [#allocation4], %s192_s9 }
  0x3e   : > { %s2062_s11 = scalar_lea.vmem (!%p1990_p12), [#allocation3], %s1325_s18 }
  0x3f   : > { %1775 = dma.done.wait (%p1972_p7), %s193_s24, 2048  }
  0x40   : > { %1777 = vsyncadd (%p1972_p7), %s193_s24, 4294965248  ;;  %s202_s7 = sand.u32 1, %s1796_s12  }
  0x41   : > { %s1326_s25 = sshll.u32 %s202_s7, 7  ;;  %s203_s21 = scalar_lea.sflag [#allocation6], %s202_s7 }
  0x42   : > { %s2069_s22 = scalar_lea.vmem [#allocation5], %s1326_s25 }
  0x43   : > { %1779 = dma.done.wait (%p2019_p0), %s203_s21, 2048  }
  0x44   : > { %1781 = vsyncadd (%p2019_p0), %s203_s21, 4294965248  ;;  %s2383_s2 = sld [smem:[#allocation10_spill]] }
  0x45   : > { %s2384_s26 = sld [smem:[#allocation11_spill]] }
  0x4a   : > { %s229_s3 = sand.u32 1, %s2383_s2  }
  0x4b   : > { %s1327_s4 = sshll.u32 %s229_s3, 8  ;;  %p1328_p8 = scmp.ne.s32.totalorder %s2384_s26, 0 }
  0x4c   : > { %s2076_s29 = scalar_lea.vmem [#allocation7], %s1327_s4 }
  0x4d   : > { %240 = sbr.rel (%p1328_p8) target bundleno = 147 (0x93), region = 40 }
  0x52   : > { %v1847_v0 = vmov 0.0  }
  0x53   : > { %241 = vst [vmem:[#allocation2 + $0xb0] sm:$0xff] %v1847_v0 }
  0x54   : > { %242 = vst [vmem:[#allocation2 + $0x1b0] sm:$0xff] %v1847_v0 }
  0x55   : > { %243 = vst [vmem:[#allocation2 + $0xd8] sm:$0xff] %v1847_v0 }
  0x56   : > { %244 = vst [vmem:[#allocation2 + $0x18] sm:$0xff] %v1847_v0 }
  0x57   : > { %245 = vst [vmem:[#allocation2 + $0x50] sm:$0xff] %v1847_v0 }
  0x58   : > { %246 = vst [vmem:[#allocation2 + $0x168] sm:$0xff] %v1847_v0 }
  0x59   : > { %247 = vst [vmem:[#allocation2 + $0x130] sm:$0xff] %v1847_v0 }
  0x5a   : > { %248 = vst [vmem:[#allocation2 + $0x48] sm:$0xff] %v1847_v0 }
  0x5b   : > { %249 = vst [vmem:[#allocation2 + $0x180] sm:$0xff] %v1847_v0 }
  0x5c   : > { %250 = vst [vmem:[#allocation2 + $0x110] sm:$0xff] %v1847_v0 }
  0x5d   : > { %251 = vst [vmem:[#allocation2 + $0x118] sm:$0xff] %v1847_v0 }
  0x5e   : > { %252 = vst [vmem:[#allocation2 + $0x98] sm:$0xff] %v1847_v0 }
  0x5f   : > { %253 = vst [vmem:[#allocation2 + $0x120] sm:$0xff] %v1847_v0 }
  0x60   : > { %254 = vst [vmem:[#allocation2 + $0x150] sm:$0xff] %v1847_v0 }
  0x61   : > { %255 = vst [vmem:[#allocation2 + $0x108] sm:$0xff] %v1847_v0 }
  0x62   : > { %256 = vst [vmem:[#allocation2 + $0x60] sm:$0xff] %v1847_v0 }
  0x63   : > { %257 = vst [vmem:[#allocation2 + $0xe0] sm:$0xff] %v1847_v0 }
  0x64   : > { %258 = vst [vmem:[#allocation2 + $0x188] sm:$0xff] %v1847_v0 }
  0x65   : > { %259 = vst [vmem:[#allocation2 + $0x138] sm:$0xff] %v1847_v0 }
  0x66   : > { %260 = vst [vmem:[#allocation2 + $0x140] sm:$0xff] %v1847_v0 }
  0x67   : > { %261 = vst [vmem:[#allocation2 + $0x80] sm:$0xff] %v1847_v0 }
  0x68   : > { %262 = vst [vmem:[#allocation2 + $0x1a8] sm:$0xff] %v1847_v0 }
  0x69   : > { %263 = vst [vmem:[#allocation2 + $0x1b8] sm:$0xff] %v1847_v0 }
  0x6a   : > { %264 = vst [vmem:[#allocation2 + $0x28] sm:$0xff] %v1847_v0 }
  0x6b   : > { %265 = vst [vmem:[#allocation2 + $0x1e8] sm:$0xff] %v1847_v0 }
  0x6c   : > { %266 = vst [vmem:[#allocation2 + $0xf8] sm:$0xff] %v1847_v0 }
  0x6d   : > { %267 = vst [vmem:[#allocation2 + $0x160] sm:$0xff] %v1847_v0 }
  0x6e   : > { %268 = vst [vmem:[#allocation2 + $0x30] sm:$0xff] %v1847_v0 }
  0x6f   : > { %269 = vst [vmem:[#allocation2 + $0x1e0] sm:$0xff] %v1847_v0 }
  0x70   : > { %270 = vst [vmem:[#allocation2] sm:$0xff] %v1847_v0 }
  0x71   : > { %271 = vst [vmem:[#allocation2 + $0xf0] sm:$0xff] %v1847_v0 }
  0x72   : > { %272 = vst [vmem:[#allocation2 + $0x8] sm:$0xff] %v1847_v0 }
  0x73   : > { %273 = vst [vmem:[#allocation2 + $0x148] sm:$0xff] %v1847_v0 }
  0x74   : > { %274 = vst [vmem:[#allocation2 + $0x1d0] sm:$0xff] %v1847_v0 }
  0x75   : > { %275 = vst [vmem:[#allocation2 + $0x100] sm:$0xff] %v1847_v0 }
  0x76   : > { %276 = vst [vmem:[#allocation2 + $0xc8] sm:$0xff] %v1847_v0 }
  0x77   : > { %277 = vst [vmem:[#allocation2 + $0x40] sm:$0xff] %v1847_v0 }
  0x78   : > { %278 = vst [vmem:[#allocation2 + $0x1f8] sm:$0xff] %v1847_v0 }
  0x79   : > { %279 = vst [vmem:[#allocation2 + $0x20] sm:$0xff] %v1847_v0 }
  0x7a   : > { %280 = vst [vmem:[#allocation2 + $0x128] sm:$0xff] %v1847_v0 }
  0x7b   : > { %281 = vst [vmem:[#allocation2 + $0x1a0] sm:$0xff] %v1847_v0 }
  0x7c   : > { %282 = vst [vmem:[#allocation2 + $0x1f0] sm:$0xff] %v1847_v0 }
  0x7d   : > { %283 = vst [vmem:[#allocation2 + $0xe8] sm:$0xff] %v1847_v0 }
  0x7e   : > { %284 = vst [vmem:[#allocation2 + $0x78] sm:$0xff] %v1847_v0 }
  0x7f   : > { %285 = vst [vmem:[#allocation2 + $0x70] sm:$0xff] %v1847_v0 }
  0x80   : > { %286 = vst [vmem:[#allocation2 + $0x90] sm:$0xff] %v1847_v0 }
  0x81   : > { %287 = vst [vmem:[#allocation2 + $0x1d8] sm:$0xff] %v1847_v0 }
  0x82   : > { %288 = vst [vmem:[#allocation2 + $0xd0] sm:$0xff] %v1847_v0 }
  0x83   : > { %289 = vst [vmem:[#allocation2 + $0xb8] sm:$0xff] %v1847_v0 }
  0x84   : > { %290 = vst [vmem:[#allocation2 + $0x88] sm:$0xff] %v1847_v0 }
  0x85   : > { %291 = vst [vmem:[#allocation2 + $0xa8] sm:$0xff] %v1847_v0 }
  0x86   : > { %292 = vst [vmem:[#allocation2 + $0x1c8] sm:$0xff] %v1847_v0 }
  0x87   : > { %293 = vst [vmem:[#allocation2 + $0x170] sm:$0xff] %v1847_v0 }
  0x88   : > { %294 = vst [vmem:[#allocation2 + $0x178] sm:$0xff] %v1847_v0 }
  0x89   : > { %295 = vst [vmem:[#allocation2 + $0x68] sm:$0xff] %v1847_v0 }
  0x8a   : > { %296 = vst [vmem:[#allocation2 + $0x190] sm:$0xff] %v1847_v0 }
  0x8b   : > { %297 = vst [vmem:[#allocation2 + $0x198] sm:$0xff] %v1847_v0 }
  0x8c   : > { %298 = vst [vmem:[#allocation2 + $0x38] sm:$0xff] %v1847_v0 }
  0x8d   : > { %299 = vst [vmem:[#allocation2 + $0xc0] sm:$0xff] %v1847_v0 }
  0x8e   : > { %300 = vst [vmem:[#allocation2 + $0x1c0] sm:$0xff] %v1847_v0 }
  0x8f   : > { %301 = vst [vmem:[#allocation2 + $0x158] sm:$0xff] %v1847_v0 }
  0x90   : > { %302 = vst [vmem:[#allocation2 + $0x10] sm:$0xff] %v1847_v0 }
  0x91   : > { %303 = vst [vmem:[#allocation2 + $0x58] sm:$0xff] %v1847_v0 }
  0x92   : > { %304 = vst [vmem:[#allocation2 + $0xa0] sm:$0xff] %v1847_v0 }
  0x93 PF: > { %v1451_v1 = vld [vmem:[%s2069_s22 + $0x70] sm:$0xf]  ;;  %v1497_v2 = vld [vmem:[%s2069_s22 + $0x74] sm:$0xf0]  ;;  %v1496_v3 = vld [vmem:[%s2069_s22 + $0x74] sm:$0xf] }
  0x94   : > { %v1452_v4 = vor.u32 %v1497_v2, %v1451_v1  ;;  %v1453_v5 = vld [vmem:[%s2069_s22 + $0x78] sm:$0xf0]  ;;  %v1443_v6 = vld [vmem:[%s2069_s22 + $0x60] sm:$0xf]  ;;  %v1495_v7 = vld [vmem:[%s2069_s22 + $0x64] sm:$0xf0] }
  0x95   : > { %v1456_v8 = vor.u32 %v1496_v3, %v1453_v5  ;;  %v1494_v9 = vld [vmem:[%s2069_s22 + $0x64] sm:$0xf]  ;;  %v1445_v10 = vld [vmem:[%s2069_s22 + $0x68] sm:$0xf0]  ;;  %v1444_v11 = vor.u32 %v1495_v7, %v1443_v6  ;;  %v1435_v13 = vld [vmem:[%s2069_s22 + $0x50] sm:$0xf] }
  0x96   : > { %593 = vmatpush.bf16.msra.mxu0 %v1452_v4  ;;  %1498 = vmatpush.bf16.msra.mxu2 %v1452_v4  ;;  %v1448_v12 = vor.u32 %v1494_v9, %v1445_v10  ;;  %v1493_v14 = vld [vmem:[%s2069_s22 + $0x54] sm:$0xf0]  ;;  %v1492_v15 = vld [vmem:[%s2069_s22 + $0x54] sm:$0xf]  ;;  %v1437_v16 = vld [vmem:[%s2069_s22 + $0x58] sm:$0xf0] }
  0x97   : > { %682 = vmatpush.bf16.msra.mxu1 %v1456_v8  ;;  %1506 = vmatpush.bf16.msra.mxu3 %v1456_v8  ;;  %v1436_v17 = vor.u32 %v1493_v14, %v1435_v13  ;;  %v1440_v18 = vor.u32 %v1492_v15, %v1437_v16  ;;  %v1427_v19 = vld [vmem:[%s2069_s22 + $0x40] sm:$0xf]  ;;  %v1491_v20 = vld [vmem:[%s2069_s22 + $0x44] sm:$0xf0]  ;;  %v1490_v21 = vld [vmem:[%s2069_s22 + $0x44] sm:$0xf] }
  0x98   : > { %v1429_v22 = vld [vmem:[%s2069_s22 + $0x48] sm:$0xf0]  ;;  %v1428_v23 = vor.u32 %v1491_v20, %v1427_v19  ;;  %v1419_v25 = vld [vmem:[%s2069_s22 + $0x30] sm:$0xf]  ;;  %v1489_v26 = vld [vmem:[%s2069_s22 + $0x34] sm:$0xf0] }
  0x99   : > { %v1432_v24 = vor.u32 %v1490_v21, %v1429_v22  ;;  %v1488_v27 = vld [vmem:[%s2069_s22 + $0x34] sm:$0xf]  ;;  %v1421_v28 = vld [vmem:[%s2069_s22 + $0x38] sm:$0xf0]  ;;  %v1420_v29 = vor.u32 %v1489_v26, %v1419_v25  ;;  %v1411_v31 = vld [vmem:[%s2069_s22 + $0x20] sm:$0xf] }
  0x9a   : > { %594 = vmatpush.bf16.msra.mxu0 %v1444_v11  ;;  %1499 = vmatpush.bf16.msra.mxu2 %v1444_v11  ;;  %v1424_v30 = vor.u32 %v1488_v27, %v1421_v28  ;;  %v1487_v32 = vld [vmem:[%s2069_s22 + $0x24] sm:$0xf0]  ;;  %v1486_v33 = vld [vmem:[%s2069_s22 + $0x24] sm:$0xf]  ;;  %v1413_v34 = vld [vmem:[%s2069_s22 + $0x28] sm:$0xf0] }
  0x9b   : > { %683 = vmatpush.bf16.msra.mxu1 %v1448_v12  ;;  %1507 = vmatpush.bf16.msra.mxu3 %v1448_v12  ;;  %v1412_v35 = vor.u32 %v1487_v32, %v1411_v31  ;;  %v1416_v36 = vor.u32 %v1486_v33, %v1413_v34  ;;  %v1403_v37 = vld [vmem:[%s2069_s22 + $0x10] sm:$0xf]  ;;  %v1485_v38 = vld [vmem:[%s2069_s22 + $0x14] sm:$0xf0]  ;;  %v1484_v39 = vld [vmem:[%s2069_s22 + $0x14] sm:$0xf] }
  0x9c   : > { %v1405_v40 = vld [vmem:[%s2069_s22 + $0x18] sm:$0xf0]  ;;  %v1404_v41 = vor.u32 %v1485_v38, %v1403_v37  ;;  %v1395_v43 = vld [vmem:[%s2069_s22] sm:$0xf]  ;;  %v1483_v44 = vld [vmem:[%s2069_s22 + $0x4] sm:$0xf0] }
  0x9d   : > { %v1408_v42 = vor.u32 %v1484_v39, %v1405_v40  ;;  %v1482_v45 = vld [vmem:[%s2069_s22 + $0x4] sm:$0xf]  ;;  %v1397_v46 = vld [vmem:[%s2069_s22 + $0x8] sm:$0xf0]  ;;  %v1396_v47 = vor.u32 %v1483_v44, %v1395_v43  ;;  %v1468_v53 = vld [vmem:[%s2062_s11 + $0x10] sm:$0xff]  ;;  %s2385_s5 = sld [smem:[#allocation11_spill]] }
  0x9e   : > { %595 = vmatpush.bf16.msra.mxu0 %v1436_v17  ;;  %1500 = vmatpush.bf16.msra.mxu2 %v1436_v17  ;;  %v1400_v48 = vor.u32 %v1482_v45, %v1397_v46  ;;  %v1466_v49 = vld [vmem:[%s2062_s11] sm:$0xff]  ;;  %v1467_v51 = vld [vmem:[%s2062_s11 + $0x8] sm:$0xff]  ;;  %v1476_v54 = vld [vmem:[%s2062_s11 + $0x50] sm:$0xff] }
  0x9f   : > { %684 = vmatpush.bf16.msra.mxu1 %v1440_v18  ;;  %1508 = vmatpush.bf16.msra.mxu3 %v1440_v18  ;;  %v1474_v50 = vld [vmem:[%s2062_s11 + $0x40] sm:$0xff]  ;;  %v1475_v52 = vld [vmem:[%s2062_s11 + $0x48] sm:$0xff]  ;;  %v1469_v55 = vld [vmem:[%s2062_s11 + $0x18] sm:$0xff] }
  0xa0   : > { %v1477_v56 = vld [vmem:[%s2062_s11 + $0x58] sm:$0xff]  ;;  %v1470_v57 = vld [vmem:[%s2062_s11 + $0x20] sm:$0xff]  ;;  %v1471_v59 = vld [vmem:[%s2062_s11 + $0x28] sm:$0xff] }
  0xa1   : > { %v1478_v58 = vld [vmem:[%s2062_s11 + $0x60] sm:$0xff]  ;;  %v1479_v60 = vld [vmem:[%s2062_s11 + $0x68] sm:$0xff]  ;;  %v1472_v61 = vld [vmem:[%s2062_s11 + $0x30] sm:$0xff] }
  0xa2   : > { %596 = vmatpush.bf16.msra.mxu0 %v1428_v23  ;;  %1501 = vmatpush.bf16.msra.mxu2 %v1428_v23  ;;  %v1480_v62 = vld [vmem:[%s2062_s11 + $0x70] sm:$0xff]  ;;  %v1473_v63 = vld [vmem:[%s2062_s11 + $0x38] sm:$0xff]  ;;  %v337_v7 = vld [vmem:[#allocation2 + $0x148] sm:$0xff] }
  0xa3   : > { %685 = vmatpush.bf16.msra.mxu1 %v1432_v24  ;;  %1509 = vmatpush.bf16.msra.mxu3 %v1432_v24  ;;  %v1481_v0 = vld [vmem:[%s2062_s11 + $0x78] sm:$0xff]  ;;  %v305_v1 = vld [vmem:[#allocation2 + $0xb0] sm:$0xff]  ;;  %v339_v19 = vld [vmem:[#allocation2 + $0x100] sm:$0xff]  ;;  %p1457_p7 = scmp.ne.s32.totalorder %s2385_s5, 1 }
  0xa4   : > { %v306_v2 = vld [vmem:[#allocation2 + $0x1b0] sm:$0xff]  ;;  %v307_v10 = vld [vmem:[#allocation2 + $0xd8] sm:$0xff]  ;;  %v340_v20 = vld [vmem:[#allocation2 + $0xc8] sm:$0xff] }
  0xa5   : > { %v338_v8 = vld [vmem:[#allocation2 + $0x1d0] sm:$0xff]  ;;  %v308_v13 = vld [vmem:[#allocation2 + $0x18] sm:$0xff]  ;;  %v310_v25 = vld [vmem:[#allocation2 + $0x168] sm:$0xff] }
  0xa6   : > { %597 = vmatpush.bf16.msra.mxu0 %v1420_v29  ;;  %1502 = vmatpush.bf16.msra.mxu2 %v1420_v29  ;;  %v309_v22 = vld [vmem:[#allocation2 + $0x50] sm:$0xff]  ;;  %v341_v31 = vld [vmem:[#allocation2 + $0x40] sm:$0xff]  ;;  %v342_v32 = vld [vmem:[#allocation2 + $0x1f8] sm:$0xff] }
  0xa7   : > { %686 = vmatpush.bf16.msra.mxu1 %v1424_v30  ;;  %1510 = vmatpush.bf16.msra.mxu3 %v1424_v30  ;;  %v311_v34 = vld [vmem:[#allocation2 + $0x130] sm:$0xff]  ;;  %v312_v37 = vld [vmem:[#allocation2 + $0x48] sm:$0xff]  ;;  %v343_v43 = vld [vmem:[#allocation2 + $0x20] sm:$0xff] }
  0xa8   : > { %v344_v44 = vld [vmem:[#allocation2 + $0x128] sm:$0xff]  ;;  %v313_v46 = vld [vmem:[#allocation2 + $0x180] sm:$0xff] }
  0xaa   : > { %598 = vmatpush.bf16.msra.mxu0 %v1412_v35  ;;  %1503 = vmatpush.bf16.msra.mxu2 %v1412_v35 }
  0xab   : > { %687 = vmatpush.bf16.msra.mxu1 %v1416_v36  ;;  %1511 = vmatpush.bf16.msra.mxu3 %v1416_v36 }
  0xae   : > { %599 = vmatpush.bf16.msra.mxu0 %v1404_v41  ;;  %1504 = vmatpush.bf16.msra.mxu2 %v1404_v41 }
  0xaf   : > { %688 = vmatpush.bf16.msra.mxu1 %v1408_v42  ;;  %1512 = vmatpush.bf16.msra.mxu3 %v1408_v42 }
  0xb2   : > { %600 = vmatpush.bf16.msra.mxu0 %v1396_v47  ;;  %1505 = vmatpush.bf16.msra.mxu2 %v1396_v47 }
  0xb3   : > { %689 = vmatpush.bf16.msra.mxu1 %v1400_v48  ;;  %1513 = vmatpush.bf16.msra.mxu3 %v1400_v48 }
  0xb5   : > { %601 = vmatmul.bf16.vlgmr.msra.gmra.mxu0 %v1466_v49  ;;  %641 = vmatmul.bf16.vlgmr.msra.gmra.mxu2 %v1474_v50 }
  0xb6   : > { %690 = vmatmul.bf16.vlgmr.msra.gmra.mxu1 %v1466_v49  ;;  %730 = vmatmul.bf16.vlgmr.msra.gmra.mxu3 %v1474_v50  ;;  %v314_v49 = vld [vmem:[#allocation2 + $0x110] sm:$0xff] }
  0xc5   : > { %606 = vmatmul.bf16.gmra.mxu0 %v1467_v51  ;;  %646 = vmatmul.bf16.gmra.mxu2 %v1475_v52 }
  0xc6   : > { %695 = vmatmul.bf16.gmra.mxu1 %v1467_v51  ;;  %735 = vmatmul.bf16.gmra.mxu3 %v1475_v52 }
  0xd5   : > { %611 = vmatmul.bf16.gmra.mxu0 %v1468_v53  ;;  %651 = vmatmul.bf16.gmra.mxu2 %v1476_v54 }
  0xd6   : > { %700 = vmatmul.bf16.gmra.mxu1 %v1468_v53  ;;  %740 = vmatmul.bf16.gmra.mxu3 %v1476_v54 }
  0xe5   : > { %616 = vmatmul.bf16.gmra.mxu0 %v1469_v55  ;;  %656 = vmatmul.bf16.gmra.mxu2 %v1477_v56 }
  0xe6   : > { %705 = vmatmul.bf16.gmra.mxu1 %v1469_v55  ;;  %745 = vmatmul.bf16.gmra.mxu3 %v1477_v56  ;;  %v345_v55 = vld [vmem:[#allocation2 + $0x1a0] sm:$0xff]  ;;  %v346_v56 = vld [vmem:[#allocation2 + $0x1f0] sm:$0xff] }
  0xf5   : > { %621 = vmatmul.bf16.gmra.mxu0 %v1470_v57  ;;  %661 = vmatmul.bf16.gmra.mxu2 %v1478_v58 }
  0xf6   : > { %710 = vmatmul.bf16.gmra.mxu1 %v1470_v57  ;;  %750 = vmatmul.bf16.gmra.mxu3 %v1478_v58  ;;  %v315_v58 = vld [vmem:[#allocation2 + $0x118] sm:$0xff] }
 0x105   : > { %626 = vmatmul.bf16.gmra.mxu0 %v1471_v59  ;;  %666 = vmatmul.bf16.gmra.mxu2 %v1479_v60 }
 0x106   : > { %715 = vmatmul.bf16.gmra.mxu1 %v1471_v59  ;;  %755 = vmatmul.bf16.gmra.mxu3 %v1479_v60 }
 0x115   : > { %631 = vmatmul.bf16.gmra.mxu0 %v1472_v61  ;;  %671 = vmatmul.bf16.gmra.mxu2 %v1480_v62 }
 0x116   : > { %720 = vmatmul.bf16.gmra.mxu1 %v1472_v61  ;;  %760 = vmatmul.bf16.gmra.mxu3 %v1480_v62  ;;  %v316_v61 = vld [vmem:[#allocation2 + $0x98] sm:$0xff] }
 0x125   : > { %636 = vmatmul.bf16.gmra.mxu0 %v1473_v63  ;;  %676 = vmatmul.bf16.gmra.mxu2 %v1481_v0 }
 0x126   : > { %725 = vmatmul.bf16.gmra.mxu1 %v1473_v63  ;;  %765 = vmatmul.bf16.gmra.mxu3 %v1481_v0 }
 0x132   : > { %v602_v3 = vpop.f32.mrf.mxu0 }
 0x133   : > { %v771_v4 = vadd.f32 %v602_v3, %v305_v1  ;;  %v691_v5 = vpop.f32.mrf.mxu1  ;;  %v347_v3 = vld [vmem:[#allocation2 + $0xe8] sm:$0xff] }
 0x134   : > { %v772_v6 = vadd.f32 %v691_v5, %v306_v2 }
 0x135   : > { %835 = vst [vmem:[#allocation2 + $0xb0] sm:$0xff] %v771_v4  ;;  %v348_v4 = vld [vmem:[#allocation2 + $0x78] sm:$0xff] }
 0x136   : > { %836 = vst [vmem:[#allocation2 + $0x1b0] sm:$0xff] %v772_v6  ;;  %v317_v6 = vld [vmem:[#allocation2 + $0x120] sm:$0xff] }
 0x138   : > { %v642_v9 = vpop.f32.mrf.mxu2 }
 0x139   : > { %v803_v11 = vadd.f32 %v642_v9, %v337_v7  ;;  %v731_v12 = vpop.f32.mrf.mxu3  ;;  %v318_v9 = vld [vmem:[#allocation2 + $0x150] sm:$0xff] }
 0x13a   : > { %v804_v14 = vadd.f32 %v731_v12, %v338_v8  ;;  %v604_v15 = vpop.f32.mrf.mxu0 }
 0x13b   : > { %867 = vst [vmem:[#allocation2 + $0x148] sm:$0xff] %v803_v11  ;;  %v773_v16 = vadd.f32 %v604_v15, %v307_v10  ;;  %v693_v17 = vpop.f32.mrf.mxu1  ;;  %v349_v15 = vld [vmem:[#allocation2 + $0x70] sm:$0xff] }
 0x13c   : > { %868 = vst [vmem:[#allocation2 + $0x1d0] sm:$0xff] %v804_v14  ;;  %v774_v18 = vadd.f32 %v693_v17, %v308_v13 }
 0x13d   : > { %837 = vst [vmem:[#allocation2 + $0xd8] sm:$0xff] %v773_v16  ;;  %v350_v16 = vld [vmem:[#allocation2 + $0x90] sm:$0xff] }
 0x13e   : > { %838 = vst [vmem:[#allocation2 + $0x18] sm:$0xff] %v774_v18  ;;  %v319_v18 = vld [vmem:[#allocation2 + $0x108] sm:$0xff] }
 0x140   : > { %v644_v21 = vpop.f32.mrf.mxu2 }
 0x141   : > { %v805_v23 = vadd.f32 %v644_v21, %v339_v19  ;;  %v733_v24 = vpop.f32.mrf.mxu3  ;;  %v320_v21 = vld [vmem:[#allocation2 + $0x60] sm:$0xff] }
 0x142   : > { %v806_v26 = vadd.f32 %v733_v24, %v340_v20  ;;  %v607_v27 = vpop.f32.mrf.mxu0 }
 0x143   : > { %869 = vst [vmem:[#allocation2 + $0x100] sm:$0xff] %v805_v23  ;;  %v775_v28 = vadd.f32 %v607_v27, %v309_v22  ;;  %v696_v29 = vpop.f32.mrf.mxu1  ;;  %v351_v27 = vld [vmem:[#allocation2 + $0x1d8] sm:$0xff] }
 0x144   : > { %870 = vst [vmem:[#allocation2 + $0xc8] sm:$0xff] %v806_v26  ;;  %v776_v30 = vadd.f32 %v696_v29, %v310_v25 }
 0x145   : > { %839 = vst [vmem:[#allocation2 + $0x50] sm:$0xff] %v775_v28  ;;  %v352_v28 = vld [vmem:[#allocation2 + $0xd0] sm:$0xff] }
 0x146   : > { %840 = vst [vmem:[#allocation2 + $0x168] sm:$0xff] %v776_v30  ;;  %v321_v30 = vld [vmem:[#allocation2 + $0xe0] sm:$0xff] }
 0x148   : > { %v647_v33 = vpop.f32.mrf.mxu2 }
 0x149   : > { %v807_v35 = vadd.f32 %v647_v33, %v341_v31  ;;  %v736_v36 = vpop.f32.mrf.mxu3  ;;  %v322_v33 = vld [vmem:[#allocation2 + $0x188] sm:$0xff] }
 0x14a   : > { %v808_v38 = vadd.f32 %v736_v36, %v342_v32  ;;  %v609_v39 = vpop.f32.mrf.mxu0 }
 0x14b   : > { %871 = vst [vmem:[#allocation2 + $0x40] sm:$0xff] %v807_v35  ;;  %v777_v40 = vadd.f32 %v609_v39, %v311_v34  ;;  %v698_v41 = vpop.f32.mrf.mxu1  ;;  %v353_v39 = vld [vmem:[#allocation2 + $0xb8] sm:$0xff] }
 0x14c   : > { %872 = vst [vmem:[#allocation2 + $0x1f8] sm:$0xff] %v808_v38  ;;  %v778_v42 = vadd.f32 %v698_v41, %v312_v37 }
 0x14d   : > { %841 = vst [vmem:[#allocation2 + $0x130] sm:$0xff] %v777_v40  ;;  %v354_v40 = vld [vmem:[#allocation2 + $0x88] sm:$0xff] }
 0x14e   : > { %842 = vst [vmem:[#allocation2 + $0x48] sm:$0xff] %v778_v42  ;;  %v323_v42 = vld [vmem:[#allocation2 + $0x138] sm:$0xff] }
 0x150   : > { %v649_v45 = vpop.f32.mrf.mxu2 }
 0x151   : > { %v809_v47 = vadd.f32 %v649_v45, %v343_v43  ;;  %v738_v48 = vpop.f32.mrf.mxu3  ;;  %v324_v45 = vld [vmem:[#allocation2 + $0x140] sm:$0xff] }
 0x152   : > { %v810_v50 = vadd.f32 %v738_v48, %v344_v44  ;;  %v612_v51 = vpop.f32.mrf.mxu0 }
 0x153   : > { %873 = vst [vmem:[#allocation2 + $0x20] sm:$0xff] %v809_v47  ;;  %v779_v52 = vadd.f32 %v612_v51, %v313_v46  ;;  %v701_v53 = vpop.f32.mrf.mxu1  ;;  %v355_v51 = vld [vmem:[#allocation2 + $0xa8] sm:$0xff] }
 0x154   : > { %874 = vst [vmem:[#allocation2 + $0x128] sm:$0xff] %v810_v50  ;;  %v780_v54 = vadd.f32 %v701_v53, %v314_v49 }
 0x155   : > { %843 = vst [vmem:[#allocation2 + $0x180] sm:$0xff] %v779_v52  ;;  %v356_v52 = vld [vmem:[#allocation2 + $0x1c8] sm:$0xff] }
 0x156   : > { %844 = vst [vmem:[#allocation2 + $0x110] sm:$0xff] %v780_v54  ;;  %v325_v54 = vld [vmem:[#allocation2 + $0x80] sm:$0xff] }
 0x158   : > { %v652_v57 = vpop.f32.mrf.mxu2 }
 0x159   : > { %v811_v59 = vadd.f32 %v652_v57, %v345_v55  ;;  %v741_v60 = vpop.f32.mrf.mxu3  ;;  %v326_v57 = vld [vmem:[#allocation2 + $0x1a8] sm:$0xff] }
 0x15a   : > { %v812_v62 = vadd.f32 %v741_v60, %v346_v56  ;;  %v614_v63 = vpop.f32.mrf.mxu0 }
 0x15b   : > { %875 = vst [vmem:[#allocation2 + $0x1a0] sm:$0xff] %v811_v59  ;;  %v781_v0 = vadd.f32 %v614_v63, %v315_v58  ;;  %v703_v1 = vpop.f32.mrf.mxu1  ;;  %v357_v63 = vld [vmem:[#allocation2 + $0x170] sm:$0xff] }
 0x15c   : > { %876 = vst [vmem:[#allocation2 + $0x1f0] sm:$0xff] %v812_v62  ;;  %v782_v2 = vadd.f32 %v703_v1, %v316_v61 }
 0x15d   : > { %845 = vst [vmem:[#allocation2 + $0x118] sm:$0xff] %v781_v0  ;;  %v358_v0 = vld [vmem:[#allocation2 + $0x178] sm:$0xff] }
 0x15e   : > { %846 = vst [vmem:[#allocation2 + $0x98] sm:$0xff] %v782_v2  ;;  %v327_v2 = vld [vmem:[#allocation2 + $0x1b8] sm:$0xff] }
 0x160   : > { %v654_v5 = vpop.f32.mrf.mxu2 }
 0x161   : > { %v813_v7 = vadd.f32 %v654_v5, %v347_v3  ;;  %v743_v8 = vpop.f32.mrf.mxu3  ;;  %v328_v5 = vld [vmem:[#allocation2 + $0x28] sm:$0xff] }
 0x162   : > { %v814_v10 = vadd.f32 %v743_v8, %v348_v4  ;;  %v617_v11 = vpop.f32.mrf.mxu0 }
 0x163   : > { %877 = vst [vmem:[#allocation2 + $0xe8] sm:$0xff] %v813_v7  ;;  %v783_v12 = vadd.f32 %v617_v11, %v317_v6  ;;  %v706_v13 = vpop.f32.mrf.mxu1  ;;  %v359_v11 = vld [vmem:[#allocation2 + $0x68] sm:$0xff] }
 0x164   : > { %878 = vst [vmem:[#allocation2 + $0x78] sm:$0xff] %v814_v10  ;;  %v784_v14 = vadd.f32 %v706_v13, %v318_v9 }
 0x165   : > { %847 = vst [vmem:[#allocation2 + $0x120] sm:$0xff] %v783_v12  ;;  %v360_v12 = vld [vmem:[#allocation2 + $0x190] sm:$0xff] }
 0x166   : > { %848 = vst [vmem:[#allocation2 + $0x150] sm:$0xff] %v784_v14  ;;  %v329_v14 = vld [vmem:[#allocation2 + $0x1e8] sm:$0xff] }
 0x168   : > { %v657_v17 = vpop.f32.mrf.mxu2 }
 0x169   : > { %v815_v19 = vadd.f32 %v657_v17, %v349_v15  ;;  %v746_v20 = vpop.f32.mrf.mxu3  ;;  %v330_v17 = vld [vmem:[#allocation2 + $0xf8] sm:$0xff] }
 0x16a   : > { %v816_v22 = vadd.f32 %v746_v20, %v350_v16  ;;  %v619_v23 = vpop.f32.mrf.mxu0 }
 0x16b   : > { %879 = vst [vmem:[#allocation2 + $0x70] sm:$0xff] %v815_v19  ;;  %v785_v24 = vadd.f32 %v619_v23, %v319_v18  ;;  %v708_v25 = vpop.f32.mrf.mxu1  ;;  %v361_v23 = vld [vmem:[#allocation2 + $0x198] sm:$0xff] }
 0x16c   : > { %880 = vst [vmem:[#allocation2 + $0x90] sm:$0xff] %v816_v22  ;;  %v786_v26 = vadd.f32 %v708_v25, %v320_v21 }
 0x16d   : > { %849 = vst [vmem:[#allocation2 + $0x108] sm:$0xff] %v785_v24  ;;  %v362_v24 = vld [vmem:[#allocation2 + $0x38] sm:$0xff] }
 0x16e   : > { %850 = vst [vmem:[#allocation2 + $0x60] sm:$0xff] %v786_v26  ;;  %v331_v26 = vld [vmem:[#allocation2 + $0x160] sm:$0xff] }
 0x170   : > { %v659_v29 = vpop.f32.mrf.mxu2 }
 0x171   : > { %v817_v31 = vadd.f32 %v659_v29, %v351_v27  ;;  %v748_v32 = vpop.f32.mrf.mxu3  ;;  %v332_v29 = vld [vmem:[#allocation2 + $0x30] sm:$0xff] }
 0x172   : > { %v818_v34 = vadd.f32 %v748_v32, %v352_v28  ;;  %v622_v35 = vpop.f32.mrf.mxu0 }
 0x173   : > { %881 = vst [vmem:[#allocation2 + $0x1d8] sm:$0xff] %v817_v31  ;;  %v787_v36 = vadd.f32 %v622_v35, %v321_v30  ;;  %v711_v37 = vpop.f32.mrf.mxu1  ;;  %v363_v35 = vld [vmem:[#allocation2 + $0xc0] sm:$0xff] }
 0x174   : > { %882 = vst [vmem:[#allocation2 + $0xd0] sm:$0xff] %v818_v34  ;;  %v788_v38 = vadd.f32 %v711_v37, %v322_v33 }
 0x175   : > { %851 = vst [vmem:[#allocation2 + $0xe0] sm:$0xff] %v787_v36  ;;  %v364_v36 = vld [vmem:[#allocation2 + $0x1c0] sm:$0xff] }
 0x176   : > { %852 = vst [vmem:[#allocation2 + $0x188] sm:$0xff] %v788_v38  ;;  %v333_v38 = vld [vmem:[#allocation2 + $0x1e0] sm:$0xff] }
 0x178   : > { %v662_v41 = vpop.f32.mrf.mxu2 }
 0x179   : > { %v819_v43 = vadd.f32 %v662_v41, %v353_v39  ;;  %v751_v44 = vpop.f32.mrf.mxu3  ;;  %v334_v41 = vld [vmem:[#allocation2] sm:$0xff] }
 0x17a   : > { %v820_v46 = vadd.f32 %v751_v44, %v354_v40  ;;  %v624_v47 = vpop.f32.mrf.mxu0 }
 0x17b   : > { %883 = vst [vmem:[#allocation2 + $0xb8] sm:$0xff] %v819_v43  ;;  %v789_v48 = vadd.f32 %v624_v47, %v323_v42  ;;  %v713_v49 = vpop.f32.mrf.mxu1  ;;  %v365_v47 = vld [vmem:[#allocation2 + $0x158] sm:$0xff] }
 0x17c   : > { %884 = vst [vmem:[#allocation2 + $0x88] sm:$0xff] %v820_v46  ;;  %v790_v50 = vadd.f32 %v713_v49, %v324_v45 }
 0x17d   : > { %853 = vst [vmem:[#allocation2 + $0x138] sm:$0xff] %v789_v48  ;;  %v366_v48 = vld [vmem:[#allocation2 + $0x10] sm:$0xff] }
 0x17e   : > { %854 = vst [vmem:[#allocation2 + $0x140] sm:$0xff] %v790_v50  ;;  %v335_v50 = vld [vmem:[#allocation2 + $0xf0] sm:$0xff] }
 0x180   : > { %v664_v53 = vpop.f32.mrf.mxu2 }
 0x181   : > { %v821_v55 = vadd.f32 %v664_v53, %v355_v51  ;;  %v753_v56 = vpop.f32.mrf.mxu3  ;;  %v336_v53 = vld [vmem:[#allocation2 + $0x8] sm:$0xff] }
 0x182   : > { %v822_v58 = vadd.f32 %v753_v56, %v356_v52  ;;  %v627_v59 = vpop.f32.mrf.mxu0 }
 0x183   : > { %885 = vst [vmem:[#allocation2 + $0xa8] sm:$0xff] %v821_v55  ;;  %v791_v60 = vadd.f32 %v627_v59, %v325_v54  ;;  %v716_v61 = vpop.f32.mrf.mxu1  ;;  %v367_v59 = vld [vmem:[#allocation2 + $0x58] sm:$0xff] }
 0x184   : > { %886 = vst [vmem:[#allocation2 + $0x1c8] sm:$0xff] %v822_v58  ;;  %v792_v62 = vadd.f32 %v716_v61, %v326_v57 }
 0x185   : > { %855 = vst [vmem:[#allocation2 + $0x80] sm:$0xff] %v791_v60  ;;  %v368_v60 = vld [vmem:[#allocation2 + $0xa0] sm:$0xff] }
 0x186   : > { %856 = vst [vmem:[#allocation2 + $0x1a8] sm:$0xff] %v792_v62 }
 0x188   : > { %v667_v1 = vpop.f32.mrf.mxu2 }
 0x189   : > { %v823_v3 = vadd.f32 %v667_v1, %v357_v63  ;;  %v756_v4 = vpop.f32.mrf.mxu3 }
 0x18a   : > { %v824_v6 = vadd.f32 %v756_v4, %v358_v0  ;;  %v629_v7 = vpop.f32.mrf.mxu0 }
 0x18b   : > { %887 = vst [vmem:[#allocation2 + $0x170] sm:$0xff] %v823_v3  ;;  %v793_v8 = vadd.f32 %v629_v7, %v327_v2  ;;  %v718_v9 = vpop.f32.mrf.mxu1 }
 0x18c   : > { %888 = vst [vmem:[#allocation2 + $0x178] sm:$0xff] %v824_v6  ;;  %v794_v10 = vadd.f32 %v718_v9, %v328_v5 }
 0x18d   : > { %857 = vst [vmem:[#allocation2 + $0x1b8] sm:$0xff] %v793_v8 }
 0x18e   : > { %858 = vst [vmem:[#allocation2 + $0x28] sm:$0xff] %v794_v10 }
 0x190   : > { %v669_v13 = vpop.f32.mrf.mxu2 }
 0x191   : > { %v825_v15 = vadd.f32 %v669_v13, %v359_v11  ;;  %v758_v16 = vpop.f32.mrf.mxu3 }
 0x192   : > { %v826_v18 = vadd.f32 %v758_v16, %v360_v12  ;;  %v632_v19 = vpop.f32.mrf.mxu0 }
 0x193   : > { %889 = vst [vmem:[#allocation2 + $0x68] sm:$0xff] %v825_v15  ;;  %v795_v20 = vadd.f32 %v632_v19, %v329_v14  ;;  %v721_v21 = vpop.f32.mrf.mxu1 }
 0x194   : > { %890 = vst [vmem:[#allocation2 + $0x190] sm:$0xff] %v826_v18  ;;  %v796_v22 = vadd.f32 %v721_v21, %v330_v17 }
 0x195   : > { %859 = vst [vmem:[#allocation2 + $0x1e8] sm:$0xff] %v795_v20 }
 0x196   : > { %860 = vst [vmem:[#allocation2 + $0xf8] sm:$0xff] %v796_v22 }
 0x198   : > { %v672_v25 = vpop.f32.mrf.mxu2 }
 0x199   : > { %v827_v27 = vadd.f32 %v672_v25, %v361_v23  ;;  %v761_v28 = vpop.f32.mrf.mxu3 }
 0x19a   : > { %v828_v30 = vadd.f32 %v761_v28, %v362_v24  ;;  %v634_v31 = vpop.f32.mrf.mxu0 }
 0x19b   : > { %891 = vst [vmem:[#allocation2 + $0x198] sm:$0xff] %v827_v27  ;;  %v797_v32 = vadd.f32 %v634_v31, %v331_v26  ;;  %v723_v33 = vpop.f32.mrf.mxu1 }
 0x19c   : > { %892 = vst [vmem:[#allocation2 + $0x38] sm:$0xff] %v828_v30  ;;  %v798_v34 = vadd.f32 %v723_v33, %v332_v29 }
 0x19d   : > { %861 = vst [vmem:[#allocation2 + $0x160] sm:$0xff] %v797_v32 }
 0x19e   : > { %862 = vst [vmem:[#allocation2 + $0x30] sm:$0xff] %v798_v34 }
 0x1a0   : > { %v674_v37 = vpop.f32.mrf.mxu2 }
 0x1a1   : > { %v829_v39 = vadd.f32 %v674_v37, %v363_v35  ;;  %v763_v40 = vpop.f32.mrf.mxu3 }
 0x1a2   : > { %v830_v42 = vadd.f32 %v763_v40, %v364_v36  ;;  %v637_v43 = vpop.f32.mrf.mxu0 }
 0x1a3   : > { %893 = vst [vmem:[#allocation2 + $0xc0] sm:$0xff] %v829_v39  ;;  %v799_v44 = vadd.f32 %v637_v43, %v333_v38  ;;  %v726_v45 = vpop.f32.mrf.mxu1 }
 0x1a4   : > { %894 = vst [vmem:[#allocation2 + $0x1c0] sm:$0xff] %v830_v42  ;;  %v800_v46 = vadd.f32 %v726_v45, %v334_v41 }
 0x1a5   : > { %863 = vst [vmem:[#allocation2 + $0x1e0] sm:$0xff] %v799_v44 }
 0x1a6   : > { %864 = vst [vmem:[#allocation2] sm:$0xff] %v800_v46 }
 0x1a8   : > { %v677_v49 = vpop.f32.mrf.mxu2 }
 0x1a9   : > { %v831_v51 = vadd.f32 %v677_v49, %v365_v47  ;;  %v766_v52 = vpop.f32.mrf.mxu3 }
 0x1aa   : > { %v832_v54 = vadd.f32 %v766_v52, %v366_v48  ;;  %v639_v55 = vpop.f32.mrf.mxu0 }
 0x1ab   : > { %895 = vst [vmem:[#allocation2 + $0x158] sm:$0xff] %v831_v51  ;;  %v801_v56 = vadd.f32 %v639_v55, %v335_v50  ;;  %v728_v57 = vpop.f32.mrf.mxu1 }
 0x1ac   : > { %896 = vst [vmem:[#allocation2 + $0x10] sm:$0xff] %v832_v54  ;;  %v802_v58 = vadd.f32 %v728_v57, %v336_v53 }
 0x1ad   : > { %865 = vst [vmem:[#allocation2 + $0xf0] sm:$0xff] %v801_v56 }
 0x1ae   : > { %866 = vst [vmem:[#allocation2 + $0x8] sm:$0xff] %v802_v58 }
 0x1b0   : > { %v679_v61 = vpop.f32.mrf.mxu2  ;;  %902 = sbr.rel (%p1457_p7) target bundleno = 473 (0x1d9), region = 44 }
 0x1b1   : > { %v833_v62 = vadd.f32 %v679_v61, %v367_v59  ;;  %v768_v63 = vpop.f32.mrf.mxu3 }
 0x1b2   : > { %v834_v0 = vadd.f32 %v768_v63, %v368_v60 }
 0x1b3   : > { %897 = vst [vmem:[#allocation2 + $0x58] sm:$0xff] %v833_v62 }
 0x1b4   : > { %898 = vst [vmem:[#allocation2 + $0xa0] sm:$0xff] %v834_v0 }
 0x1b5   : > { %v903_v1 = vld [vmem:[#allocation2 + $0xb0] sm:$0xff]  ;;  %v905_v3 = vld [vmem:[#allocation2 + $0xd8] sm:$0xff]  ;;  %v908_v7 = vld [vmem:[#allocation2 + $0x168] sm:$0xff] }
 0x1b6   : > { %v904_v2 = vld [vmem:[#allocation2 + $0x1b0] sm:$0xff]  ;;  %v906_v5 = vld [vmem:[#allocation2 + $0x18] sm:$0xff]  ;;  %v910_v11 = vld [vmem:[#allocation2 + $0x48] sm:$0xff] }
 0x1b7   : > { %v967_v4 = vpack.c.bf16 %v904_v2, %v903_v1  ;;  %v907_v6 = vld [vmem:[#allocation2 + $0x50] sm:$0xff]  ;;  %v968_v8 = vpack.c.bf16 %v906_v5, %v905_v3  ;;  %v911_v12 = vld [vmem:[#allocation2 + $0x180] sm:$0xff]  ;;  %v913_v15 = vld [vmem:[#allocation2 + $0x118] sm:$0xff] }
 0x1b8   : > { %v969_v9 = vpack.c.bf16 %v908_v7, %v907_v6  ;;  %v909_v10 = vld [vmem:[#allocation2 + $0x130] sm:$0xff]  ;;  %v914_v16 = vld [vmem:[#allocation2 + $0x98] sm:$0xff]  ;;  %v915_v19 = vld [vmem:[#allocation2 + $0x120] sm:$0xff] }
 0x1b9   : > { %999 = vst [vmem:[%s2076_s29] sm:$0xff] %v967_v4  ;;  %v970_v13 = vpack.c.bf16 %v910_v11, %v909_v10  ;;  %v912_v14 = vld [vmem:[#allocation2 + $0x110] sm:$0xff]  ;;  %v972_v18 = vpack.c.bf16 %v914_v16, %v913_v15  ;;  %v917_v21 = vld [vmem:[#allocation2 + $0x108] sm:$0xff]  ;;  %v918_v23 = vld [vmem:[#allocation2 + $0x60] sm:$0xff] }
 0x1ba   : > { %1000 = vst [vmem:[%s2076_s29 + $0x8] sm:$0xff] %v968_v8  ;;  %v971_v17 = vpack.c.bf16 %v912_v14, %v911_v12  ;;  %v916_v20 = vld [vmem:[#allocation2 + $0x150] sm:$0xff]  ;;  %v919_v24 = vld [vmem:[#allocation2 + $0xe0] sm:$0xff]  ;;  %v920_v25 = vld [vmem:[#allocation2 + $0x188] sm:$0xff]  ;;  %v974_v26 = vpack.c.bf16 %v918_v23, %v917_v21 }
 0x1bb   : > { %1001 = vst [vmem:[%s2076_s29 + $0x10] sm:$0xff] %v969_v9  ;;  %v973_v22 = vpack.c.bf16 %v916_v20, %v915_v19  ;;  %v921_v27 = vld [vmem:[#allocation2 + $0x138] sm:$0xff]  ;;  %v922_v28 = vld [vmem:[#allocation2 + $0x140] sm:$0xff]  ;;  %v975_v30 = vpack.c.bf16 %v920_v25, %v919_v24  ;;  %v924_v31 = vld [vmem:[#allocation2 + $0x1a8] sm:$0xff] }
 0x1bc   : > { %1002 = vst [vmem:[%s2076_s29 + $0x18] sm:$0xff] %v970_v13  ;;  %v923_v29 = vld [vmem:[#allocation2 + $0x80] sm:$0xff]  ;;  %v925_v32 = vld [vmem:[#allocation2 + $0x1b8] sm:$0xff]  ;;  %v926_v33 = vld [vmem:[#allocation2 + $0x28] sm:$0xff]  ;;  %v976_v34 = vpack.c.bf16 %v922_v28, %v921_v27 }
 0x1bd   : > { %1003 = vst [vmem:[%s2076_s29 + $0x20] sm:$0xff] %v971_v17  ;;  %v927_v35 = vld [vmem:[#allocation2 + $0x1e8] sm:$0xff]  ;;  %v928_v36 = vld [vmem:[#allocation2 + $0xf8] sm:$0xff]  ;;  %v977_v37 = vpack.c.bf16 %v924_v31, %v923_v29  ;;  %v929_v38 = vld [vmem:[#allocation2 + $0x160] sm:$0xff]  ;;  %v978_v40 = vpack.c.bf16 %v926_v33, %v925_v32 }
 0x1be   : > { %1004 = vst [vmem:[%s2076_s29 + $0x28] sm:$0xff] %v972_v18  ;;  %v930_v39 = vld [vmem:[#allocation2 + $0x30] sm:$0xff]  ;;  %v931_v41 = vld [vmem:[#allocation2 + $0x1e0] sm:$0xff]  ;;  %v979_v43 = vpack.c.bf16 %v928_v36, %v927_v35  ;;  %v934_v45 = vld [vmem:[#allocation2 + $0x8] sm:$0xff] }
 0x1bf   : > { %1005 = vst [vmem:[%s2076_s29 + $0x30] sm:$0xff] %v973_v22  ;;  %v932_v42 = vld [vmem:[#allocation2] sm:$0xff]  ;;  %v933_v44 = vld [vmem:[#allocation2 + $0xf0] sm:$0xff]  ;;  %v980_v46 = vpack.c.bf16 %v930_v39, %v929_v38  ;;  %v935_v47 = vld [vmem:[#allocation2 + $0x148] sm:$0xff] }
 0x1c0   : > { %1006 = vst [vmem:[%s2076_s29 + $0x38] sm:$0xff] %v974_v26  ;;  %v936_v48 = vld [vmem:[#allocation2 + $0x1d0] sm:$0xff]  ;;  %v981_v49 = vpack.c.bf16 %v932_v42, %v931_v41  ;;  %v937_v50 = vld [vmem:[#allocation2 + $0x100] sm:$0xff]  ;;  %v938_v51 = vld [vmem:[#allocation2 + $0xc8] sm:$0xff]  ;;  %v982_v52 = vpack.c.bf16 %v934_v45, %v933_v44 }
 0x1c1   : > { %1007 = vst [vmem:[%s2076_s29 + $0x40] sm:$0xff] %v975_v30  ;;  %v939_v53 = vld [vmem:[#allocation2 + $0x40] sm:$0xff]  ;;  %v940_v54 = vld [vmem:[#allocation2 + $0x1f8] sm:$0xff]  ;;  %v983_v55 = vpack.c.bf16 %v936_v48, %v935_v47  ;;  %v942_v57 = vld [vmem:[#allocation2 + $0x128] sm:$0xff]  ;;  %v984_v58 = vpack.c.bf16 %v938_v51, %v937_v50 }
 0x1c2   : > { %1008 = vst [vmem:[%s2076_s29 + $0x48] sm:$0xff] %v976_v34  ;;  %v941_v56 = vld [vmem:[#allocation2 + $0x20] sm:$0xff]  ;;  %v944_v60 = vld [vmem:[#allocation2 + $0x1f0] sm:$0xff]  ;;  %v985_v61 = vpack.c.bf16 %v940_v54, %v939_v53  ;;  %v945_v62 = vld [vmem:[#allocation2 + $0xe8] sm:$0xff] }
 0x1c3   : > { %1009 = vst [vmem:[%s2076_s29 + $0x50] sm:$0xff] %v977_v37  ;;  %v943_v59 = vld [vmem:[#allocation2 + $0x1a0] sm:$0xff]  ;;  %v946_v63 = vld [vmem:[#allocation2 + $0x78] sm:$0xff]  ;;  %v986_v0 = vpack.c.bf16 %v942_v57, %v941_v56  ;;  %v947_v1 = vld [vmem:[#allocation2 + $0x70] sm:$0xff] }
 0x1c4   : > { %1010 = vst [vmem:[%s2076_s29 + $0x58] sm:$0xff] %v978_v40  ;;  %v948_v2 = vld [vmem:[#allocation2 + $0x90] sm:$0xff]  ;;  %v987_v3 = vpack.c.bf16 %v944_v60, %v943_v59  ;;  %v949_v4 = vld [vmem:[#allocation2 + $0x1d8] sm:$0xff]  ;;  %v988_v6 = vpack.c.bf16 %v946_v63, %v945_v62  ;;  %v952_v8 = vld [vmem:[#allocation2 + $0x88] sm:$0xff] }
 0x1c5   : > { %1011 = vst [vmem:[%s2076_s29 + $0x60] sm:$0xff] %v979_v43  ;;  %v950_v5 = vld [vmem:[#allocation2 + $0xd0] sm:$0xff]  ;;  %v951_v7 = vld [vmem:[#allocation2 + $0xb8] sm:$0xff]  ;;  %v989_v9 = vpack.c.bf16 %v948_v2, %v947_v1  ;;  %v953_v10 = vld [vmem:[#allocation2 + $0xa8] sm:$0xff] }
 0x1c6   : > { %1012 = vst [vmem:[%s2076_s29 + $0x68] sm:$0xff] %v980_v46  ;;  %v954_v11 = vld [vmem:[#allocation2 + $0x1c8] sm:$0xff]  ;;  %v990_v12 = vpack.c.bf16 %v950_v5, %v949_v4  ;;  %v955_v13 = vld [vmem:[#allocation2 + $0x170] sm:$0xff]  ;;  %v956_v14 = vld [vmem:[#allocation2 + $0x178] sm:$0xff]  ;;  %v991_v15 = vpack.c.bf16 %v952_v8, %v951_v7 }
 0x1c7   : > { %1013 = vst [vmem:[%s2076_s29 + $0x70] sm:$0xff] %v981_v49  ;;  %v957_v16 = vld [vmem:[#allocation2 + $0x68] sm:$0xff]  ;;  %v958_v17 = vld [vmem:[#allocation2 + $0x190] sm:$0xff]  ;;  %v992_v18 = vpack.c.bf16 %v954_v11, %v953_v10  ;;  %v959_v19 = vld [vmem:[#allocation2 + $0x198] sm:$0xff]  ;;  %v993_v21 = vpack.c.bf16 %v956_v14, %v955_v13 }
 0x1c8   : > { %1014 = vst [vmem:[%s2076_s29 + $0x78] sm:$0xff] %v982_v52  ;;  %v960_v20 = vld [vmem:[#allocation2 + $0x38] sm:$0xff]  ;;  %v961_v22 = vld [vmem:[#allocation2 + $0xc0] sm:$0xff]  ;;  %v994_v24 = vpack.c.bf16 %v958_v17, %v957_v16  ;;  %v964_v26 = vld [vmem:[#allocation2 + $0x10] sm:$0xff] }
 0x1c9   : > { %1015 = vst [vmem:[%s2076_s29 + $0x80] sm:$0xff] %v983_v55  ;;  %v962_v23 = vld [vmem:[#allocation2 + $0x1c0] sm:$0xff]  ;;  %v963_v25 = vld [vmem:[#allocation2 + $0x158] sm:$0xff]  ;;  %v995_v27 = vpack.c.bf16 %v960_v20, %v959_v19 }
 0x1ca   : > { %1016 = vst [vmem:[%s2076_s29 + $0x88] sm:$0xff] %v984_v58  ;;  %v965_v28 = vld [vmem:[#allocation2 + $0x58] sm:$0xff]  ;;  %v966_v29 = vld [vmem:[#allocation2 + $0xa0] sm:$0xff]  ;;  %v996_v30 = vpack.c.bf16 %v962_v23, %v961_v22  ;;  %v997_v31 = vpack.c.bf16 %v964_v26, %v963_v25 }
 0x1cb   : > { %1017 = vst [vmem:[%s2076_s29 + $0x90] sm:$0xff] %v985_v61  ;;  %v998_v32 = vpack.c.bf16 %v966_v29, %v965_v28 }
 0x1cc   : > { %1018 = vst [vmem:[%s2076_s29 + $0x98] sm:$0xff] %v986_v0 }
 0x1cd   : > { %1019 = vst [vmem:[%s2076_s29 + $0xa0] sm:$0xff] %v987_v3 }
 0x1ce   : > { %1020 = vst [vmem:[%s2076_s29 + $0xa8] sm:$0xff] %v988_v6 }
 0x1cf   : > { %1021 = vst [vmem:[%s2076_s29 + $0xb0] sm:$0xff] %v989_v9 }
 0x1d0   : > { %1022 = vst [vmem:[%s2076_s29 + $0xb8] sm:$0xff] %v990_v12 }
 0x1d1   : > { %1023 = vst [vmem:[%s2076_s29 + $0xc0] sm:$0xff] %v991_v15 }
 0x1d2   : > { %1024 = vst [vmem:[%s2076_s29 + $0xc8] sm:$0xff] %v992_v18 }
 0x1d3   : > { %1025 = vst [vmem:[%s2076_s29 + $0xd0] sm:$0xff] %v993_v21 }
 0x1d4   : > { %1026 = vst [vmem:[%s2076_s29 + $0xd8] sm:$0xff] %v994_v24 }
 0x1d5   : > { %1027 = vst [vmem:[%s2076_s29 + $0xe0] sm:$0xff] %v995_v27 }
 0x1d6   : > { %1028 = vst [vmem:[%s2076_s29 + $0xe8] sm:$0xff] %v996_v30 }
 0x1d7   : > { %1029 = vst [vmem:[%s2076_s29 + $0xf0] sm:$0xff] %v997_v31 }
 0x1d8   : > { %1030 = vst [vmem:[%s2076_s29 + $0xf8] sm:$0xff] %v998_v32 }
 0x1d9 PF: > { %1037 = sbr.rel (!%p2035_p11) target bundleno = 517 (0x205), region = 48  ;;  %s2386_s6 = sld [smem:[#allocation12_spill]] (%p2035_p11)  ;;  %v1134_v33 = vld [vmem:[%s2076_s29] sm:$0xff] (%p2035_p11)  ;;  %v1136_v34 = vld [vmem:[%s2076_s29 + $0x8] sm:$0xff] (%p2035_p11)  ;;  %v1138_v35 = vld [vmem:[%s2076_s29 + $0x10] sm:$0xff] (%p2035_p11) }
 0x1da   : > { %s2387_s30 = sld [smem:[#allocation13_spill]] (%p2035_p11)  ;;  %v1140_v36 = vld [vmem:[%s2076_s29 + $0x18] sm:$0xff] (%p2035_p11)  ;;  %v1142_v37 = vld [vmem:[%s2076_s29 + $0x20] sm:$0xff] (%p2035_p11)  ;;  %v1144_v38 = vld [vmem:[%s2076_s29 + $0x28] sm:$0xff] (%p2035_p11) }
 0x1db   : > { %s2388_s18 = sld [smem:[#allocation21_spill]] (%p2035_p11)  ;;  %v1146_v39 = vld [vmem:[%s2076_s29 + $0x30] sm:$0xff] (%p2035_p11)  ;;  %v1148_v40 = vld [vmem:[%s2076_s29 + $0x38] sm:$0xff] (%p2035_p11)  ;;  %v1150_v41 = vld [vmem:[%s2076_s29 + $0x40] sm:$0xff] (%p2035_p11) }
 0x1dc   : > { %v1152_v42 = vld [vmem:[%s2076_s29 + $0x48] sm:$0xff] (%p2035_p11)  ;;  %v1154_v43 = vld [vmem:[%s2076_s29 + $0x50] sm:$0xff] (%p2035_p11)  ;;  %v1156_v44 = vld [vmem:[%s2076_s29 + $0x58] sm:$0xff] (%p2035_p11) }
 0x1dd   : > { %v1158_v45 = vld [vmem:[%s2076_s29 + $0x60] sm:$0xff] (%p2035_p11)  ;;  %v1160_v46 = vld [vmem:[%s2076_s29 + $0x68] sm:$0xff] (%p2035_p11)  ;;  %v1162_v47 = vld [vmem:[%s2076_s29 + $0x70] sm:$0xff] (%p2035_p11) }
 0x1de   : > { %v1164_v48 = vld [vmem:[%s2076_s29 + $0x78] sm:$0xff]  ;;  %v1166_v49 = vld [vmem:[%s2076_s29 + $0x80] sm:$0xff]  ;;  %v1168_v50 = vld [vmem:[%s2076_s29 + $0x88] sm:$0xff] }
 0x1df   : > { %s1460_s28 = sshll.u32 %s2386_s6, 1  ;;  %v1170_v51 = vld [vmem:[%s2076_s29 + $0x90] sm:$0xff]  ;;  %v1172_v52 = vld [vmem:[%s2076_s29 + $0x98] sm:$0xff]  ;;  %v1174_v53 = vld [vmem:[%s2076_s29 + $0xa0] sm:$0xff] }
 0x1e0   : > { %s1515_s14 = smul.u32 192, %s2387_s30  ;;  %v1176_v54 = vld [vmem:[%s2076_s29 + $0xa8] sm:$0xff]  ;;  %v1178_v55 = vld [vmem:[%s2076_s29 + $0xb0] sm:$0xff]  ;;  %v1180_v56 = vld [vmem:[%s2076_s29 + $0xb8] sm:$0xff] }
 0x1e1   : > { %v1182_v57 = vld [vmem:[%s2076_s29 + $0xc0] sm:$0xff]  ;;  %v1184_v58 = vld [vmem:[%s2076_s29 + $0xc8] sm:$0xff]  ;;  %v1186_v59 = vld [vmem:[%s2076_s29 + $0xd0] sm:$0xff] }
 0x1e2   : > { %s1041_s0 = sadd.s32 %s1515_s14, %s1460_s28  ;;  %v1188_v60 = vld [vmem:[%s2076_s29 + $0xd8] sm:$0xff]  ;;  %v1190_v61 = vld [vmem:[%s2076_s29 + $0xe0] sm:$0xff]  ;;  %v1192_v62 = vld [vmem:[%s2076_s29 + $0xe8] sm:$0xff] }
 0x1e3   : > { %s1462_s27 = sshll.u32 %s1041_s0, 2  ;;  %v1194_v63 = vld [vmem:[%s2076_s29 + $0xf0] sm:$0xff]  ;;  %v1196_v0 = vld [vmem:[%s2076_s29 + $0xf8] sm:$0xff] }
 0x1e4   : > { %s2233_s24 = scalar_lea.vmem %s2388_s18, %s1462_s27 }
 0x1e5   : > { %1135 = vst [vmem:[%s2233_s24] sm:$0xff] %v1134_v33 }
 0x1e6   : > { %1137 = vst [vmem:[%s2233_s24 + $0x18] sm:$0xff] %v1136_v34 }
 0x1e7   : > { %1139 = vst [vmem:[%s2233_s24 + $0x30] sm:$0xff] %v1138_v35 }
 0x1e8   : > { %1141 = vst [vmem:[%s2233_s24 + $0x48] sm:$0xff] %v1140_v36 }
 0x1e9   : > { %1143 = vst [vmem:[%s2233_s24 + $0x60] sm:$0xff] %v1142_v37 }
 0x1ea   : > { %1145 = vst [vmem:[%s2233_s24 + $0x78] sm:$0xff] %v1144_v38 }
 0x1eb   : > { %1147 = vst [vmem:[%s2233_s24 + $0x90] sm:$0xff] %v1146_v39 }
 0x1ec   : > { %1149 = vst [vmem:[%s2233_s24 + $0xa8] sm:$0xff] %v1148_v40 }
 0x1ed   : > { %1151 = vst [vmem:[%s2233_s24 + $0xc0] sm:$0xff] %v1150_v41 }
 0x1ee   : > { %1153 = vst [vmem:[%s2233_s24 + $0xd8] sm:$0xff] %v1152_v42 }
 0x1ef   : > { %1155 = vst [vmem:[%s2233_s24 + $0xf0] sm:$0xff] %v1154_v43 }
 0x1f0   : > { %1157 = vst [vmem:[%s2233_s24 + $0x108] sm:$0xff] %v1156_v44 }
 0x1f1   : > { %1159 = vst [vmem:[%s2233_s24 + $0x120] sm:$0xff] %v1158_v45 }
 0x1f2   : > { %1161 = vst [vmem:[%s2233_s24 + $0x138] sm:$0xff] %v1160_v46 }
 0x1f3   : > { %1163 = vst [vmem:[%s2233_s24 + $0x150] sm:$0xff] %v1162_v47 }
 0x1f4   : > { %1165 = vst [vmem:[%s2233_s24 + $0x168] sm:$0xff] %v1164_v48 }
 0x1f5   : > { %1167 = vst [vmem:[%s2233_s24 + $0x180] sm:$0xff] %v1166_v49 }
 0x1f6   : > { %1169 = vst [vmem:[%s2233_s24 + $0x198] sm:$0xff] %v1168_v50 }
 0x1f7   : > { %1171 = vst [vmem:[%s2233_s24 + $0x1b0] sm:$0xff] %v1170_v51 }
 0x1f8   : > { %1173 = vst [vmem:[%s2233_s24 + $0x1c8] sm:$0xff] %v1172_v52 }
 0x1f9   : > { %1175 = vst [vmem:[%s2233_s24 + $0x1e0] sm:$0xff] %v1174_v53 }
 0x1fa   : > { %1177 = vst [vmem:[%s2233_s24 + $0x1f8] sm:$0xff] %v1176_v54 }
 0x1fb   : > { %1179 = vst [vmem:[%s2233_s24 + $0x210] sm:$0xff] %v1178_v55 }
 0x1fc   : > { %1181 = vst [vmem:[%s2233_s24 + $0x228] sm:$0xff] %v1180_v56 }
 0x1fd   : > { %1183 = vst [vmem:[%s2233_s24 + $0x240] sm:$0xff] %v1182_v57 }
 0x1fe   : > { %1185 = vst [vmem:[%s2233_s24 + $0x258] sm:$0xff] %v1184_v58 }
 0x1ff   : > { %1187 = vst [vmem:[%s2233_s24 + $0x270] sm:$0xff] %v1186_v59 }
 0x200   : > { %1189 = vst [vmem:[%s2233_s24 + $0x288] sm:$0xff] %v1188_v60 }
 0x201   : > { %1191 = vst [vmem:[%s2233_s24 + $0x2a0] sm:$0xff] %v1190_v61 }
 0x202   : > { %1193 = vst [vmem:[%s2233_s24 + $0x2b8] sm:$0xff] %v1192_v62 }
 0x203   : > { %1195 = vst [vmem:[%s2233_s24 + $0x2d0] sm:$0xff] %v1194_v63 }
 0x204   : > { %1197 = vst [vmem:[%s2233_s24 + $0x2e8] sm:$0xff] %v1196_v0 }
 0x205 PF: > { %s18_s23 = sadd.s32 1, %s1840_s23   ;;  %s2390_s7 = sld [smem:[#allocation19_spill]] }
 0x206   : > { %p2298_p12 = scmp.ge.s32.totalorder %s18_s23, 14   ;;  %s2391_s18 = sld [smem:[#allocation14_spill]] }
 0x207   : > { %s2392_s25 = sld [smem:[#allocation15_spill]]  ;;  %s2397_s9 = smov %s1788_s10 }
 0x208   : > { %s2393_s21 = sld [smem:[#allocation16_spill]]  ;;  %s2398_s10 = smov %s2048_s17 }
 0x209   : > { %s2394_s22 = sld [smem:[#allocation17_spill]]  ;;  %s2399_s11 = smov %s1796_s12 }
 0x20a   : > { %s2395_s2 = sld [smem:[#allocation18_spill]]  ;;  %s2400_s12 = smov %s1800_s13 }
 0x20b   : > { %s2401_s13 = smov %s2390_s7  ;;  %s2402_s14 = smov %s1808_s15 }
 0x20c   : > { %s2403_s15 = smov %s1812_s16  ;;  %s2404_s16 = smov %s2045_s19 }
 0x20d   : > { %s2405_s17 = smov %s1828_s20  ;;  %s2406_s19 = smov %s2392_s25 }
 0x20e   : > { %s2407_s20 = smov %s2393_s21  ;;  %17 = sbr.rel (!%p2298_p12) target bundleno = 14 (0xe), region = 127 }
 0x20f   : > { %s2408_s21 = smov %s2394_s22 }
 0x210   : > { %s2409_s22 = smov %s2395_s2 }
 0x213   :  { %1213 = vsyncpa [#allocation4], 1 }
 0x214   :  { %1215 = vsyncpa [#allocation4 + $0x1], 1 }
 0x215   :  { %1216 = vsyncpa [#allocation6], 1 }
 0x216   :  { %1218 = vsyncpa [#allocation6 + $0x1], 1 }

// kernel: causal_self_attention_forward.4
= control target key start
LH: loop header
LB: loop body
LE: loop exit
PB: predicated region body
PF: predicated region fallthrough
CT: control target
= control target key end

     0   :  { %s2025_s12 = smov 0   ;;  %s2027_s13 = smov 0   ;;  %s2609_s0 = inlined_call_operand.vmem [shape: bf16[2,4,256,64], index: 0, kind: input, shape index: {}]   ;;  %s2610_s1 = inlined_call_operand.vmem [shape: bf16[2,4,256,64], index: 1, kind: input, shape index: {}]   ;;  %s2611_s2 = inlined_call_operand.vmem [shape: bf16[2,4,256,64], index: 2, kind: input, shape index: {}]   ;;  %s2612_s3 = inlined_call_operand.vmem [shape: bf16[2,4,256,64], index: 3, kind: output, shape index: {}]  }
   0x1   :  { %s2029_s14 = smov 0   ;;  %s2031_s15 = smov 0  }
   0x2   :  { %s2033_s16 = smov 0   ;;  %s2035_s17 = smov 0  }
   0x3   :  { %s2037_s18 = smov 0   ;;  %s2039_s19 = smov 0  }
   0x4   :  { %s2041_s20 = smov 0  }
   0x5 LB: > { %s28_s21 = sadd.s32 1, %s1983_s16  ;;  %s31_s22 = sadd.s32 1, %s1987_s17  ;;  %s1999_s20 = sphi %s2041_s20, %s13_s20   ;;  %s1995_s19 = sphi %s2039_s19, %s2622_s19   ;;  %s1991_s18 = sphi %s2037_s18, %s2621_s18   ;;  %s1987_s17 = sphi %s2035_s17, %s2620_s17   ;;  %s1983_s16 = sphi %s2033_s16, %s2619_s16   ;;  %s1979_s15 = sphi %s2031_s15, %s2618_s15   ;;  %s1975_s14 = sphi %s2029_s14, %s2617_s14   ;;  %s1971_s13 = sphi %s2027_s13, %s2616_s13   ;;  %s1967_s12 = sphi %s2025_s12, %s2615_s12  }
   0x6   : > { %p29_p0 = scmp.ge.s32.totalorder %s28_s21, 2  ;;  %p1587_p1 = scmp.ge.s32.totalorder %s1999_s20, 1 }
   0x7   : > { %p226_p2 = scmp.lt.s32.totalorder %s1999_s20, 33  ;;  %s35_s23 = sadd.s32 1, %s1991_s18 }
   0x8   : > { %s2624_s21 = smov (%p29_p0, %s28_s21), 0  ;;  %s2626_s22 = smov (!%p29_p0, %s31_s22), %s1987_s17 }
   0x9   : > { %p33_p3 = scmp.ge.s32.totalorder %s2626_s22, 2  ;;  %p227_p4 = pnand %p1587_p1, %p226_p2 }
   0xa   : > { %s39_s24 = sadd.s32 1, %s1995_s19  ;;  %s1588_s25 = sshll.u32 (!%p227_p4), %s1971_s13, 4 }
   0xb   : > { %s2628_s22 = smov (%p33_p3, %s2626_s22), 0  ;;  %s2630_s23 = smov (!%p33_p3, %s35_s23), %s1991_s18 }
   0xc   : > { %p37_p5 = scmp.ge.s32.totalorder %s2630_s23, 4  ;;  %p293_p7 = scmp.lt.s32.totalorder (!%p227_p4), %s1979_s15, 1 }
   0xd   : > { %p295_p8 = scmp.lt.s32.totalorder (!%p227_p4), %s1975_s14, 3  ;;  %p297_p9 = scmp.lt.s32.totalorder (!%p227_p4), %s1588_s25, 31 }
   0xe   : > { %s2632_s23 = smov (%p37_p5, %s2630_s23), 0  ;;  %s2634_s24 = smov (!%p37_p5, %s39_s24), %s1995_s19 }
   0xf   : > { %p41_p6 = scmp.ge.s32.totalorder %s2634_s24, 2  ;;  %230 = sbr.rel (%p227_p4) target bundleno = 919 (0x397), region = 32 }
  0x10   : > { %s1592_s29 = sshll.u32 (!%p227_p4), %s1967_s12, 4  ;;  %p1604_p11 = scmp.ne.s32.totalorder (!%p227_p4), %s1967_s12, 0 }
  0x11   : > { %s2636_s24 = smov (%p41_p6, %s2634_s24), 0  ;;  %p311_p10 = scmp.lt.s32.totalorder (!%p227_p4), %s1592_s29, 31 }
  0x12   : > { %2613 = sst [smem:[#allocation5_spill]] %s2636_s24 }
  0x14   : > { %s2638_s15 = smov (!%p293_p7, %s1979_s15), 1  ;;  %s2640_s14 = smov (!%p295_p8, %s1975_s14), 3 }
  0x15   : > { %s2642_s25 = smov (!%p297_p9, %s1588_s25), 31  ;;  %s1589_s26 = sshll.u32 %s2640_s14, 5 }
  0x16   : > { %s1590_s27 = sshll.u32 %s2638_s15, 7  ;;  %s300_s28 = sadd.s32 %s1589_s26, %s2642_s25 }
  0x17   : > { %s302_s30 = sadd.s32 %s1590_s27, %s300_s28  ;;  %s2644_s29 = smov (!%p311_p10, %s1592_s29), 31 }
  0x18   : > { %s1591_s4 = sshll.u32 %s302_s30, 2  ;;  %s314_s11 = sadd.s32 %s1589_s26, %s2644_s29 }
  0x19   : > { %s2092_s7 = scalar_lea.vmem %s2609_s0, %s1591_s4  ;;  %s2097_s10 = scalar_lea.vmem %s2612_s3, %s1591_s4 }
  0x1a   : > { %s316_s13 = sadd.s32 %s1590_s27, %s314_s11  ;;  %351 = sbr.rel (%p1604_p11) target bundleno = 80 (0x50), region = 36 }
  0x1b   : > { %s1595_s14 = sshll.u32 %s316_s13, 2 }
  0x1c   : > { %s2102_s28 = scalar_lea.vmem %s2610_s1, %s1595_s14  ;;  %s2107_s5 = scalar_lea.vmem %s2611_s2, %s1595_s14 }
  0x1f   : > { %vm352_vm0 = vcmask 7168   ;;  %v2001_v0 = vmov -inf   ;;  %v2002_v1 = vmov 0.0   ;;  %vm385_vm1 = vcmask 523264  }
  0x20   : > { %353 = vst.msk [vmem:[#allocation2] sm:$0xff] %vm352_vm0, %v2001_v0 }
  0x21   : > { %354 = vst.msk [vmem:[#allocation2 + $0x8] sm:$0xff] %vm352_vm0, %v2001_v0 }
  0x22   : > { %355 = vst.msk [vmem:[#allocation2 + $0x10] sm:$0xff] %vm352_vm0, %v2001_v0 }
  0x23   : > { %356 = vst.msk [vmem:[#allocation2 + $0x18] sm:$0xff] %vm352_vm0, %v2001_v0 }
  0x24   : > { %357 = vst.msk [vmem:[#allocation2 + $0x20] sm:$0xff] %vm352_vm0, %v2001_v0 }
  0x25   : > { %358 = vst.msk [vmem:[#allocation2 + $0x28] sm:$0xff] %vm352_vm0, %v2001_v0 }
  0x26   : > { %359 = vst.msk [vmem:[#allocation2 + $0x30] sm:$0xff] %vm352_vm0, %v2001_v0 }
  0x27   : > { %360 = vst.msk [vmem:[#allocation2 + $0x38] sm:$0xff] %vm352_vm0, %v2001_v0 }
  0x28   : > { %361 = vst.msk [vmem:[#allocation2 + $0x40] sm:$0xff] %vm352_vm0, %v2001_v0 }
  0x29   : > { %362 = vst.msk [vmem:[#allocation2 + $0x48] sm:$0xff] %vm352_vm0, %v2001_v0 }
  0x2a   : > { %363 = vst.msk [vmem:[#allocation2 + $0x50] sm:$0xff] %vm352_vm0, %v2001_v0 }
  0x2b   : > { %364 = vst.msk [vmem:[#allocation2 + $0x58] sm:$0xff] %vm352_vm0, %v2001_v0 }
  0x2c   : > { %365 = vst.msk [vmem:[#allocation2 + $0x60] sm:$0xff] %vm352_vm0, %v2001_v0 }
  0x2d   : > { %366 = vst.msk [vmem:[#allocation2 + $0x68] sm:$0xff] %vm352_vm0, %v2001_v0 }
  0x2e   : > { %367 = vst.msk [vmem:[#allocation2 + $0x70] sm:$0xff] %vm352_vm0, %v2001_v0 }
  0x2f   : > { %368 = vst.msk [vmem:[#allocation2 + $0x78] sm:$0xff] %vm352_vm0, %v2001_v0 }
  0x30   : > { %369 = vst.msk [vmem:[#allocation3] sm:$0xff] %vm352_vm0, %v2002_v1 }
  0x31   : > { %370 = vst.msk [vmem:[#allocation3 + $0x8] sm:$0xff] %vm352_vm0, %v2002_v1 }
  0x32   : > { %371 = vst.msk [vmem:[#allocation3 + $0x10] sm:$0xff] %vm352_vm0, %v2002_v1 }
  0x33   : > { %372 = vst.msk [vmem:[#allocation3 + $0x18] sm:$0xff] %vm352_vm0, %v2002_v1 }
  0x34   : > { %373 = vst.msk [vmem:[#allocation3 + $0x20] sm:$0xff] %vm352_vm0, %v2002_v1 }
  0x35   : > { %374 = vst.msk [vmem:[#allocation3 + $0x28] sm:$0xff] %vm352_vm0, %v2002_v1 }
  0x36   : > { %375 = vst.msk [vmem:[#allocation3 + $0x30] sm:$0xff] %vm352_vm0, %v2002_v1 }
  0x37   : > { %376 = vst.msk [vmem:[#allocation3 + $0x38] sm:$0xff] %vm352_vm0, %v2002_v1 }
  0x38   : > { %377 = vst.msk [vmem:[#allocation3 + $0x40] sm:$0xff] %vm352_vm0, %v2002_v1 }
  0x39   : > { %378 = vst.msk [vmem:[#allocation3 + $0x48] sm:$0xff] %vm352_vm0, %v2002_v1 }
  0x3a   : > { %379 = vst.msk [vmem:[#allocation3 + $0x50] sm:$0xff] %vm352_vm0, %v2002_v1 }
  0x3b   : > { %380 = vst.msk [vmem:[#allocation3 + $0x58] sm:$0xff] %vm352_vm0, %v2002_v1 }
  0x3c   : > { %381 = vst.msk [vmem:[#allocation3 + $0x60] sm:$0xff] %vm352_vm0, %v2002_v1 }
  0x3d   : > { %382 = vst.msk [vmem:[#allocation3 + $0x68] sm:$0xff] %vm352_vm0, %v2002_v1 }
  0x3e   : > { %383 = vst.msk [vmem:[#allocation3 + $0x70] sm:$0xff] %vm352_vm0, %v2002_v1 }
  0x3f   : > { %384 = vst.msk [vmem:[#allocation3 + $0x78] sm:$0xff] %vm352_vm0, %v2002_v1 }
  0x40   : > { %386 = vst.msk [vmem:[#allocation4] sm:$0xff] %vm385_vm1, %v2002_v1 }
  0x41   : > { %387 = vst.msk [vmem:[#allocation4 + $0x8] sm:$0xff] %vm385_vm1, %v2002_v1 }
  0x42   : > { %388 = vst.msk [vmem:[#allocation4 + $0x10] sm:$0xff] %vm385_vm1, %v2002_v1 }
  0x43   : > { %389 = vst.msk [vmem:[#allocation4 + $0x18] sm:$0xff] %vm385_vm1, %v2002_v1 }
  0x44   : > { %390 = vst.msk [vmem:[#allocation4 + $0x20] sm:$0xff] %vm385_vm1, %v2002_v1 }
  0x45   : > { %391 = vst.msk [vmem:[#allocation4 + $0x28] sm:$0xff] %vm385_vm1, %v2002_v1 }
  0x46   : > { %392 = vst.msk [vmem:[#allocation4 + $0x30] sm:$0xff] %vm385_vm1, %v2002_v1 }
  0x47   : > { %393 = vst.msk [vmem:[#allocation4 + $0x38] sm:$0xff] %vm385_vm1, %v2002_v1 }
  0x48   : > { %394 = vst.msk [vmem:[#allocation4 + $0x40] sm:$0xff] %vm385_vm1, %v2002_v1 }
  0x49   : > { %395 = vst.msk [vmem:[#allocation4 + $0x48] sm:$0xff] %vm385_vm1, %v2002_v1 }
  0x4a   : > { %396 = vst.msk [vmem:[#allocation4 + $0x50] sm:$0xff] %vm385_vm1, %v2002_v1 }
  0x4b   : > { %397 = vst.msk [vmem:[#allocation4 + $0x58] sm:$0xff] %vm385_vm1, %v2002_v1 }
  0x4c   : > { %398 = vst.msk [vmem:[#allocation4 + $0x60] sm:$0xff] %vm385_vm1, %v2002_v1 }
  0x4d   : > { %399 = vst.msk [vmem:[#allocation4 + $0x68] sm:$0xff] %vm385_vm1, %v2002_v1 }
  0x4e   : > { %400 = vst.msk [vmem:[#allocation4 + $0x70] sm:$0xff] %vm385_vm1, %v2002_v1 }
  0x4f   : > { %401 = vst.msk [vmem:[#allocation4 + $0x78] sm:$0xff] %vm385_vm1, %v2002_v1 }
  0x50 PF: > { %v1687_v2 = vld [vmem:[%s2102_s28 + $0x38] sm:$0xff]  ;;  %vm514_vm2 = vcmask 523264   ;;  %v1686_v4 = vld [vmem:[%s2102_s28 + $0x30] sm:$0xff]  ;;  %v1685_v6 = vld [vmem:[%s2102_s28 + $0x28] sm:$0xff]  ;;  %vm932_vm3 = vcmask 7168   ;;  %p1677_p12 = scmp.ne.s32.totalorder %s1967_s12, 1 }
  0x51   : > { %v561_v3 = vsel %vm514_vm2, %v1687_v2, 0  ;;  %v558_v5 = vsel %vm514_vm2, %v1686_v4, 0  ;;  %v555_v7 = vsel %vm514_vm2, %v1685_v6, 0  ;;  %v1684_v8 = vld [vmem:[%s2102_s28 + $0x20] sm:$0xff]  ;;  %v1683_v10 = vld [vmem:[%s2102_s28 + $0x18] sm:$0xff]  ;;  %v1682_v12 = vld [vmem:[%s2102_s28 + $0x10] sm:$0xff] }
  0x52   : > { %563 = vmatpush.bf16.xpose.msra.mxu0 %v561_v3  ;;  %1735 = vmatpush.bf16.xpose.msra.mxu2 %v561_v3  ;;  %v552_v9 = vsel %vm514_vm2, %v1684_v8, 0  ;;  %v549_v11 = vsel %vm514_vm2, %v1683_v10, 0  ;;  %v546_v13 = vsel %vm514_vm2, %v1682_v12, 0  ;;  %v1681_v14 = vld [vmem:[%s2102_s28 + $0x8] sm:$0xff]  ;;  %v1697_v16 = vld [vmem:[%s2092_s7] sm:$0xff]   ;;  %v1730_v17 = vld [vmem:[%s2092_s7 + $0x18] sm:$0xff]  }
  0x53   : > { %v543_v15 = vsel %vm514_vm2, %v1681_v14, 0  ;;  %v1680_v18 = vld [vmem:[%s2102_s28] sm:$0xff]  ;;  %v1698_v19 = vunpack.c.l.bf16 %v1697_v16  ;;  %v1699_v20 = vunpack.c.h.bf16 %v1697_v16  ;;  %v1710_v21 = vunpack.c.l.bf16 %v1730_v17  ;;  %v1728_v30 = vld [vmem:[%s2092_s7 + $0x8] sm:$0xff]   ;;  %v1729_v42 = vld [vmem:[%s2092_s7 + $0x10] sm:$0xff]  }
  0x54   : > { %v1711_v22 = vunpack.c.h.bf16 %v1730_v17  ;;  %v540_v23 = vsel %vm514_vm2, %v1680_v18, 0  ;;  %v1731_v31 = vld [vmem:[%s2092_s7 + $0x20] sm:$0xff]   ;;  %v1702_v32 = vunpack.c.l.bf16 %v1728_v30  ;;  %v1703_v33 = vunpack.c.h.bf16 %v1728_v30  ;;  %v1732_v43 = vld [vmem:[%s2092_s7 + $0x28] sm:$0xff]   ;;  %v1733_v54 = vld [vmem:[%s2092_s7 + $0x30] sm:$0xff]  }
  0x55   : > { %v434_v24 = vmul.f32 0.125, %v1698_v19  ;;  %v435_v25 = vmul.f32 0.125, %v1699_v20  ;;  %v440_v26 = vmul.f32 0.125, %v1710_v21  ;;  %v1714_v34 = vunpack.c.l.bf16 %v1731_v31  ;;  %v1734_v60 = vld [vmem:[%s2092_s7 + $0x38] sm:$0xff]   ;;  %v2238_v19 = vld [vmem:[#allocation2] sm:$0xff] }
  0x56   : > { %v441_v27 = vmul.f32 0.125, %v1711_v22  ;;  %v1715_v35 = vunpack.c.h.bf16 %v1731_v31  ;;  %v436_v36 = vmul.f32 0.125, %v1702_v32  ;;  %v437_v37 = vmul.f32 0.125, %v1703_v33  ;;  %v2246_v22 = vld [vmem:[#allocation2 + $0x30] sm:$0xff]  ;;  %v2272_v33 = vld [vmem:[#allocation2 + $0x40] sm:$0xff] }
  0x57   : > { %v450_v28 = vpack.c.bf16 %v435_v25, %v434_v24  ;;  %v442_v38 = vmul.f32 0.125, %v1714_v34  ;;  %v1706_v44 = vunpack.c.l.bf16 %v1729_v42  ;;  %v1707_v45 = vunpack.c.h.bf16 %v1729_v42  ;;  %v2274_v34 = vld [vmem:[#allocation2 + $0x10] sm:$0xff] }
  0x58   : > { %v453_v29 = vpack.c.bf16 %v441_v27, %v440_v26  ;;  %v443_v39 = vmul.f32 0.125, %v1715_v35  ;;  %v451_v40 = vpack.c.bf16 %v437_v37, %v436_v36  ;;  %v1718_v46 = vunpack.c.l.bf16 %v1732_v43  ;;  %v2255_v26 = vld [vmem:[#allocation2 + $0x38] sm:$0xff] }
  0x59   : > { %v1719_v47 = vunpack.c.h.bf16 %v1732_v43  ;;  %v438_v48 = vmul.f32 0.125, %v1706_v44  ;;  %v439_v49 = vmul.f32 0.125, %v1707_v45  ;;  %v1722_v55 = vunpack.c.l.bf16 %v1733_v54  ;;  %v2291_v44 = vld [vmem:[#allocation2 + $0x20] sm:$0xff] }
  0x5a   : > { %564 = vmatpush.bf16.xpose.msra.mxu0 %v558_v5  ;;  %1736 = vmatpush.bf16.xpose.msra.mxu2 %v558_v5  ;;  %v454_v41 = vpack.c.bf16 %v443_v39, %v442_v38  ;;  %v444_v50 = vmul.f32 0.125, %v1718_v46  ;;  %v1723_v56 = vunpack.c.h.bf16 %v1733_v54  ;;  %v1726_v61 = vunpack.c.l.bf16 %v1734_v60 }
  0x5b   : > { %v445_v51 = vmul.f32 0.125, %v1719_v47  ;;  %v452_v52 = vpack.c.bf16 %v439_v49, %v438_v48  ;;  %v446_v57 = vmul.f32 0.125, %v1722_v55  ;;  %v1727_v62 = vunpack.c.h.bf16 %v1734_v60  ;;  %v2305_v49 = vld [vmem:[#allocation2 + $0x50] sm:$0xff]  ;;  %v2321_v55 = vld [vmem:[#allocation2 + $0x58] sm:$0xff] }
  0x5c   : > { %v447_v58 = vmul.f32 0.125, %v1723_v56  ;;  %v448_v63 = vmul.f32 0.125, %v1726_v61  ;;  %v2003_v18 = vmov 0  }
  0x5d   : > { %v455_v53 = vpack.c.bf16 %v445_v51, %v444_v50  ;;  %v449_v0 = vmul.f32 0.125, %v1727_v62  ;;  %1827 = vset.pattern.permute.xlu1 %v2003_v18  ;;  %1828 = vset.pattern.permute.xlu2 %v2003_v18  ;;  %v2307_v51 = vld [vmem:[#allocation2 + $0x28] sm:$0xff] }
  0x5e   : > { %v456_v59 = vpack.c.bf16 %v447_v58, %v446_v57  ;;  %1829 = vset.pattern.permute.xlu0 %v2003_v18  ;;  %v2330_v58 = vld [vmem:[#allocation2 + $0x60] sm:$0xff]  ;;  %v2341_v62 = vld [vmem:[#allocation2 + $0x68] sm:$0xff] }
  0x5f   : > { %v457_v1 = vpack.c.bf16 %v449_v0, %v448_v63 }
  0x62   : > { %565 = vmatpush.bf16.xpose.msra.mxu0 %v555_v7  ;;  %1737 = vmatpush.bf16.xpose.msra.mxu2 %v555_v7 }
  0x6a   : > { %566 = vmatpush.bf16.xpose.msra.mxu0 %v552_v9  ;;  %1738 = vmatpush.bf16.xpose.msra.mxu2 %v552_v9 }
  0x72   : > { %567 = vmatpush.bf16.xpose.msra.mxu0 %v549_v11  ;;  %1739 = vmatpush.bf16.xpose.msra.mxu2 %v549_v11 }
  0x7a   : > { %568 = vmatpush.bf16.xpose.msra.mxu0 %v546_v13  ;;  %1740 = vmatpush.bf16.xpose.msra.mxu2 %v546_v13 }
  0x82   : > { %569 = vmatpush.bf16.xpose.msra.mxu0 %v543_v15  ;;  %1741 = vmatpush.bf16.xpose.msra.mxu2 %v543_v15 }
  0x8a   : > { %570 = vmatpush.bf16.xpose.msra.mxu0 %v540_v23  ;;  %1742 = vmatpush.bf16.xpose.msra.mxu2 %v540_v23 }
  0x91   : > { %1637 = vmatmul.msk.bf16.vlgmr.msra.gmra.mxu0 %vm514_vm2, %v450_v28  ;;  %1640 = vmatmul.msk.bf16.vlgmr.msra.gmra.mxu2 %vm514_vm2, %v453_v29  ;;  %v2257_v28 = vld [vmem:[#allocation2 + $0x8] sm:$0xff] }
  0xa1   : > { %1638 = vmatmul.msk.bf16.gmra.mxu0 %vm514_vm2, %v451_v40  ;;  %1641 = vmatmul.msk.bf16.gmra.mxu2 %vm514_vm2, %v454_v41  ;;  %v2289_v40 = vld [vmem:[#allocation2 + $0x48] sm:$0xff]  ;;  %v615_v41 = vld [vmem:[#allocation2 + $0x18] sm:$0xff] }
  0xb1   : > { %1639 = vmatmul.msk.bf16.gmra.mxu0 %vm514_vm2, %v452_v52  ;;  %1642 = vmatmul.msk.bf16.gmra.mxu2 %vm514_vm2, %v455_v53 }
  0xc1   : > { %1643 = vmatmul.msk.bf16.gmra.mxu2 %vm514_vm2, %v456_v59 }
  0xd1   : > { %1644 = vmatmul.msk.bf16.gmra.mxu2 %vm514_vm2, %v457_v1 }
 0x10e   : > { %v2190_v2 = vpop.f32.mrf.mxu0 }
 0x10f   : > { %628 = vmax.xlane.f32.xlu0 %v2190_v2 }
 0x114   : > { %v2193_v3 = vpop.f32.mrf.mxu2 }
 0x116   : > { %v2195_v4 = vpop.f32.mrf.mxu0 }
 0x117   : > { %640 = vmax.xlane.f32.xlu0 %v2193_v3 }
 0x11c   : > { %v2198_v5 = vpop.f32.mrf.mxu2 }
 0x11d   : > { %642 = vmax.xlane.f32.xlu1 %v2198_v5 }
 0x11e   : > { %v2201_v6 = vpop.f32.mrf.mxu0 }
 0x11f   : > { %630 = vmax.xlane.f32.xlu0 %v2195_v4 }
 0x124   : > { %v2204_v7 = vpop.f32.mrf.mxu2 }
 0x125   : > { %644 = vmax.xlane.f32.xlu2 %v2204_v7  ;;  %632 = vmax.xlane.f32.xlu1 %v2201_v6 }
 0x126   : > { %v2208_v8 = vpop.f32.mrf.mxu0 }
 0x12c   : > { %v2210_v9 = vpop.f32.mrf.mxu2 }
 0x12d   : > { %646 = vmax.xlane.f32.xlu0 %v2210_v9  ;;  %634 = vmax.xlane.f32.xlu1 %v2208_v8 }
 0x12e   : > { %v2214_v10 = vpop.f32.mrf.mxu0 }
 0x12f   : > { %636 = vmax.xlane.f32.xlu2 %v2214_v10 }
 0x134   : > { %v2217_v11 = vpop.f32.mrf.mxu2 }
 0x135   : > { %648 = vmax.xlane.f32.xlu1 %v2217_v11 }
 0x136   : > { %v2220_v12 = vpop.f32.mrf.mxu0 }
 0x137   : > { %638 = vmax.xlane.f32.xlu2 %v2220_v12 }
 0x13c   : > { %v2223_v13 = vpop.f32.mrf.mxu2 }
 0x13f   : > { %650 = vmax.xlane.f32.xlu2 %v2223_v13 }
 0x144   : > { %v2226_v14 = vpop.f32.mrf.mxu2 }
 0x145   : > { %652 = vmax.xlane.f32.xlu0 %v2226_v14 }
 0x14c   : > { %v2229_v15 = vpop.f32.mrf.mxu2 }
 0x14d   : > { %654 = vmax.xlane.f32.xlu1 %v2229_v15 }
 0x154   : > { %v2232_v16 = vpop.f32.mrf.mxu2 }
 0x155   : > { %656 = vmax.xlane.f32.xlu2 %v2232_v16 }
 0x15c   : > { %v2235_v17 = vpop.f32.mrf.mxu2 }
 0x15d   : > { %658 = vmax.xlane.f32.xlu0 %v2235_v17 }
 0x182   : > { %v629_v20 = vpop.xlane.xlu0 %628 }
 0x183   : > { %v2241_v21 = vmax.f32 %v2238_v19, %v629_v20  ;;  %v1695_v20 = vld [vmem:[%s2107_s5 + $0x38] sm:$0xff] }
 0x184   : > { %1133 = vmatpush.bf16.msra.mxu1 %v1695_v20  ;;  %1743 = vmatpush.bf16.msra.mxu3 %v1695_v20 }
 0x185   : > { %1214 = vst.msk [vmem:[#allocation2] sm:$0xff] %vm932_vm3, %v2241_v21  ;;  %726 = vperm.xlu1 %1827, %v2241_v21   ;;  %v676_v61 = vsub.f32 %v2238_v19, %v2241_v21  ;;  %v2353_v21 = vld [vmem:[#allocation2 + $0x70] sm:$0xff] }
 0x187   : > { %v692_v1 = vmul.f32 1.442695, %v676_v61 }
 0x189   : > { %1830 = vpow2.f32 %v692_v1  ;;  %v1690_v1 = vld [vmem:[%s2107_s5 + $0x10] sm:$0xff] }
 0x18a   : > { %v641_v23 = vpop.xlane.xlu0 %640 }
 0x18b   : > { %v2249_v24 = vmax.f32 %v2246_v22, %v641_v23  ;;  %v1694_v23 = vld [vmem:[%s2107_s5 + $0x30] sm:$0xff] }
 0x18c   : > { %1134 = vmatpush.bf16.msra.mxu1 %v1694_v23  ;;  %1744 = vmatpush.bf16.msra.mxu3 %v1694_v23 }
 0x18d   : > { %v682_v25 = vsub.f32 %v2246_v22, %v2249_v24  ;;  %1220 = vst.msk [vmem:[#allocation2 + $0x30] sm:$0xff] %vm932_vm3, %v2249_v24 }
 0x190   : > { %v643_v27 = vpop.xlane.xlu1 %642 }
 0x191   : > { %v2260_v29 = vmax.f32 %v2255_v26, %v643_v27 }
 0x192   : > { %v631_v30 = vpop.xlane.xlu0 %630 }
 0x193   : > { %v683_v31 = vsub.f32 %v2255_v26, %v2260_v29  ;;  %1221 = vst.msk [vmem:[#allocation2 + $0x38] sm:$0xff] %vm932_vm3, %v2260_v29  ;;  %v2267_v32 = vmax.f32 %v2257_v28, %v631_v30 }
 0x195   : > { %1215 = vst.msk [vmem:[#allocation2 + $0x8] sm:$0xff] %vm932_vm3, %v2267_v32  ;;  %731 = vperm.xlu2 %1828, %v2267_v32  }
 0x198   : > { %v645_v35 = vpop.xlane.xlu2 %644  ;;  %v633_v36 = vpop.xlane.xlu1 %632 }
 0x199   : > { %v2277_v37 = vmax.f32 %v2272_v33, %v645_v35  ;;  %v2280_v38 = vmax.f32 %v2274_v34, %v633_v36  ;;  %v677_v36 = vsub.f32 %v2257_v28, %v2267_v32  ;;  %v2372_v28 = vld [vmem:[#allocation2 + $0x78] sm:$0xff] }
 0x19b   : > { %v684_v39 = vsub.f32 %v2272_v33, %v2277_v37  ;;  %1222 = vst.msk [vmem:[#allocation2 + $0x40] sm:$0xff] %vm932_vm3, %v2277_v37  ;;  %736 = vperm.xlu0 %1829, %v2280_v38   ;;  %v694_v32 = vmul.f32 1.442695, %v677_v36 }
 0x19c   : > { %1216 = vst.msk [vmem:[#allocation2 + $0x10] sm:$0xff] %vm932_vm3, %v2280_v38 }
 0x19d   : > { %v708_v23 = vmul.f32 1.442695, %v684_v39 }
 0x1a0   : > { %v647_v42 = vpop.xlane.xlu0 %646  ;;  %v635_v43 = vpop.xlane.xlu1 %634 }
 0x1a1   : > { %v2294_v45 = vmax.f32 %v2289_v40, %v647_v42  ;;  %v663_v46 = vmax.f32 %v615_v41, %v635_v43  ;;  %v678_v43 = vsub.f32 %v2274_v34, %v2280_v38  ;;  %v704_v34 = vmul.f32 1.442695, %v682_v25 }
 0x1a2   : > { %v637_v47 = vpop.xlane.xlu2 %636 }
 0x1a3   : > { %1223 = vst.msk [vmem:[#allocation2 + $0x48] sm:$0xff] %vm932_vm3, %v2294_v45  ;;  %v2299_v48 = vmax.f32 %v2291_v44, %v637_v47  ;;  %741 = vperm.xlu2 %1828, %v663_v46   ;;  %v679_v19 = vsub.f32 %v615_v41, %v663_v46  ;;  %v2366_v41 = vpop.eup %1830  ;;  %v696_v47 = vmul.f32 1.442695, %v678_v43  ;;  %v685_v25 = vsub.f32 %v2289_v40, %v2294_v45  ;;  %v1689_v40 = vld [vmem:[%s2107_s5 + $0x8] sm:$0xff] }
 0x1a4   : > { %1217 = vst.msk [vmem:[#allocation2 + $0x18] sm:$0xff] %vm932_vm3, %v663_v46  ;;  %v1693_v46 = vld [vmem:[%s2107_s5 + $0x28] sm:$0xff] }
 0x1a5   : > { %1218 = vst.msk [vmem:[#allocation2 + $0x20] sm:$0xff] %vm932_vm3, %v2299_v48  ;;  %746 = vperm.xlu1 %1827, %v2299_v48   ;;  %v698_v35 = vmul.f32 1.442695, %v679_v19  ;;  %1135 = vmatpush.bf16.msra.mxu1 %v1693_v46  ;;  %v680_v38 = vsub.f32 %v2291_v44, %v2299_v48  ;;  %v706_v19 = vmul.f32 1.442695, %v683_v31 }
 0x1a6   : > { %1745 = vmatpush.bf16.msra.mxu3 %v1693_v46 }
 0x1a7   : > { %1832 = vpow2.f32 %v698_v35  ;;  %v700_v44 = vmul.f32 1.442695, %v680_v38  ;;  %v1688_v35 = vld [vmem:[%s2107_s5] sm:$0xff] }
 0x1a8   : > { %v649_v50 = vpop.xlane.xlu1 %648  ;;  %1834 = vpow2.f32 %v694_v32 }
 0x1a9   : > { %v2310_v52 = vmax.f32 %v2305_v49, %v649_v50  ;;  %1836 = vpow2.f32 %v696_v47 }
 0x1aa   : > { %v639_v53 = vpop.xlane.xlu2 %638  ;;  %1838 = vpow2.f32 %v704_v34 }
 0x1ab   : > { %1224 = vst.msk [vmem:[#allocation2 + $0x50] sm:$0xff] %vm932_vm3, %v2310_v52  ;;  %v2315_v54 = vmax.f32 %v2307_v51, %v639_v53  ;;  %1840 = vpow2.f32 %v700_v44 }
 0x1ad   : > { %1219 = vst.msk [vmem:[#allocation2 + $0x28] sm:$0xff] %vm932_vm3, %v2315_v54  ;;  %776 = vperm.xlu1 %1827, %v2310_v52   ;;  %751 = vperm.xlu2 %1828, %v2315_v54   ;;  %v2389_v61 = vpop.eup %1832  ;;  %v681_v22 = vsub.f32 %v2307_v51, %v2315_v54  ;;  %v710_v51 = vmul.f32 1.442695, %v685_v25 }
 0x1af   : > { %v702_v48 = vmul.f32 1.442695, %v681_v22 }
 0x1b1   : > { %1842 = vpow2.f32 %v702_v48 }
 0x1b2   : > { %v651_v56 = vpop.xlane.xlu2 %650  ;;  %1844 = vpow2.f32 %v710_v51 }
 0x1b3   : > { %v2324_v57 = vmax.f32 %v2321_v55, %v651_v56  ;;  %v1692_v56 = vld [vmem:[%s2107_s5 + $0x20] sm:$0xff]  ;;  %1846 = vpow2.f32 %v706_v19 }
 0x1b4   : > { %1136 = vmatpush.bf16.msra.mxu1 %v1692_v56  ;;  %1746 = vmatpush.bf16.msra.mxu3 %v1692_v56  ;;  %1848 = vpow2.f32 %v708_v23 }
 0x1b5   : > { %1225 = vst.msk [vmem:[#allocation2 + $0x58] sm:$0xff] %vm932_vm3, %v2324_v57  ;;  %756 = vperm.xlu1 %1827, %v2249_v24   ;;  %781 = vperm.xlu2 %1828, %v2324_v57   ;;  %v1691_v24 = vld [vmem:[%s2107_s5 + $0x18] sm:$0xff] }
 0x1b8   : > { %v653_v59 = vpop.xlane.xlu0 %652  ;;  %1137 = vmatpush.bf16.msra.mxu1 %v1691_v24  ;;  %1747 = vmatpush.bf16.msra.mxu3 %v1691_v24 }
 0x1b9   : > { %v2333_v60 = vmax.f32 %v2330_v58, %v653_v59 }
 0x1bb   : > { %1226 = vst.msk [vmem:[#allocation2 + $0x60] sm:$0xff] %vm932_vm3, %v2333_v60  ;;  %786 = vperm.xlu0 %1829, %v2333_v60  }
 0x1bc   : > { %1138 = vmatpush.bf16.msra.mxu1 %v1690_v1  ;;  %1748 = vmatpush.bf16.msra.mxu3 %v1690_v1 }
 0x1bd   : > { %761 = vperm.xlu1 %1827, %v2260_v29   ;;  %v687_v29 = vsub.f32 %v2321_v55, %v2324_v57 }
 0x1bf   : > { %v714_v33 = vmul.f32 1.442695, %v687_v29 }
 0x1c0   : > { %v655_v63 = vpop.xlane.xlu1 %654  ;;  %1139 = vmatpush.bf16.msra.mxu1 %v1689_v40  ;;  %1749 = vmatpush.bf16.msra.mxu3 %v1689_v40 }
 0x1c1   : > { %v2344_v0 = vmax.f32 %v2341_v62, %v655_v63  ;;  %v2397_v63 = vpop.eup %1834 }
 0x1c2   : > { %v2400_v20 = vpop.eup %1836 }
 0x1c3   : > { %v689_v18 = vsub.f32 %v2341_v62, %v2344_v0  ;;  %1227 = vst.msk [vmem:[#allocation2 + $0x68] sm:$0xff] %vm932_vm3, %v2344_v0  ;;  %791 = vperm.xlu2 %1828, %v2344_v0   ;;  %v2404_v54 = vpop.eup %1838 }
 0x1c4   : > { %1140 = vmatpush.bf16.msra.mxu1 %v1688_v35  ;;  %1750 = vmatpush.bf16.msra.mxu3 %v1688_v35 }
 0x1c5   : > { %766 = vperm.xlu1 %1827, %v2277_v37  }
 0x1c8   : > { %v657_v27 = vpop.xlane.xlu2 %656 }
 0x1c9   : > { %v2357_v30 = vmax.f32 %v2353_v21, %v657_v27  ;;  %v2416_v27 = vpop.eup %1840 }
 0x1ca   : > { %v2419_v36 = vpop.eup %1842 }
 0x1cb   : > { %v690_v42 = vsub.f32 %v2353_v21, %v2357_v30  ;;  %1228 = vst.msk [vmem:[#allocation2 + $0x70] sm:$0xff] %vm932_vm3, %v2357_v30  ;;  %796 = vperm.xlu0 %1829, %v2357_v30   ;;  %v2425_v26 = vpop.eup %1844 }
 0x1cc   : > { %v2430_v37 = vpop.eup %1846 }
 0x1cd   : > { %967 = vperm.xlu1 %1827, %v2366_v41   ;;  %v2432_v39 = vpop.eup %1848 }
 0x1d0   : > { %v659_v50 = vpop.xlane.xlu0 %658 }
 0x1d1   : > { %v2375_v53 = vmax.f32 %v2372_v28, %v659_v50 }
 0x1d3   : > { %v691_v59 = vsub.f32 %v2372_v28, %v2375_v53  ;;  %1229 = vst.msk [vmem:[#allocation2 + $0x78] sm:$0xff] %vm932_vm3, %v2375_v53  ;;  %801 = vperm.xlu2 %1828, %v2375_v53   ;;  %771 = vperm.xlu0 %1829, %v2294_v45   ;;  %v688_v45 = vsub.f32 %v2330_v58, %v2333_v60  ;;  %v720_v28 = vmul.f32 1.442695, %v690_v42  ;;  %v950_v42 = vld [vmem:[#allocation4 + $0x8] sm:$0xff] }
 0x1d4   : > { %v686_v58 = vsub.f32 %v2305_v49, %v2310_v52 }
 0x1d5   : > { %982 = vperm.xlu1 %1827, %v2389_v61   ;;  %v716_v43 = vmul.f32 1.442695, %v688_v45 }
 0x1d6   : > { %v712_v31 = vmul.f32 1.442695, %v686_v58 }
 0x1d7   : > { %1850 = vpow2.f32 %v716_v43 }
 0x1d8   : > { %1852 = vpow2.f32 %v712_v31 }
 0x1d9   : > { %1854 = vpow2.f32 %v714_v33 }
 0x1db   : > { %972 = vperm.xlu2 %1828, %v2397_v63   ;;  %977 = vperm.xlu0 %1829, %v2400_v20  }
 0x1dd   : > { %997 = vperm.xlu1 %1827, %v2404_v54   ;;  %v2436_v49 = vpop.eup %1850 }
 0x1de   : > { %v2439_v55 = vpop.eup %1852 }
 0x1df   : > { %v2441_v57 = vpop.eup %1854 }
 0x1e3   : > { %992 = vperm.xlu2 %1828, %v2419_v36   ;;  %987 = vperm.xlu0 %1829, %v2416_v27  }
 0x1e5   : > { %1012 = vperm.xlu1 %1827, %v2425_v26  }
 0x1eb   : > { %1007 = vperm.xlu2 %1828, %v2432_v39   ;;  %1002 = vperm.xlu0 %1829, %v2430_v37  }
 0x1ed   : > { %1027 = vperm.xlu1 %1827, %v2436_v49  }
 0x1ef   : > { %v732_v52 = vpop.permute.xlu2 %731 }
 0x1f0   : > { %v805_v60 = vsub.f32 %v2195_v4, %v732_v52 }
 0x1f2   : > { %v822_v46 = vmul.f32 1.442695, %v805_v60 }
 0x1f3   : > { %1022 = vperm.xlu2 %1828, %v2441_v57   ;;  %1017 = vperm.xlu0 %1829, %v2439_v55  }
 0x1f4   : > { %1856 = vpow2.f32 %v822_v46 }
 0x1f7   : > { %v727_v32 = vpop.permute.xlu1 %726 }
 0x1f8   : > { %v804_v47 = vsub.f32 %v2190_v2, %v727_v32 }
 0x1fa   : > { %v820_v50 = vmul.f32 1.442695, %v804_v47  ;;  %v1857_v56 = vpop.eup %1856 }
 0x1fc   : > { %1858 = vpow2.f32 %v820_v50 }
 0x1fd   : > { %v742_v22 = vpop.permute.xlu2 %741 }
 0x1fe   : > { %v807_v24 = vsub.f32 %v2208_v8, %v742_v22 }
 0x200   : > { %v826_v25 = vmul.f32 1.442695, %v807_v24 }
 0x202   : > { %v1859_v34 = vpop.eup %1858  ;;  %1860 = vpow2.f32 %v826_v25 }
 0x203   : > { %v1061_v38 = vpack.c.bf16 %v1857_v56, %v1859_v34 }
 0x205   : > { %1141 = vmatmul.bf16.vlgmr.msra.gmra.mxu1 %v1061_v38 }
 0x207   : > { %v752_v44 = vpop.permute.xlu2 %751 }
 0x208   : > { %v2449_v51 = vpop.eup %1860  ;;  %v809_v8 = vsub.f32 %v2220_v12, %v752_v44 }
 0x20d   : > { %v737_v4 = vpop.permute.xlu0 %736 }
 0x20e   : > { %v806_v48 = vsub.f32 %v2201_v6, %v737_v4  ;;  %v830_v6 = vmul.f32 1.442695, %v809_v8 }
 0x20f   : > { %v782_v45 = vpop.permute.xlu2 %781 }
 0x210   : > { %v824_v1 = vmul.f32 1.442695, %v806_v48  ;;  %v815_v35 = vsub.f32 %v2223_v13, %v782_v45 }
 0x212   : > { %1862 = vpow2.f32 %v824_v1  ;;  %v842_v58 = vmul.f32 1.442695, %v815_v35 }
 0x217   : > { %v747_v2 = vpop.permute.xlu1 %746  ;;  %886 = vadd.xlane.f32.xlu1 %v1857_v56 }
 0x218   : > { %v1863_v40 = vpop.eup %1862  ;;  %v808_v19 = vsub.f32 %v2214_v10, %v747_v2 }
 0x219   : > { %v1062_v23 = vpack.c.bf16 %v2449_v51, %v1863_v40 }
 0x21a   : > { %v828_v43 = vmul.f32 1.442695, %v808_v19 }
 0x21b   : > { %1146 = vmatmul.bf16.gmra.mxu1 %v1062_v23 }
 0x21c   : > { %884 = vadd.xlane.f32.xlu2 %v1859_v34  ;;  %1864 = vpow2.f32 %v828_v43 }
 0x21d   : > { %1866 = vpow2.f32 %v830_v6  ;;  %v792_v46 = vpop.permute.xlu2 %791 }
 0x21e   : > { %1868 = vpow2.f32 %v842_v58  ;;  %v817_v56 = vsub.f32 %v2229_v15, %v792_v46 }
 0x21f   : > { %v777_v29 = vpop.permute.xlu1 %776 }
 0x220   : > { %v814_v31 = vsub.f32 %v2217_v11, %v777_v29  ;;  %v846_v22 = vmul.f32 1.442695, %v817_v56 }
 0x222   : > { %v840_v33 = vmul.f32 1.442695, %v814_v31  ;;  %v1865_v10 = vpop.eup %1864 }
 0x223   : > { %v1867_v60 = vpop.eup %1866 }
 0x224   : > { %1870 = vpow2.f32 %v840_v33  ;;  %v1869_v13 = vpop.eup %1868  ;;  %v1063_v32 = vpack.c.bf16 %v1867_v60, %v1865_v10 }
 0x227   : > { %v757_v52 = vpop.permute.xlu1 %756 }
 0x228   : > { %v810_v12 = vsub.f32 %v2193_v3, %v757_v52 }
 0x22a   : > { %v1871_v47 = vpop.eup %1870  ;;  %v832_v50 = vmul.f32 1.442695, %v810_v12 }
 0x22b   : > { %1151 = vmatmul.bf16.gmra.mxu1 %v1063_v32  ;;  %v1066_v34 = vpack.c.bf16 %v1869_v13, %v1871_v47  ;;  %v718_v32 = vmul.f32 1.442695, %v689_v18  ;;  %v949_v18 = vld [vmem:[#allocation4] sm:$0xff] }
 0x22c   : > { %1872 = vpow2.f32 %v832_v50 }
 0x22d   : > { %v787_v11 = vpop.permute.xlu0 %786  ;;  %1166 = vmatmul.bf16.vlgmr.msra.gmra.mxu3 %v1066_v34  ;;  %v802_v45 = vpop.permute.xlu2 %801 }
 0x22e   : > { %v816_v38 = vsub.f32 %v2226_v14, %v787_v11  ;;  %v853_v11 = vld [vmem:[#allocation3 + $0x8] sm:$0xff] }
 0x22f   : > { %v762_v24 = vpop.permute.xlu1 %761 }
 0x230   : > { %v844_v25 = vmul.f32 1.442695, %v816_v38  ;;  %v811_v4 = vsub.f32 %v2198_v5, %v762_v24  ;;  %v819_v5 = vsub.f32 %v2235_v17, %v802_v45 }
 0x232   : > { %v1873_v44 = vpop.eup %1872  ;;  %1874 = vpow2.f32 %v844_v25  ;;  %v834_v3 = vmul.f32 1.442695, %v811_v4  ;;  %v850_v6 = vmul.f32 1.442695, %v819_v5  ;;  %v869_v25 = vmul.f32 %v2397_v63, %v853_v11  ;;  %v952_v5 = vld [vmem:[#allocation4 + $0x18] sm:$0xff] }
 0x233   : > { %1876 = vpow2.f32 %v846_v22  ;;  %896 = vadd.xlane.f32.xlu0 %v1873_v44 }
 0x234   : > { %1878 = vpow2.f32 %v834_v3 }
 0x237   : > { %v767_v48 = vpop.permute.xlu1 %766 }
 0x238   : > { %v1875_v15 = vpop.eup %1874  ;;  %v812_v1 = vsub.f32 %v2204_v7, %v767_v48 }
 0x239   : > { %v1877_v2 = vpop.eup %1876 }
 0x23a   : > { %v1879_v19 = vpop.eup %1878  ;;  %v836_v23 = vmul.f32 1.442695, %v812_v1  ;;  %v1067_v8 = vpack.c.bf16 %v1877_v2, %v1875_v15 }
 0x23b   : > { %888 = vadd.xlane.f32.xlu0 %v1863_v40  ;;  %898 = vadd.xlane.f32.xlu1 %v1879_v19  ;;  %v1064_v14 = vpack.c.bf16 %v1879_v19, %v1873_v44  ;;  %v951_v19 = vld [vmem:[#allocation4 + $0x10] sm:$0xff] }
 0x23c   : > { %1880 = vpow2.f32 %v836_v23 }
 0x23d   : > { %v797_v35 = vpop.permute.xlu0 %796  ;;  %1156 = vmatmul.bf16.gmra.mxu1 %v1064_v14  ;;  %1171 = vmatmul.bf16.gmra.mxu3 %v1067_v8 }
 0x23e   : > { %v818_v43 = vsub.f32 %v2232_v16, %v797_v35 }
 0x240   : > { %v848_v58 = vmul.f32 1.442695, %v818_v43 }
 0x242   : > { %v1881_v29 = vpop.eup %1880  ;;  %1882 = vpow2.f32 %v848_v58 }
 0x243   : > { %900 = vadd.xlane.f32.xlu2 %v1881_v29  ;;  %892 = vadd.xlane.f32.xlu1 %v1865_v10  ;;  %1884 = vpow2.f32 %v850_v6  ;;  %v968_v10 = vpop.permute.xlu1 %967 }
 0x244   : > { %v1045_v56 = vmul.f32 %v968_v10, %v949_v18  ;;  %v954_v10 = vld [vmem:[#allocation4 + $0x28] sm:$0xff] }
 0x245   : > { %v772_v7 = vpop.permute.xlu0 %771 }
 0x246   : > { %v813_v40 = vsub.f32 %v2210_v9, %v772_v7  ;;  %v722_v9 = vmul.f32 1.442695, %v691_v59 }
 0x248   : > { %v1883_v31 = vpop.eup %1882  ;;  %v838_v33 = vmul.f32 1.442695, %v813_v40 }
 0x249   : > { %v1885_v52 = vpop.eup %1884 }
 0x24a   : > { %1886 = vpow2.f32 %v838_v33  ;;  %v1068_v17 = vpack.c.bf16 %v1885_v52, %v1883_v31 }
 0x24b   : > { %904 = vadd.xlane.f32.xlu1 %v1871_v47  ;;  %890 = vadd.xlane.f32.xlu2 %v2449_v51  ;;  %v983_v12 = vpop.permute.xlu1 %982  ;;  %1888 = vpow2.f32 %v722_v9  ;;  %v973_v51 = vpop.permute.xlu2 %972  ;;  %v959_v9 = vld [vmem:[#allocation4 + $0x50] sm:$0xff] }
 0x24c   : > { %1890 = vpow2.f32 %v718_v32  ;;  %v1046_v22 = vmul.f32 %v973_v51, %v950_v42  ;;  %v1048_v43 = vmul.f32 %v983_v12, %v952_v5  ;;  %v956_v5 = vld [vmem:[#allocation4 + $0x38] sm:$0xff] }
 0x24d   : > { %1176 = vmatmul.bf16.gmra.mxu3 %v1068_v17  ;;  %1892 = vpow2.f32 %v720_v28  ;;  %v978_v50 = vpop.permute.xlu0 %977 }
 0x24e   : > { %v1047_v14 = vmul.f32 %v978_v50, %v951_v19 }
 0x250   : > { %v1887_v16 = vpop.eup %1886 }
 0x251   : > { %902 = vadd.xlane.f32.xlu0 %v1887_v16  ;;  %v1065_v46 = vpack.c.bf16 %v1887_v16, %v1881_v29  ;;  %v2471_v47 = vpop.eup %1888  ;;  %v858_v29 = vld [vmem:[#allocation3 + $0x30] sm:$0xff] }
 0x252   : > { %v2479_v59 = vpop.eup %1890  ;;  %v874_v7 = vmul.f32 %v2404_v54, %v858_v29  ;;  %v854_v16 = vld [vmem:[#allocation3 + $0x10] sm:$0xff] }
 0x253   : > { %894 = vadd.xlane.f32.xlu2 %v1867_v60  ;;  %1161 = vmatmul.bf16.gmra.mxu1 %v1065_v46  ;;  %v2474_v60 = vpop.permute.xlu1 %997  ;;  %v993_v53 = vpop.permute.xlu2 %992  ;;  %v859_v46 = vld [vmem:[#allocation3 + $0x38] sm:$0xff]  ;;  %v870_v12 = vmul.f32 %v2400_v20, %v854_v16 }
 0x254   : > { %910 = vadd.xlane.f32.xlu1 %v1877_v2  ;;  %v2484_v62 = vpop.eup %1892  ;;  %v875_v51 = vmul.f32 %v2430_v37, %v859_v46  ;;  %v1050_v54 = vmul.f32 %v993_v53, %v954_v10  ;;  %v960_v20 = vld [vmem:[#allocation4 + $0x58] sm:$0xff] }
 0x255   : > { %v988_v24 = vpop.permute.xlu0 %987 }
 0x259   : > { %908 = vadd.xlane.f32.xlu0 %v1875_v15  ;;  %v852_v15 = vld [vmem:[#allocation3] sm:$0xff] }
 0x25a   : > { %v868_v1 = vmul.f32 %v2366_v41, %v852_v15  ;;  %v953_v41 = vld [vmem:[#allocation4 + $0x20] sm:$0xff] }
 0x25b   : > { %906 = vadd.xlane.f32.xlu2 %v1869_v13  ;;  %v2482_v13 = vpop.permute.xlu1 %1012  ;;  %v2487_v0 = vpop.permute.xlu2 %1007 }
 0x25d   : > { %v2499_v23 = vpop.permute.xlu0 %1002 }
 0x261   : > { %914 = vadd.xlane.f32.xlu0 %v1885_v52 }
 0x263   : > { %912 = vadd.xlane.f32.xlu2 %v1883_v31  ;;  %v2489_v34 = vpop.permute.xlu1 %1027  ;;  %v2492_v38 = vpop.permute.xlu2 %1022  ;;  %v1049_v31 = vmul.f32 %v988_v24, %v953_v41  ;;  %v860_v24 = vld [vmem:[#allocation3 + $0x40] sm:$0xff]  ;;  %v861_v41 = vld [vmem:[#allocation3 + $0x48] sm:$0xff] }
 0x264   : > { %v876_v53 = vmul.f32 %v2432_v39, %v860_v24  ;;  %v958_v24 = vld [vmem:[#allocation4 + $0x48] sm:$0xff] }
 0x265   : > { %v1018_v35 = vpop.permute.xlu0 %1017 }
 0x266   : > { %v1055_v18 = vmul.f32 %v1018_v35, %v959_v9 }
 0x26d   : > { %1042 = vperm.xlu1 %1827, %v2471_v47  }
 0x275   : > { %1032 = vperm.xlu0 %1829, %v2479_v59  }
 0x27b   : > { %1037 = vperm.xlu2 %1828, %v2484_v62  }
 0x282   : > { %v1142_v21 = vpop.f32.mrf.mxu1 }
 0x283   : > { %v1182_v30 = vadd.f32 %v1142_v21, %v1045_v56 }
 0x285   : > { %1198 = vst.msk [vmem:[#allocation4] sm:$0xff] %vm514_vm2, %v1182_v30 }
 0x28a   : > { %v887_v4 = vpop.xlane.xlu1 %886  ;;  %v1144_v44 = vpop.f32.mrf.mxu1 }
 0x28b   : > { %v917_v3 = vadd.f32 %v887_v4, %v869_v25  ;;  %v1183_v48 = vadd.f32 %v1144_v44, %v1046_v22  ;;  %v856_v22 = vld [vmem:[#allocation3 + $0x20] sm:$0xff]  ;;  %v955_v25 = vld [vmem:[#allocation4 + $0x30] sm:$0xff] }
 0x28c   : > { %v872_v37 = vmul.f32 %v2416_v27, %v856_v22  ;;  %v855_v27 = vld [vmem:[#allocation3 + $0x18] sm:$0xff]  ;;  %v866_v22 = vld [vmem:[#allocation3 + $0x70] sm:$0xff] }
 0x28d   : > { %934 = vst.msk [vmem:[#allocation3 + $0x8] sm:$0xff] %vm932_vm3, %v917_v3  ;;  %v1056_v3 = vmul.f32 %v2492_v38, %v960_v20 }
 0x28e   : > { %1199 = vst.msk [vmem:[#allocation4 + $0x8] sm:$0xff] %vm514_vm2, %v1183_v48 }
 0x28f   : > { %v885_v2 = vpop.xlane.xlu2 %884 }
 0x290   : > { %v916_v45 = vadd.f32 %v885_v2, %v868_v1  ;;  %v1051_v2 = vmul.f32 %v2474_v60, %v955_v25 }
 0x292   : > { %933 = vst.msk [vmem:[#allocation3] sm:$0xff] %vm932_vm3, %v916_v45 }
 0x298   : > { %v1147_v63 = vpop.f32.mrf.mxu1 }
 0x299   : > { %v1184_v8 = vadd.f32 %v1147_v63, %v1047_v14  ;;  %v862_v14 = vld [vmem:[#allocation3 + $0x50] sm:$0xff]  ;;  %v961_v63 = vld [vmem:[#allocation4 + $0x60] sm:$0xff] }
 0x29a   : > { %v878_v38 = vmul.f32 %v2439_v55, %v862_v14  ;;  %v857_v55 = vld [vmem:[#allocation3 + $0x28] sm:$0xff] }
 0x29b   : > { %1200 = vst.msk [vmem:[#allocation4 + $0x10] sm:$0xff] %vm514_vm2, %v1184_v8  ;;  %v871_v8 = vmul.f32 %v2389_v61, %v855_v27  ;;  %v873_v16 = vmul.f32 %v2419_v36, %v857_v55 }
 0x2a0   : > { %v1149_v6 = vpop.f32.mrf.mxu1 }
 0x2a1   : > { %v1185_v58 = vadd.f32 %v1149_v6, %v1048_v43  ;;  %v1057_v43 = vmul.f32 %v2489_v34, %v961_v63 }
 0x2a3   : > { %1201 = vst.msk [vmem:[#allocation4 + $0x18] sm:$0xff] %vm514_vm2, %v1185_v58 }
 0x2a6   : > { %v897_v40 = vpop.xlane.xlu0 %896 }
 0x2a7   : > { %v922_v33 = vadd.f32 %v897_v40, %v874_v7  ;;  %v1052_v7 = vmul.f32 %v2499_v23, %v956_v5 }
 0x2a8   : > { %v1152_v52 = vpop.f32.mrf.mxu1 }
 0x2a9   : > { %939 = vst.msk [vmem:[#allocation3 + $0x30] sm:$0xff] %vm932_vm3, %v922_v33  ;;  %v1186_v17 = vadd.f32 %v1152_v52, %v1049_v31  ;;  %v877_v33 = vmul.f32 %v2425_v26, %v861_v41  ;;  %v865_v52 = vld [vmem:[#allocation3 + $0x68] sm:$0xff]  ;;  %v863_v26 = vld [vmem:[#allocation3 + $0x58] sm:$0xff] }
 0x2aa   : > { %v881_v23 = vmul.f32 %v2479_v59, %v865_v52  ;;  %v879_v59 = vmul.f32 %v2441_v57, %v863_v26  ;;  %v882_v57 = vmul.f32 %v2484_v62, %v866_v22 }
 0x2ab   : > { %1202 = vst.msk [vmem:[#allocation4 + $0x20] sm:$0xff] %vm514_vm2, %v1186_v17 }
 0x2ae   : > { %v889_v32 = vpop.xlane.xlu0 %888  ;;  %v899_v28 = vpop.xlane.xlu1 %898 }
 0x2af   : > { %v918_v50 = vadd.f32 %v889_v32, %v870_v12  ;;  %v923_v56 = vadd.f32 %v899_v28, %v875_v51  ;;  %v864_v51 = vld [vmem:[#allocation3 + $0x60] sm:$0xff] }
 0x2b0   : > { %v1154_v21 = vpop.f32.mrf.mxu1  ;;  %v1167_v30 = vpop.f32.mrf.mxu3  ;;  %v880_v32 = vmul.f32 %v2436_v49, %v864_v51  ;;  %v957_v28 = vld [vmem:[#allocation4 + $0x40] sm:$0xff] }
 0x2b1   : > { %935 = vst.msk [vmem:[#allocation3 + $0x10] sm:$0xff] %vm932_vm3, %v918_v50  ;;  %v1187_v42 = vadd.f32 %v1154_v21, %v1050_v54  ;;  %v1192_v11 = vadd.f32 %v1167_v30, %v1055_v18 }
 0x2b2   : > { %940 = vst.msk [vmem:[#allocation3 + $0x38] sm:$0xff] %vm932_vm3, %v923_v56  ;;  %v1053_v56 = vmul.f32 %v2487_v0, %v957_v28  ;;  %v1054_v0 = vmul.f32 %v2482_v13, %v958_v24  ;;  %v962_v13 = vld [vmem:[#allocation4 + $0x68] sm:$0xff] }
 0x2b3   : > { %1203 = vst.msk [vmem:[#allocation4 + $0x28] sm:$0xff] %vm514_vm2, %v1187_v42  ;;  %v867_v42 = vld [vmem:[#allocation3 + $0x78] sm:$0xff] }
 0x2b4   : > { %1208 = vst.msk [vmem:[#allocation4 + $0x50] sm:$0xff] %vm514_vm2, %v1192_v11  ;;  %v883_v49 = vmul.f32 %v2471_v47, %v867_v42  ;;  %v964_v47 = vld [vmem:[#allocation4 + $0x78] sm:$0xff] }
 0x2b6   : > { %v893_v4 = vpop.xlane.xlu1 %892  ;;  %v901_v44 = vpop.xlane.xlu2 %900 }
 0x2b7   : > { %v920_v48 = vadd.f32 %v893_v4, %v872_v37  ;;  %v924_v15 = vadd.f32 %v901_v44, %v876_v53 }
 0x2b8   : > { %v1169_v1 = vpop.f32.mrf.mxu3 }
 0x2b9   : > { %937 = vst.msk [vmem:[#allocation3 + $0x20] sm:$0xff] %vm932_vm3, %v920_v48  ;;  %v1193_v45 = vadd.f32 %v1169_v1, %v1056_v3  ;;  %v963_v48 = vld [vmem:[#allocation4 + $0x70] sm:$0xff] }
 0x2ba   : > { %941 = vst.msk [vmem:[#allocation3 + $0x40] sm:$0xff] %vm932_vm3, %v924_v15  ;;  %v1157_v19 = vpop.f32.mrf.mxu1 }
 0x2bb   : > { %1209 = vst.msk [vmem:[#allocation4 + $0x58] sm:$0xff] %vm514_vm2, %v1193_v45  ;;  %v1188_v39 = vadd.f32 %v1157_v19, %v1051_v2 }
 0x2bd   : > { %1204 = vst.msk [vmem:[#allocation4 + $0x30] sm:$0xff] %vm514_vm2, %v1188_v39 }
 0x2be   : > { %v905_v60 = vpop.xlane.xlu1 %904  ;;  %v891_v35 = vpop.xlane.xlu2 %890 }
 0x2bf   : > { %v926_v6 = vadd.f32 %v905_v60, %v878_v38  ;;  %v919_v58 = vadd.f32 %v891_v35, %v871_v8 }
 0x2c0   : > { %v1172_v29 = vpop.f32.mrf.mxu3 }
 0x2c1   : > { %943 = vst.msk [vmem:[#allocation3 + $0x50] sm:$0xff] %vm932_vm3, %v926_v6  ;;  %v1194_v40 = vadd.f32 %v1172_v29, %v1057_v43 }
 0x2c2   : > { %936 = vst.msk [vmem:[#allocation3 + $0x18] sm:$0xff] %vm932_vm3, %v919_v58  ;;  %v1159_v31 = vpop.f32.mrf.mxu1 }
 0x2c3   : > { %1210 = vst.msk [vmem:[#allocation4 + $0x60] sm:$0xff] %vm514_vm2, %v1194_v40  ;;  %v1189_v61 = vadd.f32 %v1159_v31, %v1052_v7 }
 0x2c4   : > { %v903_v34 = vpop.xlane.xlu0 %902 }
 0x2c5   : > { %1205 = vst.msk [vmem:[#allocation4 + $0x38] sm:$0xff] %vm514_vm2, %v1189_v61  ;;  %v925_v17 = vadd.f32 %v903_v34, %v877_v33 }
 0x2c6   : > { %v895_v46 = vpop.xlane.xlu2 %894 }
 0x2c7   : > { %942 = vst.msk [vmem:[#allocation3 + $0x48] sm:$0xff] %vm932_vm3, %v925_v17  ;;  %v911_v10 = vpop.xlane.xlu1 %910  ;;  %v921_v9 = vadd.f32 %v895_v46, %v873_v16 }
 0x2c8   : > { %v929_v12 = vadd.f32 %v911_v10, %v881_v23  ;;  %v1174_v18 = vpop.f32.mrf.mxu3 }
 0x2c9   : > { %938 = vst.msk [vmem:[#allocation3 + $0x28] sm:$0xff] %vm932_vm3, %v921_v9 }
 0x2ca   : > { %946 = vst.msk [vmem:[#allocation3 + $0x68] sm:$0xff] %vm932_vm3, %v929_v12 }
 0x2cc   : > { %v909_v54 = vpop.xlane.xlu0 %908 }
 0x2cd   : > { %v928_v36 = vadd.f32 %v909_v54, %v880_v32 }
 0x2ce   : > { %v907_v50 = vpop.xlane.xlu2 %906 }
 0x2cf   : > { %945 = vst.msk [vmem:[#allocation3 + $0x60] sm:$0xff] %vm932_vm3, %v928_v36  ;;  %v927_v21 = vadd.f32 %v907_v50, %v879_v59 }
 0x2d0   : > { %v1162_v30 = vpop.f32.mrf.mxu1  ;;  %v1177_v25 = vpop.f32.mrf.mxu3 }
 0x2d1   : > { %944 = vst.msk [vmem:[#allocation3 + $0x58] sm:$0xff] %vm932_vm3, %v927_v21  ;;  %v1190_v11 = vadd.f32 %v1162_v30, %v1053_v56 }
 0x2d3   : > { %1206 = vst.msk [vmem:[#allocation4 + $0x40] sm:$0xff] %vm514_vm2, %v1190_v11 }
 0x2d4   : > { %v915_v20 = vpop.xlane.xlu0 %914 }
 0x2d5   : > { %v931_v37 = vadd.f32 %v915_v20, %v883_v49 }
 0x2d6   : > { %v913_v53 = vpop.xlane.xlu2 %912 }
 0x2d7   : > { %948 = vst.msk [vmem:[#allocation3 + $0x78] sm:$0xff] %vm932_vm3, %v931_v37  ;;  %v930_v4 = vadd.f32 %v913_v53, %v882_v57 }
 0x2d8   : > { %v1164_v44 = vpop.f32.mrf.mxu1  ;;  %v1179_v62 = vpop.f32.mrf.mxu3 }
 0x2d9   : > { %947 = vst.msk [vmem:[#allocation3 + $0x70] sm:$0xff] %vm932_vm3, %v930_v4  ;;  %v1191_v3 = vadd.f32 %v1164_v44, %v1054_v0 }
 0x2db   : > { %1207 = vst.msk [vmem:[#allocation4 + $0x48] sm:$0xff] %vm514_vm2, %v1191_v3 }
 0x2de   : > { %v1038_v15 = vpop.permute.xlu2 %1037 }
 0x2df   : > { %v1043_v1 = vpop.permute.xlu1 %1042  ;;  %v1059_v2 = vmul.f32 %v1038_v15, %v963_v48 }
 0x2e0   : > { %v1060_v45 = vmul.f32 %v1043_v1, %v964_v47 }
 0x2e1   : > { %v1196_v19 = vadd.f32 %v1177_v25, %v1059_v2 }
 0x2e2   : > { %v1197_v14 = vadd.f32 %v1179_v62, %v1060_v45 }
 0x2e3   : > { %1212 = vst.msk [vmem:[#allocation4 + $0x70] sm:$0xff] %vm514_vm2, %v1196_v19 }
 0x2e4   : > { %1213 = vst.msk [vmem:[#allocation4 + $0x78] sm:$0xff] %vm514_vm2, %v1197_v14 }
 0x2e7   : > { %v1033_v27 = vpop.permute.xlu0 %1032 }
 0x2e8   : > { %v1058_v39 = vmul.f32 %v1033_v27, %v962_v13  ;;  %1233 = sbr.rel (%p1677_p12) target bundleno = 919 (0x397), region = 40 }
 0x2ea   : > { %v1195_v63 = vadd.f32 %v1174_v18, %v1058_v39 }
 0x2ec   : > { %1211 = vst.msk [vmem:[#allocation4 + $0x68] sm:$0xff] %vm514_vm2, %v1195_v63 }
 0x2ed   : > { %v1254_v38 = vld [vmem:[#allocation3 + $0x20] sm:$0xff]  ;;  %v1252_v8 = vld [vmem:[#allocation3 + $0x10] sm:$0xff]  ;;  %v2004_v60 = vmov 0   ;;  %v1255_v35 = vld [vmem:[#allocation3 + $0x28] sm:$0xff]  ;;  %vm1394_vm4 = vcmask 519168  }
 0x2ee   : > { %v1250_v5 = vld [vmem:[#allocation3] sm:$0xff]  ;;  %1896 = vset.pattern.permute.xlu2 %v2004_v60  ;;  %1895 = vset.pattern.permute.xlu1 %v2004_v60  ;;  %1897 = vrcp.f32 %v1254_v38  ;;  %v1253_v43 = vld [vmem:[#allocation3 + $0x18] sm:$0xff]  ;;  %v1251_v6 = vld [vmem:[#allocation3 + $0x8] sm:$0xff] }
 0x2ef   : > { %1894 = vset.pattern.permute.xlu0 %v2004_v60  ;;  %1899 = vrcp.f32 %v1252_v8  ;;  %v1258_v7 = vld [vmem:[#allocation3 + $0x40] sm:$0xff]  ;;  %v1257_v31 = vld [vmem:[#allocation3 + $0x38] sm:$0xff]  ;;  %v1256_v61 = vld [vmem:[#allocation3 + $0x30] sm:$0xff] }
 0x2f0   : > { %1901 = vrcp.f32 %v1250_v5  ;;  %v1261_v52 = vld [vmem:[#allocation3 + $0x58] sm:$0xff]  ;;  %v1260_v17 = vld [vmem:[#allocation3 + $0x50] sm:$0xff]  ;;  %v1259_v23 = vld [vmem:[#allocation3 + $0x48] sm:$0xff] }
 0x2f1   : > { %1903 = vrcp.f32 %v1255_v35  ;;  %v1264_v10 = vld [vmem:[#allocation3 + $0x70] sm:$0xff]  ;;  %v1263_v12 = vld [vmem:[#allocation3 + $0x68] sm:$0xff]  ;;  %v1262_v26 = vld [vmem:[#allocation3 + $0x60] sm:$0xff] }
 0x2f2   : > { %1905 = vrcp.f32 %v1253_v43  ;;  %v1265_v18 = vld [vmem:[#allocation3 + $0x78] sm:$0xff]  ;;  %v1238_v50 = vld [vmem:[#allocation4 + $0x20] sm:$0xff]  ;;  %v1239_v42 = vld [vmem:[#allocation4 + $0x28] sm:$0xff] }
 0x2f3   : > { %1907 = vrcp.f32 %v1251_v6  ;;  %v1242_v24 = vld [vmem:[#allocation4 + $0x40] sm:$0xff]  ;;  %v1245_v53 = vld [vmem:[#allocation4 + $0x58] sm:$0xff]  ;;  %v1236_v0 = vld [vmem:[#allocation4 + $0x10] sm:$0xff] }
 0x2f4   : > { %v1898_v58 = vpop.eup %1897  ;;  %1909 = vrcp.f32 %v1258_v7  ;;  %v1234_v4 = vld [vmem:[#allocation4] sm:$0xff]  ;;  %v1248_v62 = vld [vmem:[#allocation4 + $0x70] sm:$0xff]  ;;  %v1237_v19 = vld [vmem:[#allocation4 + $0x18] sm:$0xff] }
 0x2f5   : > { %v1900_v29 = vpop.eup %1899  ;;  %1304 = vperm.xlu2 %1896, %v1898_v58   ;;  %1911 = vrcp.f32 %v1257_v31  ;;  %v1235_v13 = vld [vmem:[#allocation4 + $0x8] sm:$0xff]  ;;  %v1241_v43 = vld [vmem:[#allocation4 + $0x38] sm:$0xff]  ;;  %v1240_v6 = vld [vmem:[#allocation4 + $0x30] sm:$0xff] }
 0x2f6   : > { %v1902_v41 = vpop.eup %1901  ;;  %1294 = vperm.xlu1 %1895, %v1900_v29   ;;  %1913 = vrcp.f32 %v1256_v61  ;;  %v1243_v61 = vld [vmem:[#allocation4 + $0x48] sm:$0xff] }
 0x2f7   : > { %1284 = vperm.xlu0 %1894, %v1902_v41   ;;  %v1904_v40 = vpop.eup %1903  ;;  %1915 = vrcp.f32 %v1261_v52 }
 0x2f8   : > { %v1906_v55 = vpop.eup %1905  ;;  %1917 = vrcp.f32 %v1260_v17 }
 0x2f9   : > { %v1908_v33 = vpop.eup %1907  ;;  %1919 = vrcp.f32 %v1259_v23 }
 0x2fa   : > { %v1910_v34 = vpop.eup %1909  ;;  %1921 = vrcp.f32 %v1264_v10  ;;  %v1246_v10 = vld [vmem:[#allocation4 + $0x60] sm:$0xff] }
 0x2fb   : > { %v1912_v16 = vpop.eup %1911  ;;  %1923 = vrcp.f32 %v1263_v12 }
 0x2fc   : > { %v1914_v46 = vpop.eup %1913  ;;  %1925 = vrcp.f32 %v1262_v26 }
 0x2fd   : > { %1309 = vperm.xlu2 %1896, %v1904_v40   ;;  %v1916_v9 = vpop.eup %1915  ;;  %1927 = vrcp.f32 %v1265_v18 }
 0x2fe   : > { %1299 = vperm.xlu1 %1895, %v1906_v55   ;;  %v1918_v51 = vpop.eup %1917  ;;  %v1244_v55 = vld [vmem:[#allocation4 + $0x50] sm:$0xff] }
 0x2ff   : > { %1289 = vperm.xlu0 %1894, %v1908_v33   ;;  %v1920_v32 = vpop.eup %1919 }
 0x300   : > { %v1922_v28 = vpop.eup %1921 }
 0x301   : > { %v1924_v54 = vpop.eup %1923 }
 0x302   : > { %v1926_v36 = vpop.eup %1925 }
 0x303   : > { %v1928_v59 = vpop.eup %1927 }
 0x305   : > { %1324 = vperm.xlu2 %1896, %v1910_v34  }
 0x306   : > { %1319 = vperm.xlu1 %1895, %v1912_v16  }
 0x307   : > { %1314 = vperm.xlu0 %1894, %v1914_v46   ;;  %v1247_v46 = vld [vmem:[#allocation4 + $0x68] sm:$0xff] }
 0x30d   : > { %1339 = vperm.xlu2 %1896, %v1916_v9  }
 0x30e   : > { %1334 = vperm.xlu1 %1895, %v1918_v51  }
 0x30f   : > { %1329 = vperm.xlu0 %1894, %v1920_v32  }
 0x315   : > { %1354 = vperm.xlu2 %1896, %v1922_v28  }
 0x316   : > { %1349 = vperm.xlu1 %1895, %v1924_v54   ;;  %v1249_v54 = vld [vmem:[#allocation4 + $0x78] sm:$0xff] }
 0x317   : > { %1344 = vperm.xlu0 %1894, %v1926_v36  }
 0x31f   : > { %1359 = vperm.xlu0 %1894, %v1928_v59  }
 0x34f   : > { %v1305_v56 = vpop.permute.xlu2 %1304 }
 0x350   : > { %v1366_v21 = vmul.f32 %v1305_v56, %v1238_v50 }
 0x352   : > { %v1382_v30 = vpack.c.bf16 %v1366_v21, %v1366_v21 }
 0x354   : > { %1399 = vst.msk [vmem:[%s2097_s10 + $0x10] sm:$0xf] %vm1394_vm4, %v1382_v30 }
 0x357   : > { %v1310_v11 = vpop.permute.xlu2 %1309 }
 0x358   : > { %v1367_v22 = vmul.f32 %v1310_v11, %v1239_v42 }
 0x35a   : > { %v1383_v49 = vpack.c.bf16 %v1367_v22, %v1367_v22 }
 0x35c   : > { %1400 = vst.msk [vmem:[%s2097_s10 + $0x14] sm:$0xf] %vm1394_vm4, %v1383_v49 }
 0x35f   : > { %v1325_v20 = vpop.permute.xlu2 %1324 }
 0x360   : > { %v1370_v37 = vmul.f32 %v1325_v20, %v1242_v24 }
 0x362   : > { %v1386_v57 = vpack.c.bf16 %v1370_v37, %v1370_v37 }
 0x364   : > { %1403 = vst.msk [vmem:[%s2097_s10 + $0x20] sm:$0xf] %vm1394_vm4, %v1386_v57 }
 0x367   : > { %v1340_v25 = vpop.permute.xlu2 %1339 }
 0x368   : > { %v1373_v44 = vmul.f32 %v1340_v25, %v1245_v53  ;;  %v1295_v3 = vpop.permute.xlu1 %1294 }
 0x369   : > { %v1364_v48 = vmul.f32 %v1295_v3, %v1236_v0  ;;  %v1285_v47 = vpop.permute.xlu0 %1284 }
 0x36a   : > { %v1389_v15 = vpack.c.bf16 %v1373_v44, %v1373_v44  ;;  %v1362_v1 = vmul.f32 %v1285_v47, %v1234_v4 }
 0x36b   : > { %v1380_v2 = vpack.c.bf16 %v1364_v48, %v1364_v48 }
 0x36c   : > { %1406 = vst.msk [vmem:[%s2097_s10 + $0x2c] sm:$0xf] %vm1394_vm4, %v1389_v15  ;;  %v1378_v45 = vpack.c.bf16 %v1362_v1, %v1362_v1 }
 0x36d   : > { %1397 = vst.msk [vmem:[%s2097_s10 + $0x8] sm:$0xf] %vm1394_vm4, %v1380_v2 }
 0x36e   : > { %1395 = vst.msk [vmem:[%s2097_s10] sm:$0xf] %vm1394_vm4, %v1378_v45 }
 0x36f   : > { %v1355_v14 = vpop.permute.xlu2 %1354 }
 0x370   : > { %v1376_v27 = vmul.f32 %v1355_v14, %v1248_v62  ;;  %v1300_v39 = vpop.permute.xlu1 %1299 }
 0x371   : > { %v1365_v63 = vmul.f32 %v1300_v39, %v1237_v19  ;;  %v1290_v38 = vpop.permute.xlu0 %1289 }
 0x372   : > { %v1392_v8 = vpack.c.bf16 %v1376_v27, %v1376_v27  ;;  %v1363_v5 = vmul.f32 %v1290_v38, %v1235_v13 }
 0x373   : > { %v1381_v60 = vpack.c.bf16 %v1365_v63, %v1365_v63 }
 0x374   : > { %1409 = vst.msk [vmem:[%s2097_s10 + $0x38] sm:$0xf] %vm1394_vm4, %v1392_v8  ;;  %v1379_v35 = vpack.c.bf16 %v1363_v5, %v1363_v5 }
 0x375   : > { %1398 = vst.msk [vmem:[%s2097_s10 + $0xc] sm:$0xf] %vm1394_vm4, %v1381_v60 }
 0x376   : > { %1396 = vst.msk [vmem:[%s2097_s10 + $0x4] sm:$0xf] %vm1394_vm4, %v1379_v35 }
 0x378   : > { %v1320_v58 = vpop.permute.xlu1 %1319 }
 0x379   : > { %v1369_v29 = vmul.f32 %v1320_v58, %v1241_v43  ;;  %v1315_v41 = vpop.permute.xlu0 %1314 }
 0x37a   : > { %v1368_v7 = vmul.f32 %v1315_v41, %v1240_v6 }
 0x37b   : > { %v1385_v40 = vpack.c.bf16 %v1369_v29, %v1369_v29 }
 0x37c   : > { %v1384_v31 = vpack.c.bf16 %v1368_v7, %v1368_v7 }
 0x37d   : > { %1402 = vst.msk [vmem:[%s2097_s10 + $0x1c] sm:$0xf] %vm1394_vm4, %v1385_v40 }
 0x37e   : > { %1401 = vst.msk [vmem:[%s2097_s10 + $0x18] sm:$0xf] %vm1394_vm4, %v1384_v31 }
 0x380   : > { %v1335_v33 = vpop.permute.xlu1 %1334 }
 0x381   : > { %v1372_v52 = vmul.f32 %v1335_v33, %v1244_v55  ;;  %v1330_v34 = vpop.permute.xlu0 %1329 }
 0x382   : > { %v1371_v17 = vmul.f32 %v1330_v34, %v1243_v61 }
 0x383   : > { %v1388_v16 = vpack.c.bf16 %v1372_v52, %v1372_v52 }
 0x384   : > { %v1387_v23 = vpack.c.bf16 %v1371_v17, %v1371_v17 }
 0x385   : > { %1405 = vst.msk [vmem:[%s2097_s10 + $0x28] sm:$0xf] %vm1394_vm4, %v1388_v16 }
 0x386   : > { %1404 = vst.msk [vmem:[%s2097_s10 + $0x24] sm:$0xf] %vm1394_vm4, %v1387_v23 }
 0x388   : > { %v1350_v9 = vpop.permute.xlu1 %1349 }
 0x389   : > { %v1375_v12 = vmul.f32 %v1350_v9, %v1247_v46  ;;  %v1345_v51 = vpop.permute.xlu0 %1344 }
 0x38a   : > { %v1374_v26 = vmul.f32 %v1345_v51, %v1246_v10 }
 0x38b   : > { %v1391_v32 = vpack.c.bf16 %v1375_v12, %v1375_v12 }
 0x38c   : > { %v1390_v28 = vpack.c.bf16 %v1374_v26, %v1374_v26 }
 0x38d   : > { %1408 = vst.msk [vmem:[%s2097_s10 + $0x34] sm:$0xf] %vm1394_vm4, %v1391_v32 }
 0x38e   : > { %1407 = vst.msk [vmem:[%s2097_s10 + $0x30] sm:$0xf] %vm1394_vm4, %v1390_v28 }
 0x391   : > { %v1360_v18 = vpop.permute.xlu0 %1359 }
 0x392   : > { %v1377_v36 = vmul.f32 %v1360_v18, %v1249_v54 }
 0x394   : > { %v1393_v59 = vpack.c.bf16 %v1377_v36, %v1377_v36 }
 0x396   : > { %1410 = vst.msk [vmem:[%s2097_s10 + $0x3c] sm:$0xf] %vm1394_vm4, %v1393_v59 }
 0x397 PF: > { %s13_s20 = sadd.s32 1, %s1999_s20   ;;  %s2614_s24 = sld [smem:[#allocation5_spill]] }
 0x398   : > { %p10_p13 = scmp.ge.s32.totalorder %s13_s20, 34   ;;  %s2615_s12 = smov %s1983_s16 }
 0x399   : > { %s2616_s13 = smov %s1987_s17  ;;  %s2617_s14 = smov %s1991_s18 }
 0x39a   : > { %s2618_s15 = smov %s1995_s19  ;;  %s2619_s16 = smov %s2624_s21 }
 0x39b   : > { %s2620_s17 = smov %s2628_s22  ;;  %s2621_s18 = smov %s2632_s23 }
 0x39c   :  { %12 = sbr.rel (!%p10_p13) target bundleno = 5 (0x5), region = 76 }
 0x39d   : > { %s2622_s19 = smov %s2614_s24 }

// kernel: causal_self_attention_forward.5
= control target key start
LH: loop header
LB: loop body
LE: loop exit
PB: predicated region body
PF: predicated region fallthrough
CT: control target
= control target key end

     0   :  { %7 = vsyncpa [#allocation5], 0  ;;  %s2099_s0 = inlined_call_operand.vmem [shape: bf16[512,256], index: 0, kind: input, shape index: {}]   ;;  %s2100_s1 = inlined_call_operand.vmem [shape: bf16[256,256], index: 1, kind: input, shape index: {}]   ;;  %s2101_s2 = inlined_call_operand.hbm [shape: bf16[512,256], index: 2, kind: output, shape index: {}]  }
   0x1   :  { %9 = vsyncpa [#allocation5 + $0x1], 0  ;;  %s1719_s9 = smov 0   ;;  %s1721_s10 = smov 0  }
   0x2   :  { %s1723_s11 = smov 0   ;;  %s1725_s12 = smov 0  }
   0x3   :  { %s1727_s13 = smov 0   ;;  %s1729_s14 = smov 0  }
   0x4   :  { %s1731_s15 = smov 0   ;;  %s1733_s16 = smov 0  }
   0x5   :  { %s1735_s17 = smov 0   ;;  %s1737_s18 = smov 0  }
   0x6 LB: > { %s1297_s19 = sadd.s32 4294967295, %s1699_s18   ;;  %s1298_s20 = sadd.s32 4294967294, %s1699_s18   ;;  %s1699_s18 = sphi %s1737_s18, %s15_s18   ;;  %s1695_s17 = sphi %s1735_s17, %s2113_s17   ;;  %s1691_s16 = sphi %s1733_s16, %s2112_s16   ;;  %s1687_s15 = sphi %s1731_s15, %s2111_s15   ;;  %s1683_s14 = sphi %s1729_s14, %s2110_s14   ;;  %s1679_s13 = sphi %s1727_s13, %s2109_s13   ;;  %s1675_s12 = sphi %s1725_s12, %s2108_s12   ;;  %s1671_s11 = sphi %s1723_s11, %s2107_s11   ;;  %s1667_s10 = sphi %s1721_s10, %s2106_s10   ;;  %s1663_s9 = sphi %s1719_s9, %s2105_s9  }
   0x7   : > { %s27_s21 = sadd.s32 1, %s1691_s16  ;;  %s34_s22 = sadd.s32 1, %s1695_s17 }
   0x8   : > { %p28_p0 = scmp.ge.s32.totalorder %s27_s21, 2  ;;  %s43_s23 = sadd.s32 1, %s1679_s13 }
   0x9   : > { %p50_p1 = scmp.ne.s32.totalorder %s1679_s13, %s1675_s12  ;;  %p51_p2 = scmp.eq.s32.totalorder %s1699_s18, 0 }
   0xa   : > { %s2115_s21 = smov (%p28_p0, %s27_s21), 0  ;;  %s2117_s22 = smov (!%p28_p0, %s34_s22), %s1695_s17 }
   0xb   : > { %s39_s24 = ssub.s32 %s1691_s16, %s2115_s21  ;;  %p1782_p3 = por %p51_p2, %p50_p1 }
   0xc   : > { %p36_p4 = scmp.ge.s32.totalorder %s2117_s22, 2  ;;  %s99_s26 = sadd.s32 1, %s1671_s11 }
   0xd   : > { %p109_p5 = scmp.ne.s32.totalorder %s1671_s11, %s1667_s10  ;;  %p110_p6 = scmp.eq.s32.totalorder %s1297_s19, 3 }
   0xe   : > { %s2119_s22 = smov (%p36_p4, %s2117_s22), 0  ;;  %p115_p8 = scmp.ne.s32.totalorder %s1667_s10, %s1663_s9 }
   0xf   : > { %p1791_p7 = por %p110_p6, %p109_p5  ;;  %s38_s28 = ssub.s32 %s1695_s17, %s2119_s22 }
  0x10   : > { %p116_p9 = scmp.eq.s32.totalorder %s1298_s20, 3  ;;  %s40_s29 = sor.u32 %s39_s24, %s38_s28 }
  0x11   : > { %p97_p10 = scmp.eq.s32.totalorder %s38_s28, 0  ;;  %p41_p11 = scmp.eq.s32.totalorder %s40_s29, 0 }
  0x12   : > { %p1799_p12 = por %p116_p9, %p115_p8  ;;  %p1300_p13 = scmp.ge.s32.totalorder %s1699_s18, 4 }
  0x13   : > { %s1804_s3 = scalar_select %p97_p10, %s1671_s11, %s99_s26  }
  0x14   : > { %s1807_s4 = scalar_select %p41_p11, %s1679_s13, %s43_s23  }
  0x15   : > { %132 = sbr.rel (%p1300_p13) target bundleno = 64 (0x40), region = 16 }
  0x1a   : > { %135 = sbr.rel (!%p1782_p3) target bundleno = 64 (0x40), region = 20  ;;  %s137_s5 = sand.u32 (%p1782_p3), 1, %s1679_s13  }
  0x1b   : > { %s1447_s6 = sshll.u32 (%p1782_p3), %s1695_s17, 6  ;;  %s1301_s7 = sshll.u32 (%p1782_p3), %s137_s5, 7 }
  0x1c   : > { %s142_s8 = sadd.s32 (%p1782_p3), %s1691_s16, %s1447_s6  ;;  %s1823_s23 = scalar_lea.vmem (%p1782_p3), [#allocation3], %s1301_s7 }
  0x1d   : > { %s1304_s19 = sshll.u32 (%p1782_p3), %s142_s8, 2 }
  0x1e   : > { %s1818_s26 = scalar_lea.vmem (%p1782_p3), %s2099_s0, %s1304_s19 }
  0x1f   : > { %v161_v0 = vld [vmem:[%s1818_s26] sm:$0xf]  ;;  %v163_v1 = vld [vmem:[%s1818_s26 + $0x8] sm:$0xf]  ;;  %v165_v2 = vld [vmem:[%s1818_s26 + $0x10] sm:$0xf] }
  0x20   : > { %162 = vst [vmem:[%s1823_s23] sm:$0xf] %v161_v0  ;;  %v167_v3 = vld [vmem:[%s1818_s26 + $0x18] sm:$0xf]  ;;  %v169_v4 = vld [vmem:[%s1818_s26 + $0x20] sm:$0xf] }
  0x21   : > { %164 = vst [vmem:[%s1823_s23 + $0x4] sm:$0xf] %v163_v1  ;;  %v171_v5 = vld [vmem:[%s1818_s26 + $0x28] sm:$0xf]  ;;  %v173_v6 = vld [vmem:[%s1818_s26 + $0x30] sm:$0xf] }
  0x22   : > { %166 = vst [vmem:[%s1823_s23 + $0x8] sm:$0xf] %v165_v2  ;;  %v175_v7 = vld [vmem:[%s1818_s26 + $0x38] sm:$0xf]  ;;  %v177_v8 = vld [vmem:[%s1818_s26 + $0x40] sm:$0xf] }
  0x23   : > { %168 = vst [vmem:[%s1823_s23 + $0xc] sm:$0xf] %v167_v3  ;;  %v179_v9 = vld [vmem:[%s1818_s26 + $0x48] sm:$0xf]  ;;  %v181_v10 = vld [vmem:[%s1818_s26 + $0x50] sm:$0xf] }
  0x24   : > { %170 = vst [vmem:[%s1823_s23 + $0x10] sm:$0xf] %v169_v4  ;;  %v183_v11 = vld [vmem:[%s1818_s26 + $0x58] sm:$0xf]  ;;  %v185_v12 = vld [vmem:[%s1818_s26 + $0x60] sm:$0xf] }
  0x25   : > { %172 = vst [vmem:[%s1823_s23 + $0x14] sm:$0xf] %v171_v5  ;;  %v187_v13 = vld [vmem:[%s1818_s26 + $0x68] sm:$0xf]  ;;  %v189_v14 = vld [vmem:[%s1818_s26 + $0x70] sm:$0xf] }
  0x26   : > { %174 = vst [vmem:[%s1823_s23 + $0x18] sm:$0xf] %v173_v6  ;;  %v191_v15 = vld [vmem:[%s1818_s26 + $0x78] sm:$0xf]  ;;  %v193_v16 = vld [vmem:[%s1818_s26 + $0x80] sm:$0xf] }
  0x27   : > { %176 = vst [vmem:[%s1823_s23 + $0x1c] sm:$0xf] %v175_v7  ;;  %v195_v17 = vld [vmem:[%s1818_s26 + $0x88] sm:$0xf]  ;;  %v197_v18 = vld [vmem:[%s1818_s26 + $0x90] sm:$0xf] }
  0x28   : > { %178 = vst [vmem:[%s1823_s23 + $0x20] sm:$0xf] %v177_v8  ;;  %v199_v19 = vld [vmem:[%s1818_s26 + $0x98] sm:$0xf]  ;;  %v201_v20 = vld [vmem:[%s1818_s26 + $0xa0] sm:$0xf] }
  0x29   : > { %180 = vst [vmem:[%s1823_s23 + $0x24] sm:$0xf] %v179_v9  ;;  %v203_v21 = vld [vmem:[%s1818_s26 + $0xa8] sm:$0xf]  ;;  %v205_v22 = vld [vmem:[%s1818_s26 + $0xb0] sm:$0xf] }
  0x2a   : > { %182 = vst [vmem:[%s1823_s23 + $0x28] sm:$0xf] %v181_v10  ;;  %v207_v23 = vld [vmem:[%s1818_s26 + $0xb8] sm:$0xf]  ;;  %v209_v24 = vld [vmem:[%s1818_s26 + $0xc0] sm:$0xf] }
  0x2b   : > { %184 = vst [vmem:[%s1823_s23 + $0x2c] sm:$0xf] %v183_v11  ;;  %v211_v25 = vld [vmem:[%s1818_s26 + $0xc8] sm:$0xf]  ;;  %v213_v26 = vld [vmem:[%s1818_s26 + $0xd0] sm:$0xf] }
  0x2c   : > { %186 = vst [vmem:[%s1823_s23 + $0x30] sm:$0xf] %v185_v12  ;;  %v215_v27 = vld [vmem:[%s1818_s26 + $0xd8] sm:$0xf]  ;;  %v217_v28 = vld [vmem:[%s1818_s26 + $0xe0] sm:$0xf] }
  0x2d   : > { %188 = vst [vmem:[%s1823_s23 + $0x34] sm:$0xf] %v187_v13  ;;  %v219_v29 = vld [vmem:[%s1818_s26 + $0xe8] sm:$0xf]  ;;  %v221_v30 = vld [vmem:[%s1818_s26 + $0xf0] sm:$0xf] }
  0x2e   : > { %190 = vst [vmem:[%s1823_s23 + $0x38] sm:$0xf] %v189_v14  ;;  %v223_v31 = vld [vmem:[%s1818_s26 + $0xf8] sm:$0xf] }
  0x2f   : > { %192 = vst [vmem:[%s1823_s23 + $0x3c] sm:$0xf] %v191_v15 }
  0x30   : > { %194 = vst [vmem:[%s1823_s23 + $0x40] sm:$0xf] %v193_v16 }
  0x31   : > { %196 = vst [vmem:[%s1823_s23 + $0x44] sm:$0xf] %v195_v17 }
  0x32   : > { %198 = vst [vmem:[%s1823_s23 + $0x48] sm:$0xf] %v197_v18 }
  0x33   : > { %200 = vst [vmem:[%s1823_s23 + $0x4c] sm:$0xf] %v199_v19 }
  0x34   : > { %202 = vst [vmem:[%s1823_s23 + $0x50] sm:$0xf] %v201_v20 }
  0x35   : > { %204 = vst [vmem:[%s1823_s23 + $0x54] sm:$0xf] %v203_v21 }
  0x36   : > { %206 = vst [vmem:[%s1823_s23 + $0x58] sm:$0xf] %v205_v22 }
  0x37   : > { %208 = vst [vmem:[%s1823_s23 + $0x5c] sm:$0xf] %v207_v23 }
  0x38   : > { %210 = vst [vmem:[%s1823_s23 + $0x60] sm:$0xf] %v209_v24 }
  0x39   : > { %212 = vst [vmem:[%s1823_s23 + $0x64] sm:$0xf] %v211_v25 }
  0x3a   : > { %214 = vst [vmem:[%s1823_s23 + $0x68] sm:$0xf] %v213_v26 }
  0x3b   : > { %216 = vst [vmem:[%s1823_s23 + $0x6c] sm:$0xf] %v215_v27 }
  0x3c   : > { %218 = vst [vmem:[%s1823_s23 + $0x70] sm:$0xf] %v217_v28 }
  0x3d   : > { %220 = vst [vmem:[%s1823_s23 + $0x74] sm:$0xf] %v219_v29 }
  0x3e   : > { %222 = vst [vmem:[%s1823_s23 + $0x78] sm:$0xf] %v221_v30 }
  0x3f   : > { %224 = vst [vmem:[%s1823_s23 + $0x7c] sm:$0xf] %v223_v31 }
  0x40 PF: > { %p1305_p0 = scmp.ge.s32.totalorder %s1699_s18, 1  ;;  %p326_p1 = scmp.lt.s32.totalorder %s1699_s18, 5 }
  0x42   : > { %p327_p2 = pnand %p1305_p0, %p326_p1 }
  0x43   : > { %s333_s25 = sand.u32 (!%p327_p2), 1, %s1675_s12   ;;  %s361_s28 = sand.u32 (!%p327_p2), 1, %s1667_s10  }
  0x44   : > { %330 = sbr.rel (%p327_p2) target bundleno = 485 (0x1e5), region = 65  ;;  %s1306_s29 = sshll.u32 (!%p327_p2), %s333_s25, 7 }
  0x45   : > { %s1307_s5 = sshll.u32 (!%p327_p2), %s361_s28, 8  ;;  %s1308_s6 = sshll.u32 (!%p327_p2), %s1683_s14, 4 }
  0x46   : > { %p367_p3 = scmp.lt.s32.totalorder (!%p327_p2), %s1308_s6, 31  ;;  %s1898_s24 = scalar_lea.vmem (!%p327_p2), [#allocation3], %s1306_s29 }
  0x47   : > { %s1900_s26 = scalar_lea.vmem (!%p327_p2), [#allocation4], %s1307_s5  ;;  %p1311_p4 = scmp.ne.s32.totalorder (!%p327_p2), %s1683_s14, 0 }
  0x49   : > { %s2121_s6 = smov (!%p367_p3, %s1308_s6), 31  ;;  %382 = sbr.rel (%p1311_p4) target bundleno = 143 (0x8f), region = 73 }
  0x4a   : > { %s1448_s7 = sshll.u32 %s2121_s6, 3 }
  0x4b   : > { %s1896_s20 = scalar_lea.vmem %s2100_s1, %s1448_s7 }
  0x4e   : > { %v1701_v32 = vmov 0.0  }
  0x4f   : > { %383 = vst [vmem:[#allocation2 + $0xb0] sm:$0xff] %v1701_v32 }
  0x50   : > { %384 = vst [vmem:[#allocation2 + $0x1b0] sm:$0xff] %v1701_v32 }
  0x51   : > { %385 = vst [vmem:[#allocation2 + $0xd8] sm:$0xff] %v1701_v32 }
  0x52   : > { %386 = vst [vmem:[#allocation2 + $0x18] sm:$0xff] %v1701_v32 }
  0x53   : > { %387 = vst [vmem:[#allocation2 + $0x50] sm:$0xff] %v1701_v32 }
  0x54   : > { %388 = vst [vmem:[#allocation2 + $0x168] sm:$0xff] %v1701_v32 }
  0x55   : > { %389 = vst [vmem:[#allocation2 + $0x130] sm:$0xff] %v1701_v32 }
  0x56   : > { %390 = vst [vmem:[#allocation2 + $0x48] sm:$0xff] %v1701_v32 }
  0x57   : > { %391 = vst [vmem:[#allocation2 + $0x180] sm:$0xff] %v1701_v32 }
  0x58   : > { %392 = vst [vmem:[#allocation2 + $0x110] sm:$0xff] %v1701_v32 }
  0x59   : > { %393 = vst [vmem:[#allocation2 + $0x118] sm:$0xff] %v1701_v32 }
  0x5a   : > { %394 = vst [vmem:[#allocation2 + $0x98] sm:$0xff] %v1701_v32 }
  0x5b   : > { %395 = vst [vmem:[#allocation2 + $0x120] sm:$0xff] %v1701_v32 }
  0x5c   : > { %396 = vst [vmem:[#allocation2 + $0x150] sm:$0xff] %v1701_v32 }
  0x5d   : > { %397 = vst [vmem:[#allocation2 + $0x108] sm:$0xff] %v1701_v32 }
  0x5e   : > { %398 = vst [vmem:[#allocation2 + $0x60] sm:$0xff] %v1701_v32 }
  0x5f   : > { %399 = vst [vmem:[#allocation2 + $0xe0] sm:$0xff] %v1701_v32 }
  0x60   : > { %400 = vst [vmem:[#allocation2 + $0x188] sm:$0xff] %v1701_v32 }
  0x61   : > { %401 = vst [vmem:[#allocation2 + $0x138] sm:$0xff] %v1701_v32 }
  0x62   : > { %402 = vst [vmem:[#allocation2 + $0x140] sm:$0xff] %v1701_v32 }
  0x63   : > { %403 = vst [vmem:[#allocation2 + $0x80] sm:$0xff] %v1701_v32 }
  0x64   : > { %404 = vst [vmem:[#allocation2 + $0x1a8] sm:$0xff] %v1701_v32 }
  0x65   : > { %405 = vst [vmem:[#allocation2 + $0x1b8] sm:$0xff] %v1701_v32 }
  0x66   : > { %406 = vst [vmem:[#allocation2 + $0x28] sm:$0xff] %v1701_v32 }
  0x67   : > { %407 = vst [vmem:[#allocation2 + $0x1e8] sm:$0xff] %v1701_v32 }
  0x68   : > { %408 = vst [vmem:[#allocation2 + $0xf8] sm:$0xff] %v1701_v32 }
  0x69   : > { %409 = vst [vmem:[#allocation2 + $0x160] sm:$0xff] %v1701_v32 }
  0x6a   : > { %410 = vst [vmem:[#allocation2 + $0x30] sm:$0xff] %v1701_v32 }
  0x6b   : > { %411 = vst [vmem:[#allocation2 + $0x1e0] sm:$0xff] %v1701_v32 }
  0x6c   : > { %412 = vst [vmem:[#allocation2] sm:$0xff] %v1701_v32 }
  0x6d   : > { %413 = vst [vmem:[#allocation2 + $0xf0] sm:$0xff] %v1701_v32 }
  0x6e   : > { %414 = vst [vmem:[#allocation2 + $0x8] sm:$0xff] %v1701_v32 }
  0x6f   : > { %415 = vst [vmem:[#allocation2 + $0x148] sm:$0xff] %v1701_v32 }
  0x70   : > { %416 = vst [vmem:[#allocation2 + $0x1d0] sm:$0xff] %v1701_v32 }
  0x71   : > { %417 = vst [vmem:[#allocation2 + $0x100] sm:$0xff] %v1701_v32 }
  0x72   : > { %418 = vst [vmem:[#allocation2 + $0xc8] sm:$0xff] %v1701_v32 }
  0x73   : > { %419 = vst [vmem:[#allocation2 + $0x40] sm:$0xff] %v1701_v32 }
  0x74   : > { %420 = vst [vmem:[#allocation2 + $0x1f8] sm:$0xff] %v1701_v32 }
  0x75   : > { %421 = vst [vmem:[#allocation2 + $0x20] sm:$0xff] %v1701_v32 }
  0x76   : > { %422 = vst [vmem:[#allocation2 + $0x128] sm:$0xff] %v1701_v32 }
  0x77   : > { %423 = vst [vmem:[#allocation2 + $0x1a0] sm:$0xff] %v1701_v32 }
  0x78   : > { %424 = vst [vmem:[#allocation2 + $0x1f0] sm:$0xff] %v1701_v32 }
  0x79   : > { %425 = vst [vmem:[#allocation2 + $0xe8] sm:$0xff] %v1701_v32 }
  0x7a   : > { %426 = vst [vmem:[#allocation2 + $0x78] sm:$0xff] %v1701_v32 }
  0x7b   : > { %427 = vst [vmem:[#allocation2 + $0x70] sm:$0xff] %v1701_v32 }
  0x7c   : > { %428 = vst [vmem:[#allocation2 + $0x90] sm:$0xff] %v1701_v32 }
  0x7d   : > { %429 = vst [vmem:[#allocation2 + $0x1d8] sm:$0xff] %v1701_v32 }
  0x7e   : > { %430 = vst [vmem:[#allocation2 + $0xd0] sm:$0xff] %v1701_v32 }
  0x7f   : > { %431 = vst [vmem:[#allocation2 + $0xb8] sm:$0xff] %v1701_v32 }
  0x80   : > { %432 = vst [vmem:[#allocation2 + $0x88] sm:$0xff] %v1701_v32 }
  0x81   : > { %433 = vst [vmem:[#allocation2 + $0xa8] sm:$0xff] %v1701_v32 }
  0x82   : > { %434 = vst [vmem:[#allocation2 + $0x1c8] sm:$0xff] %v1701_v32 }
  0x83   : > { %435 = vst [vmem:[#allocation2 + $0x170] sm:$0xff] %v1701_v32 }
  0x84   : > { %436 = vst [vmem:[#allocation2 + $0x178] sm:$0xff] %v1701_v32 }
  0x85   : > { %437 = vst [vmem:[#allocation2 + $0x68] sm:$0xff] %v1701_v32 }
  0x86   : > { %438 = vst [vmem:[#allocation2 + $0x190] sm:$0xff] %v1701_v32 }
  0x87   : > { %439 = vst [vmem:[#allocation2 + $0x198] sm:$0xff] %v1701_v32 }
  0x88   : > { %440 = vst [vmem:[#allocation2 + $0x38] sm:$0xff] %v1701_v32 }
  0x89   : > { %441 = vst [vmem:[#allocation2 + $0xc0] sm:$0xff] %v1701_v32 }
  0x8a   : > { %442 = vst [vmem:[#allocation2 + $0x1c0] sm:$0xff] %v1701_v32 }
  0x8b   : > { %443 = vst [vmem:[#allocation2 + $0x158] sm:$0xff] %v1701_v32 }
  0x8c   : > { %444 = vst [vmem:[#allocation2 + $0x10] sm:$0xff] %v1701_v32 }
  0x8d   : > { %445 = vst [vmem:[#allocation2 + $0x58] sm:$0xff] %v1701_v32 }
  0x8e   : > { %446 = vst [vmem:[#allocation2 + $0xa0] sm:$0xff] %v1701_v32 }
  0x8f PF: > { %v1434_v33 = vld [vmem:[%s1896_s20 + $0x70] sm:$0xf]  ;;  %v1480_v34 = vld [vmem:[%s1896_s20 + $0x74] sm:$0xf0]  ;;  %v1479_v35 = vld [vmem:[%s1896_s20 + $0x74] sm:$0xf] }
  0x90   : > { %v1435_v36 = vor.u32 %v1480_v34, %v1434_v33  ;;  %v1436_v37 = vld [vmem:[%s1896_s20 + $0x78] sm:$0xf0]  ;;  %v1426_v38 = vld [vmem:[%s1896_s20 + $0x60] sm:$0xf]  ;;  %v1478_v39 = vld [vmem:[%s1896_s20 + $0x64] sm:$0xf0] }
  0x91   : > { %v1439_v40 = vor.u32 %v1479_v35, %v1436_v37  ;;  %v1477_v41 = vld [vmem:[%s1896_s20 + $0x64] sm:$0xf]  ;;  %v1428_v42 = vld [vmem:[%s1896_s20 + $0x68] sm:$0xf0]  ;;  %v1427_v43 = vor.u32 %v1478_v39, %v1426_v38  ;;  %v1418_v45 = vld [vmem:[%s1896_s20 + $0x50] sm:$0xf] }
  0x92   : > { %735 = vmatpush.bf16.msra.mxu0 %v1435_v36  ;;  %1483 = vmatpush.bf16.msra.mxu2 %v1435_v36  ;;  %v1431_v44 = vor.u32 %v1477_v41, %v1428_v42  ;;  %v1476_v46 = vld [vmem:[%s1896_s20 + $0x54] sm:$0xf0]  ;;  %v1475_v47 = vld [vmem:[%s1896_s20 + $0x54] sm:$0xf]  ;;  %v1420_v48 = vld [vmem:[%s1896_s20 + $0x58] sm:$0xf0] }
  0x93   : > { %824 = vmatpush.bf16.msra.mxu1 %v1439_v40  ;;  %1491 = vmatpush.bf16.msra.mxu3 %v1439_v40  ;;  %v1419_v49 = vor.u32 %v1476_v46, %v1418_v45  ;;  %v1423_v50 = vor.u32 %v1475_v47, %v1420_v48  ;;  %v1410_v51 = vld [vmem:[%s1896_s20 + $0x40] sm:$0xf]  ;;  %v1474_v52 = vld [vmem:[%s1896_s20 + $0x44] sm:$0xf0]  ;;  %v1473_v53 = vld [vmem:[%s1896_s20 + $0x44] sm:$0xf] }
  0x94   : > { %v1412_v54 = vld [vmem:[%s1896_s20 + $0x48] sm:$0xf0]  ;;  %v1411_v55 = vor.u32 %v1474_v52, %v1410_v51  ;;  %v1402_v57 = vld [vmem:[%s1896_s20 + $0x30] sm:$0xf]  ;;  %v1472_v58 = vld [vmem:[%s1896_s20 + $0x34] sm:$0xf0] }
  0x95   : > { %v1415_v56 = vor.u32 %v1473_v53, %v1412_v54  ;;  %v1471_v59 = vld [vmem:[%s1896_s20 + $0x34] sm:$0xf]  ;;  %v1404_v60 = vld [vmem:[%s1896_s20 + $0x38] sm:$0xf0]  ;;  %v1403_v61 = vor.u32 %v1472_v58, %v1402_v57  ;;  %v1394_v63 = vld [vmem:[%s1896_s20 + $0x20] sm:$0xf] }
  0x96   : > { %736 = vmatpush.bf16.msra.mxu0 %v1427_v43  ;;  %1484 = vmatpush.bf16.msra.mxu2 %v1427_v43  ;;  %v1407_v62 = vor.u32 %v1471_v59, %v1404_v60  ;;  %v1470_v0 = vld [vmem:[%s1896_s20 + $0x24] sm:$0xf0]  ;;  %v1469_v1 = vld [vmem:[%s1896_s20 + $0x24] sm:$0xf]  ;;  %v1396_v2 = vld [vmem:[%s1896_s20 + $0x28] sm:$0xf0] }
  0x97   : > { %825 = vmatpush.bf16.msra.mxu1 %v1431_v44  ;;  %1492 = vmatpush.bf16.msra.mxu3 %v1431_v44  ;;  %v1395_v3 = vor.u32 %v1470_v0, %v1394_v63  ;;  %v1399_v4 = vor.u32 %v1469_v1, %v1396_v2  ;;  %v1386_v5 = vld [vmem:[%s1896_s20 + $0x10] sm:$0xf]  ;;  %v1468_v6 = vld [vmem:[%s1896_s20 + $0x14] sm:$0xf0]  ;;  %v1467_v7 = vld [vmem:[%s1896_s20 + $0x14] sm:$0xf] }
  0x98   : > { %v1388_v8 = vld [vmem:[%s1896_s20 + $0x18] sm:$0xf0]  ;;  %v1387_v9 = vor.u32 %v1468_v6, %v1386_v5  ;;  %v1378_v11 = vld [vmem:[%s1896_s20] sm:$0xf]  ;;  %v1466_v12 = vld [vmem:[%s1896_s20 + $0x4] sm:$0xf0] }
  0x99   : > { %v1391_v10 = vor.u32 %v1467_v7, %v1388_v8  ;;  %v1465_v13 = vld [vmem:[%s1896_s20 + $0x4] sm:$0xf]  ;;  %v1380_v14 = vld [vmem:[%s1896_s20 + $0x8] sm:$0xf0]  ;;  %v1379_v15 = vor.u32 %v1466_v12, %v1378_v11  ;;  %v1451_v21 = vld [vmem:[%s1898_s24 + $0x10] sm:$0xff]  ;;  %p1440_p5 = scmp.ne.s32.totalorder %s1683_s14, 1 }
  0x9a   : > { %737 = vmatpush.bf16.msra.mxu0 %v1419_v49  ;;  %1485 = vmatpush.bf16.msra.mxu2 %v1419_v49  ;;  %v1383_v16 = vor.u32 %v1465_v13, %v1380_v14  ;;  %v1449_v17 = vld [vmem:[%s1898_s24] sm:$0xff]  ;;  %v1450_v19 = vld [vmem:[%s1898_s24 + $0x8] sm:$0xff]  ;;  %v1459_v22 = vld [vmem:[%s1898_s24 + $0x50] sm:$0xff] }
  0x9b   : > { %826 = vmatpush.bf16.msra.mxu1 %v1423_v50  ;;  %1493 = vmatpush.bf16.msra.mxu3 %v1423_v50  ;;  %v1457_v18 = vld [vmem:[%s1898_s24 + $0x40] sm:$0xff]  ;;  %v1458_v20 = vld [vmem:[%s1898_s24 + $0x48] sm:$0xff]  ;;  %v1452_v23 = vld [vmem:[%s1898_s24 + $0x18] sm:$0xff] }
  0x9c   : > { %v1460_v24 = vld [vmem:[%s1898_s24 + $0x58] sm:$0xff]  ;;  %v1453_v25 = vld [vmem:[%s1898_s24 + $0x20] sm:$0xff]  ;;  %v1454_v27 = vld [vmem:[%s1898_s24 + $0x28] sm:$0xff] }
  0x9d   : > { %v1461_v26 = vld [vmem:[%s1898_s24 + $0x60] sm:$0xff]  ;;  %v1462_v28 = vld [vmem:[%s1898_s24 + $0x68] sm:$0xff]  ;;  %v1455_v29 = vld [vmem:[%s1898_s24 + $0x30] sm:$0xff] }
  0x9e   : > { %738 = vmatpush.bf16.msra.mxu0 %v1411_v55  ;;  %1486 = vmatpush.bf16.msra.mxu2 %v1411_v55  ;;  %v1463_v30 = vld [vmem:[%s1898_s24 + $0x70] sm:$0xff]  ;;  %v1456_v31 = vld [vmem:[%s1898_s24 + $0x38] sm:$0xff]  ;;  %v479_v39 = vld [vmem:[#allocation2 + $0x148] sm:$0xff] }
  0x9f   : > { %827 = vmatpush.bf16.msra.mxu1 %v1415_v56  ;;  %1494 = vmatpush.bf16.msra.mxu3 %v1415_v56  ;;  %v1464_v32 = vld [vmem:[%s1898_s24 + $0x78] sm:$0xff]  ;;  %v447_v33 = vld [vmem:[#allocation2 + $0xb0] sm:$0xff]  ;;  %v481_v51 = vld [vmem:[#allocation2 + $0x100] sm:$0xff] }
  0xa0   : > { %v448_v34 = vld [vmem:[#allocation2 + $0x1b0] sm:$0xff]  ;;  %v449_v42 = vld [vmem:[#allocation2 + $0xd8] sm:$0xff]  ;;  %v482_v52 = vld [vmem:[#allocation2 + $0xc8] sm:$0xff] }
  0xa1   : > { %v480_v40 = vld [vmem:[#allocation2 + $0x1d0] sm:$0xff]  ;;  %v450_v45 = vld [vmem:[#allocation2 + $0x18] sm:$0xff]  ;;  %v452_v57 = vld [vmem:[#allocation2 + $0x168] sm:$0xff] }
  0xa2   : > { %739 = vmatpush.bf16.msra.mxu0 %v1403_v61  ;;  %1487 = vmatpush.bf16.msra.mxu2 %v1403_v61  ;;  %v451_v54 = vld [vmem:[#allocation2 + $0x50] sm:$0xff]  ;;  %v483_v63 = vld [vmem:[#allocation2 + $0x40] sm:$0xff]  ;;  %v484_v0 = vld [vmem:[#allocation2 + $0x1f8] sm:$0xff] }
  0xa3   : > { %828 = vmatpush.bf16.msra.mxu1 %v1407_v62  ;;  %1495 = vmatpush.bf16.msra.mxu3 %v1407_v62  ;;  %v453_v2 = vld [vmem:[#allocation2 + $0x130] sm:$0xff]  ;;  %v454_v5 = vld [vmem:[#allocation2 + $0x48] sm:$0xff]  ;;  %v485_v11 = vld [vmem:[#allocation2 + $0x20] sm:$0xff] }
  0xa4   : > { %v486_v12 = vld [vmem:[#allocation2 + $0x128] sm:$0xff]  ;;  %v455_v14 = vld [vmem:[#allocation2 + $0x180] sm:$0xff] }
  0xa6   : > { %740 = vmatpush.bf16.msra.mxu0 %v1395_v3  ;;  %1488 = vmatpush.bf16.msra.mxu2 %v1395_v3 }
  0xa7   : > { %829 = vmatpush.bf16.msra.mxu1 %v1399_v4  ;;  %1496 = vmatpush.bf16.msra.mxu3 %v1399_v4 }
  0xaa   : > { %741 = vmatpush.bf16.msra.mxu0 %v1387_v9  ;;  %1489 = vmatpush.bf16.msra.mxu2 %v1387_v9 }
  0xab   : > { %830 = vmatpush.bf16.msra.mxu1 %v1391_v10  ;;  %1497 = vmatpush.bf16.msra.mxu3 %v1391_v10 }
  0xae   : > { %742 = vmatpush.bf16.msra.mxu0 %v1379_v15  ;;  %1490 = vmatpush.bf16.msra.mxu2 %v1379_v15 }
  0xaf   : > { %831 = vmatpush.bf16.msra.mxu1 %v1383_v16  ;;  %1498 = vmatpush.bf16.msra.mxu3 %v1383_v16 }
  0xb1   : > { %743 = vmatmul.bf16.vlgmr.msra.gmra.mxu0 %v1449_v17  ;;  %783 = vmatmul.bf16.vlgmr.msra.gmra.mxu2 %v1457_v18 }
  0xb2   : > { %832 = vmatmul.bf16.vlgmr.msra.gmra.mxu1 %v1449_v17  ;;  %872 = vmatmul.bf16.vlgmr.msra.gmra.mxu3 %v1457_v18  ;;  %v456_v17 = vld [vmem:[#allocation2 + $0x110] sm:$0xff] }
  0xc1   : > { %748 = vmatmul.bf16.gmra.mxu0 %v1450_v19  ;;  %788 = vmatmul.bf16.gmra.mxu2 %v1458_v20 }
  0xc2   : > { %837 = vmatmul.bf16.gmra.mxu1 %v1450_v19  ;;  %877 = vmatmul.bf16.gmra.mxu3 %v1458_v20 }
  0xd1   : > { %753 = vmatmul.bf16.gmra.mxu0 %v1451_v21  ;;  %793 = vmatmul.bf16.gmra.mxu2 %v1459_v22 }
  0xd2   : > { %842 = vmatmul.bf16.gmra.mxu1 %v1451_v21  ;;  %882 = vmatmul.bf16.gmra.mxu3 %v1459_v22 }
  0xe1   : > { %758 = vmatmul.bf16.gmra.mxu0 %v1452_v23  ;;  %798 = vmatmul.bf16.gmra.mxu2 %v1460_v24 }
  0xe2   : > { %847 = vmatmul.bf16.gmra.mxu1 %v1452_v23  ;;  %887 = vmatmul.bf16.gmra.mxu3 %v1460_v24  ;;  %v487_v23 = vld [vmem:[#allocation2 + $0x1a0] sm:$0xff]  ;;  %v488_v24 = vld [vmem:[#allocation2 + $0x1f0] sm:$0xff] }
  0xf1   : > { %763 = vmatmul.bf16.gmra.mxu0 %v1453_v25  ;;  %803 = vmatmul.bf16.gmra.mxu2 %v1461_v26 }
  0xf2   : > { %852 = vmatmul.bf16.gmra.mxu1 %v1453_v25  ;;  %892 = vmatmul.bf16.gmra.mxu3 %v1461_v26  ;;  %v457_v26 = vld [vmem:[#allocation2 + $0x118] sm:$0xff] }
 0x101   : > { %768 = vmatmul.bf16.gmra.mxu0 %v1454_v27  ;;  %808 = vmatmul.bf16.gmra.mxu2 %v1462_v28 }
 0x102   : > { %857 = vmatmul.bf16.gmra.mxu1 %v1454_v27  ;;  %897 = vmatmul.bf16.gmra.mxu3 %v1462_v28 }
 0x111   : > { %773 = vmatmul.bf16.gmra.mxu0 %v1455_v29  ;;  %813 = vmatmul.bf16.gmra.mxu2 %v1463_v30 }
 0x112   : > { %862 = vmatmul.bf16.gmra.mxu1 %v1455_v29  ;;  %902 = vmatmul.bf16.gmra.mxu3 %v1463_v30  ;;  %v458_v29 = vld [vmem:[#allocation2 + $0x98] sm:$0xff] }
 0x121   : > { %778 = vmatmul.bf16.gmra.mxu0 %v1456_v31  ;;  %818 = vmatmul.bf16.gmra.mxu2 %v1464_v32 }
 0x122   : > { %867 = vmatmul.bf16.gmra.mxu1 %v1456_v31  ;;  %907 = vmatmul.bf16.gmra.mxu3 %v1464_v32 }
 0x12e   : > { %v744_v35 = vpop.f32.mrf.mxu0 }
 0x12f   : > { %v913_v36 = vadd.f32 %v744_v35, %v447_v33  ;;  %v833_v37 = vpop.f32.mrf.mxu1  ;;  %v489_v35 = vld [vmem:[#allocation2 + $0xe8] sm:$0xff] }
 0x130   : > { %v914_v38 = vadd.f32 %v833_v37, %v448_v34 }
 0x131   : > { %977 = vst [vmem:[#allocation2 + $0xb0] sm:$0xff] %v913_v36  ;;  %v490_v36 = vld [vmem:[#allocation2 + $0x78] sm:$0xff] }
 0x132   : > { %978 = vst [vmem:[#allocation2 + $0x1b0] sm:$0xff] %v914_v38  ;;  %v459_v38 = vld [vmem:[#allocation2 + $0x120] sm:$0xff] }
 0x134   : > { %v784_v41 = vpop.f32.mrf.mxu2 }
 0x135   : > { %v945_v43 = vadd.f32 %v784_v41, %v479_v39  ;;  %v873_v44 = vpop.f32.mrf.mxu3  ;;  %v460_v41 = vld [vmem:[#allocation2 + $0x150] sm:$0xff] }
 0x136   : > { %v946_v46 = vadd.f32 %v873_v44, %v480_v40  ;;  %v746_v47 = vpop.f32.mrf.mxu0 }
 0x137   : > { %1009 = vst [vmem:[#allocation2 + $0x148] sm:$0xff] %v945_v43  ;;  %v915_v48 = vadd.f32 %v746_v47, %v449_v42  ;;  %v835_v49 = vpop.f32.mrf.mxu1  ;;  %v491_v47 = vld [vmem:[#allocation2 + $0x70] sm:$0xff] }
 0x138   : > { %1010 = vst [vmem:[#allocation2 + $0x1d0] sm:$0xff] %v946_v46  ;;  %v916_v50 = vadd.f32 %v835_v49, %v450_v45 }
 0x139   : > { %979 = vst [vmem:[#allocation2 + $0xd8] sm:$0xff] %v915_v48  ;;  %v492_v48 = vld [vmem:[#allocation2 + $0x90] sm:$0xff] }
 0x13a   : > { %980 = vst [vmem:[#allocation2 + $0x18] sm:$0xff] %v916_v50  ;;  %v461_v50 = vld [vmem:[#allocation2 + $0x108] sm:$0xff] }
 0x13c   : > { %v786_v53 = vpop.f32.mrf.mxu2 }
 0x13d   : > { %v947_v55 = vadd.f32 %v786_v53, %v481_v51  ;;  %v875_v56 = vpop.f32.mrf.mxu3  ;;  %v462_v53 = vld [vmem:[#allocation2 + $0x60] sm:$0xff] }
 0x13e   : > { %v948_v58 = vadd.f32 %v875_v56, %v482_v52  ;;  %v749_v59 = vpop.f32.mrf.mxu0 }
 0x13f   : > { %1011 = vst [vmem:[#allocation2 + $0x100] sm:$0xff] %v947_v55  ;;  %v917_v60 = vadd.f32 %v749_v59, %v451_v54  ;;  %v838_v61 = vpop.f32.mrf.mxu1  ;;  %v493_v59 = vld [vmem:[#allocation2 + $0x1d8] sm:$0xff] }
 0x140   : > { %1012 = vst [vmem:[#allocation2 + $0xc8] sm:$0xff] %v948_v58  ;;  %v918_v62 = vadd.f32 %v838_v61, %v452_v57 }
 0x141   : > { %981 = vst [vmem:[#allocation2 + $0x50] sm:$0xff] %v917_v60  ;;  %v494_v60 = vld [vmem:[#allocation2 + $0xd0] sm:$0xff] }
 0x142   : > { %982 = vst [vmem:[#allocation2 + $0x168] sm:$0xff] %v918_v62  ;;  %v463_v62 = vld [vmem:[#allocation2 + $0xe0] sm:$0xff] }
 0x144   : > { %v789_v1 = vpop.f32.mrf.mxu2 }
 0x145   : > { %v949_v3 = vadd.f32 %v789_v1, %v483_v63  ;;  %v878_v4 = vpop.f32.mrf.mxu3  ;;  %v464_v1 = vld [vmem:[#allocation2 + $0x188] sm:$0xff] }
 0x146   : > { %v950_v6 = vadd.f32 %v878_v4, %v484_v0  ;;  %v751_v7 = vpop.f32.mrf.mxu0 }
 0x147   : > { %1013 = vst [vmem:[#allocation2 + $0x40] sm:$0xff] %v949_v3  ;;  %v919_v8 = vadd.f32 %v751_v7, %v453_v2  ;;  %v840_v9 = vpop.f32.mrf.mxu1  ;;  %v495_v7 = vld [vmem:[#allocation2 + $0xb8] sm:$0xff] }
 0x148   : > { %1014 = vst [vmem:[#allocation2 + $0x1f8] sm:$0xff] %v950_v6  ;;  %v920_v10 = vadd.f32 %v840_v9, %v454_v5 }
 0x149   : > { %983 = vst [vmem:[#allocation2 + $0x130] sm:$0xff] %v919_v8  ;;  %v496_v8 = vld [vmem:[#allocation2 + $0x88] sm:$0xff] }
 0x14a   : > { %984 = vst [vmem:[#allocation2 + $0x48] sm:$0xff] %v920_v10  ;;  %v465_v10 = vld [vmem:[#allocation2 + $0x138] sm:$0xff] }
 0x14c   : > { %v791_v13 = vpop.f32.mrf.mxu2 }
 0x14d   : > { %v951_v15 = vadd.f32 %v791_v13, %v485_v11  ;;  %v880_v16 = vpop.f32.mrf.mxu3  ;;  %v466_v13 = vld [vmem:[#allocation2 + $0x140] sm:$0xff] }
 0x14e   : > { %v952_v18 = vadd.f32 %v880_v16, %v486_v12  ;;  %v754_v19 = vpop.f32.mrf.mxu0 }
 0x14f   : > { %1015 = vst [vmem:[#allocation2 + $0x20] sm:$0xff] %v951_v15  ;;  %v921_v20 = vadd.f32 %v754_v19, %v455_v14  ;;  %v843_v21 = vpop.f32.mrf.mxu1  ;;  %v497_v19 = vld [vmem:[#allocation2 + $0xa8] sm:$0xff] }
 0x150   : > { %1016 = vst [vmem:[#allocation2 + $0x128] sm:$0xff] %v952_v18  ;;  %v922_v22 = vadd.f32 %v843_v21, %v456_v17 }
 0x151   : > { %985 = vst [vmem:[#allocation2 + $0x180] sm:$0xff] %v921_v20  ;;  %v498_v20 = vld [vmem:[#allocation2 + $0x1c8] sm:$0xff] }
 0x152   : > { %986 = vst [vmem:[#allocation2 + $0x110] sm:$0xff] %v922_v22  ;;  %v467_v22 = vld [vmem:[#allocation2 + $0x80] sm:$0xff] }
 0x154   : > { %v794_v25 = vpop.f32.mrf.mxu2 }
 0x155   : > { %v953_v27 = vadd.f32 %v794_v25, %v487_v23  ;;  %v883_v28 = vpop.f32.mrf.mxu3  ;;  %v468_v25 = vld [vmem:[#allocation2 + $0x1a8] sm:$0xff] }
 0x156   : > { %v954_v30 = vadd.f32 %v883_v28, %v488_v24  ;;  %v756_v31 = vpop.f32.mrf.mxu0 }
 0x157   : > { %1017 = vst [vmem:[#allocation2 + $0x1a0] sm:$0xff] %v953_v27  ;;  %v923_v32 = vadd.f32 %v756_v31, %v457_v26  ;;  %v845_v33 = vpop.f32.mrf.mxu1  ;;  %v499_v31 = vld [vmem:[#allocation2 + $0x170] sm:$0xff] }
 0x158   : > { %1018 = vst [vmem:[#allocation2 + $0x1f0] sm:$0xff] %v954_v30  ;;  %v924_v34 = vadd.f32 %v845_v33, %v458_v29 }
 0x159   : > { %987 = vst [vmem:[#allocation2 + $0x118] sm:$0xff] %v923_v32  ;;  %v500_v32 = vld [vmem:[#allocation2 + $0x178] sm:$0xff] }
 0x15a   : > { %988 = vst [vmem:[#allocation2 + $0x98] sm:$0xff] %v924_v34  ;;  %v469_v34 = vld [vmem:[#allocation2 + $0x1b8] sm:$0xff] }
 0x15c   : > { %v796_v37 = vpop.f32.mrf.mxu2 }
 0x15d   : > { %v955_v39 = vadd.f32 %v796_v37, %v489_v35  ;;  %v885_v40 = vpop.f32.mrf.mxu3  ;;  %v470_v37 = vld [vmem:[#allocation2 + $0x28] sm:$0xff] }
 0x15e   : > { %v956_v42 = vadd.f32 %v885_v40, %v490_v36  ;;  %v759_v43 = vpop.f32.mrf.mxu0 }
 0x15f   : > { %1019 = vst [vmem:[#allocation2 + $0xe8] sm:$0xff] %v955_v39  ;;  %v925_v44 = vadd.f32 %v759_v43, %v459_v38  ;;  %v848_v45 = vpop.f32.mrf.mxu1  ;;  %v501_v43 = vld [vmem:[#allocation2 + $0x68] sm:$0xff] }
 0x160   : > { %1020 = vst [vmem:[#allocation2 + $0x78] sm:$0xff] %v956_v42  ;;  %v926_v46 = vadd.f32 %v848_v45, %v460_v41 }
 0x161   : > { %989 = vst [vmem:[#allocation2 + $0x120] sm:$0xff] %v925_v44  ;;  %v502_v44 = vld [vmem:[#allocation2 + $0x190] sm:$0xff] }
 0x162   : > { %990 = vst [vmem:[#allocation2 + $0x150] sm:$0xff] %v926_v46  ;;  %v471_v46 = vld [vmem:[#allocation2 + $0x1e8] sm:$0xff] }
 0x164   : > { %v799_v49 = vpop.f32.mrf.mxu2 }
 0x165   : > { %v957_v51 = vadd.f32 %v799_v49, %v491_v47  ;;  %v888_v52 = vpop.f32.mrf.mxu3  ;;  %v472_v49 = vld [vmem:[#allocation2 + $0xf8] sm:$0xff] }
 0x166   : > { %v958_v54 = vadd.f32 %v888_v52, %v492_v48  ;;  %v761_v55 = vpop.f32.mrf.mxu0 }
 0x167   : > { %1021 = vst [vmem:[#allocation2 + $0x70] sm:$0xff] %v957_v51  ;;  %v927_v56 = vadd.f32 %v761_v55, %v461_v50  ;;  %v850_v57 = vpop.f32.mrf.mxu1  ;;  %v503_v55 = vld [vmem:[#allocation2 + $0x198] sm:$0xff] }
 0x168   : > { %1022 = vst [vmem:[#allocation2 + $0x90] sm:$0xff] %v958_v54  ;;  %v928_v58 = vadd.f32 %v850_v57, %v462_v53 }
 0x169   : > { %991 = vst [vmem:[#allocation2 + $0x108] sm:$0xff] %v927_v56  ;;  %v504_v56 = vld [vmem:[#allocation2 + $0x38] sm:$0xff] }
 0x16a   : > { %992 = vst [vmem:[#allocation2 + $0x60] sm:$0xff] %v928_v58  ;;  %v473_v58 = vld [vmem:[#allocation2 + $0x160] sm:$0xff] }
 0x16c   : > { %v801_v61 = vpop.f32.mrf.mxu2 }
 0x16d   : > { %v959_v63 = vadd.f32 %v801_v61, %v493_v59  ;;  %v890_v0 = vpop.f32.mrf.mxu3  ;;  %v474_v61 = vld [vmem:[#allocation2 + $0x30] sm:$0xff] }
 0x16e   : > { %v960_v2 = vadd.f32 %v890_v0, %v494_v60  ;;  %v764_v3 = vpop.f32.mrf.mxu0 }
 0x16f   : > { %1023 = vst [vmem:[#allocation2 + $0x1d8] sm:$0xff] %v959_v63  ;;  %v929_v4 = vadd.f32 %v764_v3, %v463_v62  ;;  %v853_v5 = vpop.f32.mrf.mxu1  ;;  %v505_v3 = vld [vmem:[#allocation2 + $0xc0] sm:$0xff] }
 0x170   : > { %1024 = vst [vmem:[#allocation2 + $0xd0] sm:$0xff] %v960_v2  ;;  %v930_v6 = vadd.f32 %v853_v5, %v464_v1 }
 0x171   : > { %993 = vst [vmem:[#allocation2 + $0xe0] sm:$0xff] %v929_v4  ;;  %v506_v4 = vld [vmem:[#allocation2 + $0x1c0] sm:$0xff] }
 0x172   : > { %994 = vst [vmem:[#allocation2 + $0x188] sm:$0xff] %v930_v6  ;;  %v475_v6 = vld [vmem:[#allocation2 + $0x1e0] sm:$0xff] }
 0x174   : > { %v804_v9 = vpop.f32.mrf.mxu2 }
 0x175   : > { %v961_v11 = vadd.f32 %v804_v9, %v495_v7  ;;  %v893_v12 = vpop.f32.mrf.mxu3  ;;  %v476_v9 = vld [vmem:[#allocation2] sm:$0xff] }
 0x176   : > { %v962_v14 = vadd.f32 %v893_v12, %v496_v8  ;;  %v766_v15 = vpop.f32.mrf.mxu0 }
 0x177   : > { %1025 = vst [vmem:[#allocation2 + $0xb8] sm:$0xff] %v961_v11  ;;  %v931_v16 = vadd.f32 %v766_v15, %v465_v10  ;;  %v855_v17 = vpop.f32.mrf.mxu1  ;;  %v507_v15 = vld [vmem:[#allocation2 + $0x158] sm:$0xff] }
 0x178   : > { %1026 = vst [vmem:[#allocation2 + $0x88] sm:$0xff] %v962_v14  ;;  %v932_v18 = vadd.f32 %v855_v17, %v466_v13 }
 0x179   : > { %995 = vst [vmem:[#allocation2 + $0x138] sm:$0xff] %v931_v16  ;;  %v508_v16 = vld [vmem:[#allocation2 + $0x10] sm:$0xff] }
 0x17a   : > { %996 = vst [vmem:[#allocation2 + $0x140] sm:$0xff] %v932_v18  ;;  %v477_v18 = vld [vmem:[#allocation2 + $0xf0] sm:$0xff] }
 0x17c   : > { %v806_v21 = vpop.f32.mrf.mxu2 }
 0x17d   : > { %v963_v23 = vadd.f32 %v806_v21, %v497_v19  ;;  %v895_v24 = vpop.f32.mrf.mxu3  ;;  %v478_v21 = vld [vmem:[#allocation2 + $0x8] sm:$0xff] }
 0x17e   : > { %v964_v26 = vadd.f32 %v895_v24, %v498_v20  ;;  %v769_v27 = vpop.f32.mrf.mxu0 }
 0x17f   : > { %1027 = vst [vmem:[#allocation2 + $0xa8] sm:$0xff] %v963_v23  ;;  %v933_v28 = vadd.f32 %v769_v27, %v467_v22  ;;  %v858_v29 = vpop.f32.mrf.mxu1  ;;  %v509_v27 = vld [vmem:[#allocation2 + $0x58] sm:$0xff] }
 0x180   : > { %1028 = vst [vmem:[#allocation2 + $0x1c8] sm:$0xff] %v964_v26  ;;  %v934_v30 = vadd.f32 %v858_v29, %v468_v25 }
 0x181   : > { %997 = vst [vmem:[#allocation2 + $0x80] sm:$0xff] %v933_v28  ;;  %v510_v28 = vld [vmem:[#allocation2 + $0xa0] sm:$0xff] }
 0x182   : > { %998 = vst [vmem:[#allocation2 + $0x1a8] sm:$0xff] %v934_v30 }
 0x184   : > { %v809_v33 = vpop.f32.mrf.mxu2 }
 0x185   : > { %v965_v35 = vadd.f32 %v809_v33, %v499_v31  ;;  %v898_v36 = vpop.f32.mrf.mxu3 }
 0x186   : > { %v966_v38 = vadd.f32 %v898_v36, %v500_v32  ;;  %v771_v39 = vpop.f32.mrf.mxu0 }
 0x187   : > { %1029 = vst [vmem:[#allocation2 + $0x170] sm:$0xff] %v965_v35  ;;  %v935_v40 = vadd.f32 %v771_v39, %v469_v34  ;;  %v860_v41 = vpop.f32.mrf.mxu1 }
 0x188   : > { %1030 = vst [vmem:[#allocation2 + $0x178] sm:$0xff] %v966_v38  ;;  %v936_v42 = vadd.f32 %v860_v41, %v470_v37 }
 0x189   : > { %999 = vst [vmem:[#allocation2 + $0x1b8] sm:$0xff] %v935_v40 }
 0x18a   : > { %1000 = vst [vmem:[#allocation2 + $0x28] sm:$0xff] %v936_v42 }
 0x18c   : > { %v811_v45 = vpop.f32.mrf.mxu2 }
 0x18d   : > { %v967_v47 = vadd.f32 %v811_v45, %v501_v43  ;;  %v900_v48 = vpop.f32.mrf.mxu3 }
 0x18e   : > { %v968_v50 = vadd.f32 %v900_v48, %v502_v44  ;;  %v774_v51 = vpop.f32.mrf.mxu0 }
 0x18f   : > { %1031 = vst [vmem:[#allocation2 + $0x68] sm:$0xff] %v967_v47  ;;  %v937_v52 = vadd.f32 %v774_v51, %v471_v46  ;;  %v863_v53 = vpop.f32.mrf.mxu1 }
 0x190   : > { %1032 = vst [vmem:[#allocation2 + $0x190] sm:$0xff] %v968_v50  ;;  %v938_v54 = vadd.f32 %v863_v53, %v472_v49 }
 0x191   : > { %1001 = vst [vmem:[#allocation2 + $0x1e8] sm:$0xff] %v937_v52 }
 0x192   : > { %1002 = vst [vmem:[#allocation2 + $0xf8] sm:$0xff] %v938_v54 }
 0x194   : > { %v814_v57 = vpop.f32.mrf.mxu2 }
 0x195   : > { %v969_v59 = vadd.f32 %v814_v57, %v503_v55  ;;  %v903_v60 = vpop.f32.mrf.mxu3 }
 0x196   : > { %v970_v62 = vadd.f32 %v903_v60, %v504_v56  ;;  %v776_v63 = vpop.f32.mrf.mxu0 }
 0x197   : > { %1033 = vst [vmem:[#allocation2 + $0x198] sm:$0xff] %v969_v59  ;;  %v939_v0 = vadd.f32 %v776_v63, %v473_v58  ;;  %v865_v1 = vpop.f32.mrf.mxu1 }
 0x198   : > { %1034 = vst [vmem:[#allocation2 + $0x38] sm:$0xff] %v970_v62  ;;  %v940_v2 = vadd.f32 %v865_v1, %v474_v61 }
 0x199   : > { %1003 = vst [vmem:[#allocation2 + $0x160] sm:$0xff] %v939_v0 }
 0x19a   : > { %1004 = vst [vmem:[#allocation2 + $0x30] sm:$0xff] %v940_v2 }
 0x19c   : > { %v816_v5 = vpop.f32.mrf.mxu2 }
 0x19d   : > { %v971_v7 = vadd.f32 %v816_v5, %v505_v3  ;;  %v905_v8 = vpop.f32.mrf.mxu3 }
 0x19e   : > { %v972_v10 = vadd.f32 %v905_v8, %v506_v4  ;;  %v779_v11 = vpop.f32.mrf.mxu0 }
 0x19f   : > { %1035 = vst [vmem:[#allocation2 + $0xc0] sm:$0xff] %v971_v7  ;;  %v941_v12 = vadd.f32 %v779_v11, %v475_v6  ;;  %v868_v13 = vpop.f32.mrf.mxu1 }
 0x1a0   : > { %1036 = vst [vmem:[#allocation2 + $0x1c0] sm:$0xff] %v972_v10  ;;  %v942_v14 = vadd.f32 %v868_v13, %v476_v9 }
 0x1a1   : > { %1005 = vst [vmem:[#allocation2 + $0x1e0] sm:$0xff] %v941_v12 }
 0x1a2   : > { %1006 = vst [vmem:[#allocation2] sm:$0xff] %v942_v14 }
 0x1a4   : > { %v819_v17 = vpop.f32.mrf.mxu2 }
 0x1a5   : > { %v973_v19 = vadd.f32 %v819_v17, %v507_v15  ;;  %v908_v20 = vpop.f32.mrf.mxu3 }
 0x1a6   : > { %v974_v22 = vadd.f32 %v908_v20, %v508_v16  ;;  %v781_v23 = vpop.f32.mrf.mxu0 }
 0x1a7   : > { %1037 = vst [vmem:[#allocation2 + $0x158] sm:$0xff] %v973_v19  ;;  %v943_v24 = vadd.f32 %v781_v23, %v477_v18  ;;  %v870_v25 = vpop.f32.mrf.mxu1 }
 0x1a8   : > { %1038 = vst [vmem:[#allocation2 + $0x10] sm:$0xff] %v974_v22  ;;  %v944_v26 = vadd.f32 %v870_v25, %v478_v21 }
 0x1a9   : > { %1007 = vst [vmem:[#allocation2 + $0xf0] sm:$0xff] %v943_v24 }
 0x1aa   : > { %1008 = vst [vmem:[#allocation2 + $0x8] sm:$0xff] %v944_v26 }
 0x1ac   : > { %v821_v29 = vpop.f32.mrf.mxu2  ;;  %1044 = sbr.rel (%p1440_p5) target bundleno = 469 (0x1d5), region = 77 }
 0x1ad   : > { %v975_v30 = vadd.f32 %v821_v29, %v509_v27  ;;  %v910_v31 = vpop.f32.mrf.mxu3 }
 0x1ae   : > { %v976_v32 = vadd.f32 %v910_v31, %v510_v28 }
 0x1af   : > { %1039 = vst [vmem:[#allocation2 + $0x58] sm:$0xff] %v975_v30 }
 0x1b0   : > { %1040 = vst [vmem:[#allocation2 + $0xa0] sm:$0xff] %v976_v32 }
 0x1b1   : > { %v1045_v33 = vld [vmem:[#allocation2 + $0xb0] sm:$0xff]  ;;  %v1047_v35 = vld [vmem:[#allocation2 + $0xd8] sm:$0xff]  ;;  %v1050_v39 = vld [vmem:[#allocation2 + $0x168] sm:$0xff] }
 0x1b2   : > { %v1046_v34 = vld [vmem:[#allocation2 + $0x1b0] sm:$0xff]  ;;  %v1048_v37 = vld [vmem:[#allocation2 + $0x18] sm:$0xff]  ;;  %v1052_v43 = vld [vmem:[#allocation2 + $0x48] sm:$0xff] }
 0x1b3   : > { %v1109_v36 = vpack.c.bf16 %v1046_v34, %v1045_v33  ;;  %v1049_v38 = vld [vmem:[#allocation2 + $0x50] sm:$0xff]  ;;  %v1110_v40 = vpack.c.bf16 %v1048_v37, %v1047_v35  ;;  %v1053_v44 = vld [vmem:[#allocation2 + $0x180] sm:$0xff]  ;;  %v1055_v47 = vld [vmem:[#allocation2 + $0x118] sm:$0xff] }
 0x1b4   : > { %v1111_v41 = vpack.c.bf16 %v1050_v39, %v1049_v38  ;;  %v1051_v42 = vld [vmem:[#allocation2 + $0x130] sm:$0xff]  ;;  %v1056_v48 = vld [vmem:[#allocation2 + $0x98] sm:$0xff]  ;;  %v1057_v51 = vld [vmem:[#allocation2 + $0x120] sm:$0xff] }
 0x1b5   : > { %1141 = vst [vmem:[%s1900_s26] sm:$0xff] %v1109_v36  ;;  %v1112_v45 = vpack.c.bf16 %v1052_v43, %v1051_v42  ;;  %v1054_v46 = vld [vmem:[#allocation2 + $0x110] sm:$0xff]  ;;  %v1114_v50 = vpack.c.bf16 %v1056_v48, %v1055_v47  ;;  %v1059_v53 = vld [vmem:[#allocation2 + $0x108] sm:$0xff]  ;;  %v1060_v55 = vld [vmem:[#allocation2 + $0x60] sm:$0xff] }
 0x1b6   : > { %1142 = vst [vmem:[%s1900_s26 + $0x8] sm:$0xff] %v1110_v40  ;;  %v1113_v49 = vpack.c.bf16 %v1054_v46, %v1053_v44  ;;  %v1058_v52 = vld [vmem:[#allocation2 + $0x150] sm:$0xff]  ;;  %v1061_v56 = vld [vmem:[#allocation2 + $0xe0] sm:$0xff]  ;;  %v1062_v57 = vld [vmem:[#allocation2 + $0x188] sm:$0xff]  ;;  %v1116_v58 = vpack.c.bf16 %v1060_v55, %v1059_v53 }
 0x1b7   : > { %1143 = vst [vmem:[%s1900_s26 + $0x10] sm:$0xff] %v1111_v41  ;;  %v1115_v54 = vpack.c.bf16 %v1058_v52, %v1057_v51  ;;  %v1063_v59 = vld [vmem:[#allocation2 + $0x138] sm:$0xff]  ;;  %v1064_v60 = vld [vmem:[#allocation2 + $0x140] sm:$0xff]  ;;  %v1117_v62 = vpack.c.bf16 %v1062_v57, %v1061_v56  ;;  %v1066_v63 = vld [vmem:[#allocation2 + $0x1a8] sm:$0xff] }
 0x1b8   : > { %1144 = vst [vmem:[%s1900_s26 + $0x18] sm:$0xff] %v1112_v45  ;;  %v1065_v61 = vld [vmem:[#allocation2 + $0x80] sm:$0xff]  ;;  %v1067_v0 = vld [vmem:[#allocation2 + $0x1b8] sm:$0xff]  ;;  %v1068_v1 = vld [vmem:[#allocation2 + $0x28] sm:$0xff]  ;;  %v1118_v2 = vpack.c.bf16 %v1064_v60, %v1063_v59 }
 0x1b9   : > { %1145 = vst [vmem:[%s1900_s26 + $0x20] sm:$0xff] %v1113_v49  ;;  %v1069_v3 = vld [vmem:[#allocation2 + $0x1e8] sm:$0xff]  ;;  %v1070_v4 = vld [vmem:[#allocation2 + $0xf8] sm:$0xff]  ;;  %v1119_v5 = vpack.c.bf16 %v1066_v63, %v1065_v61  ;;  %v1071_v6 = vld [vmem:[#allocation2 + $0x160] sm:$0xff]  ;;  %v1120_v8 = vpack.c.bf16 %v1068_v1, %v1067_v0 }
 0x1ba   : > { %1146 = vst [vmem:[%s1900_s26 + $0x28] sm:$0xff] %v1114_v50  ;;  %v1072_v7 = vld [vmem:[#allocation2 + $0x30] sm:$0xff]  ;;  %v1073_v9 = vld [vmem:[#allocation2 + $0x1e0] sm:$0xff]  ;;  %v1121_v11 = vpack.c.bf16 %v1070_v4, %v1069_v3  ;;  %v1076_v13 = vld [vmem:[#allocation2 + $0x8] sm:$0xff] }
 0x1bb   : > { %1147 = vst [vmem:[%s1900_s26 + $0x30] sm:$0xff] %v1115_v54  ;;  %v1074_v10 = vld [vmem:[#allocation2] sm:$0xff]  ;;  %v1075_v12 = vld [vmem:[#allocation2 + $0xf0] sm:$0xff]  ;;  %v1122_v14 = vpack.c.bf16 %v1072_v7, %v1071_v6  ;;  %v1077_v15 = vld [vmem:[#allocation2 + $0x148] sm:$0xff] }
 0x1bc   : > { %1148 = vst [vmem:[%s1900_s26 + $0x38] sm:$0xff] %v1116_v58  ;;  %v1078_v16 = vld [vmem:[#allocation2 + $0x1d0] sm:$0xff]  ;;  %v1123_v17 = vpack.c.bf16 %v1074_v10, %v1073_v9  ;;  %v1079_v18 = vld [vmem:[#allocation2 + $0x100] sm:$0xff]  ;;  %v1080_v19 = vld [vmem:[#allocation2 + $0xc8] sm:$0xff]  ;;  %v1124_v20 = vpack.c.bf16 %v1076_v13, %v1075_v12 }
 0x1bd   : > { %1149 = vst [vmem:[%s1900_s26 + $0x40] sm:$0xff] %v1117_v62  ;;  %v1081_v21 = vld [vmem:[#allocation2 + $0x40] sm:$0xff]  ;;  %v1082_v22 = vld [vmem:[#allocation2 + $0x1f8] sm:$0xff]  ;;  %v1125_v23 = vpack.c.bf16 %v1078_v16, %v1077_v15  ;;  %v1084_v25 = vld [vmem:[#allocation2 + $0x128] sm:$0xff]  ;;  %v1126_v26 = vpack.c.bf16 %v1080_v19, %v1079_v18 }
 0x1be   : > { %1150 = vst [vmem:[%s1900_s26 + $0x48] sm:$0xff] %v1118_v2  ;;  %v1083_v24 = vld [vmem:[#allocation2 + $0x20] sm:$0xff]  ;;  %v1086_v28 = vld [vmem:[#allocation2 + $0x1f0] sm:$0xff]  ;;  %v1127_v29 = vpack.c.bf16 %v1082_v22, %v1081_v21  ;;  %v1087_v30 = vld [vmem:[#allocation2 + $0xe8] sm:$0xff] }
 0x1bf   : > { %1151 = vst [vmem:[%s1900_s26 + $0x50] sm:$0xff] %v1119_v5  ;;  %v1085_v27 = vld [vmem:[#allocation2 + $0x1a0] sm:$0xff]  ;;  %v1088_v31 = vld [vmem:[#allocation2 + $0x78] sm:$0xff]  ;;  %v1128_v32 = vpack.c.bf16 %v1084_v25, %v1083_v24  ;;  %v1089_v33 = vld [vmem:[#allocation2 + $0x70] sm:$0xff] }
 0x1c0   : > { %1152 = vst [vmem:[%s1900_s26 + $0x58] sm:$0xff] %v1120_v8  ;;  %v1090_v34 = vld [vmem:[#allocation2 + $0x90] sm:$0xff]  ;;  %v1129_v35 = vpack.c.bf16 %v1086_v28, %v1085_v27  ;;  %v1091_v36 = vld [vmem:[#allocation2 + $0x1d8] sm:$0xff]  ;;  %v1130_v38 = vpack.c.bf16 %v1088_v31, %v1087_v30  ;;  %v1094_v40 = vld [vmem:[#allocation2 + $0x88] sm:$0xff] }
 0x1c1   : > { %1153 = vst [vmem:[%s1900_s26 + $0x60] sm:$0xff] %v1121_v11  ;;  %v1092_v37 = vld [vmem:[#allocation2 + $0xd0] sm:$0xff]  ;;  %v1093_v39 = vld [vmem:[#allocation2 + $0xb8] sm:$0xff]  ;;  %v1131_v41 = vpack.c.bf16 %v1090_v34, %v1089_v33  ;;  %v1095_v42 = vld [vmem:[#allocation2 + $0xa8] sm:$0xff] }
 0x1c2   : > { %1154 = vst [vmem:[%s1900_s26 + $0x68] sm:$0xff] %v1122_v14  ;;  %v1096_v43 = vld [vmem:[#allocation2 + $0x1c8] sm:$0xff]  ;;  %v1132_v44 = vpack.c.bf16 %v1092_v37, %v1091_v36  ;;  %v1097_v45 = vld [vmem:[#allocation2 + $0x170] sm:$0xff]  ;;  %v1098_v46 = vld [vmem:[#allocation2 + $0x178] sm:$0xff]  ;;  %v1133_v47 = vpack.c.bf16 %v1094_v40, %v1093_v39 }
 0x1c3   : > { %1155 = vst [vmem:[%s1900_s26 + $0x70] sm:$0xff] %v1123_v17  ;;  %v1099_v48 = vld [vmem:[#allocation2 + $0x68] sm:$0xff]  ;;  %v1100_v49 = vld [vmem:[#allocation2 + $0x190] sm:$0xff]  ;;  %v1134_v50 = vpack.c.bf16 %v1096_v43, %v1095_v42  ;;  %v1101_v51 = vld [vmem:[#allocation2 + $0x198] sm:$0xff]  ;;  %v1135_v53 = vpack.c.bf16 %v1098_v46, %v1097_v45 }
 0x1c4   : > { %1156 = vst [vmem:[%s1900_s26 + $0x78] sm:$0xff] %v1124_v20  ;;  %v1102_v52 = vld [vmem:[#allocation2 + $0x38] sm:$0xff]  ;;  %v1103_v54 = vld [vmem:[#allocation2 + $0xc0] sm:$0xff]  ;;  %v1136_v56 = vpack.c.bf16 %v1100_v49, %v1099_v48  ;;  %v1106_v58 = vld [vmem:[#allocation2 + $0x10] sm:$0xff] }
 0x1c5   : > { %1157 = vst [vmem:[%s1900_s26 + $0x80] sm:$0xff] %v1125_v23  ;;  %v1104_v55 = vld [vmem:[#allocation2 + $0x1c0] sm:$0xff]  ;;  %v1105_v57 = vld [vmem:[#allocation2 + $0x158] sm:$0xff]  ;;  %v1137_v59 = vpack.c.bf16 %v1102_v52, %v1101_v51 }
 0x1c6   : > { %1158 = vst [vmem:[%s1900_s26 + $0x88] sm:$0xff] %v1126_v26  ;;  %v1107_v60 = vld [vmem:[#allocation2 + $0x58] sm:$0xff]  ;;  %v1108_v61 = vld [vmem:[#allocation2 + $0xa0] sm:$0xff]  ;;  %v1138_v62 = vpack.c.bf16 %v1104_v55, %v1103_v54  ;;  %v1139_v63 = vpack.c.bf16 %v1106_v58, %v1105_v57 }
 0x1c7   : > { %1159 = vst [vmem:[%s1900_s26 + $0x90] sm:$0xff] %v1127_v29  ;;  %v1140_v0 = vpack.c.bf16 %v1108_v61, %v1107_v60 }
 0x1c8   : > { %1160 = vst [vmem:[%s1900_s26 + $0x98] sm:$0xff] %v1128_v32 }
 0x1c9   : > { %1161 = vst [vmem:[%s1900_s26 + $0xa0] sm:$0xff] %v1129_v35 }
 0x1ca   : > { %1162 = vst [vmem:[%s1900_s26 + $0xa8] sm:$0xff] %v1130_v38 }
 0x1cb   : > { %1163 = vst [vmem:[%s1900_s26 + $0xb0] sm:$0xff] %v1131_v41 }
 0x1cc   : > { %1164 = vst [vmem:[%s1900_s26 + $0xb8] sm:$0xff] %v1132_v44 }
 0x1cd   : > { %1165 = vst [vmem:[%s1900_s26 + $0xc0] sm:$0xff] %v1133_v47 }
 0x1ce   : > { %1166 = vst [vmem:[%s1900_s26 + $0xc8] sm:$0xff] %v1134_v50 }
 0x1cf   : > { %1167 = vst [vmem:[%s1900_s26 + $0xd0] sm:$0xff] %v1135_v53 }
 0x1d0   : > { %1168 = vst [vmem:[%s1900_s26 + $0xd8] sm:$0xff] %v1136_v56 }
 0x1d1   : > { %1169 = vst [vmem:[%s1900_s26 + $0xe0] sm:$0xff] %v1137_v59 }
 0x1d2   : > { %1170 = vst [vmem:[%s1900_s26 + $0xe8] sm:$0xff] %v1138_v62 }
 0x1d3   : > { %1171 = vst [vmem:[%s1900_s26 + $0xf0] sm:$0xff] %v1139_v63 }
 0x1d4   : > { %1172 = vst [vmem:[%s1900_s26 + $0xf8] sm:$0xff] %v1140_v0 }
 0x1d5 PF: > { %s1482_s12 = sshll.u32 %s1687_s15, 8  ;;  %s1189_s29 = sshll.u32 %s1900_s26, 4  ;;  %s1190_s29 = int_to_ptr.vmem [resolvable:$true] %s1189_s29 }
 0x1d6   : > { %s1188_s25 = scalar_lea.hbm %s2101_s2, %s1482_s12  ;;  %s1174_s6 = scalar_lea.sflag [#allocation5], %s361_s28 }
 0x1d7   : > { %s1191_s5 = sshll.u32 %s1188_s25, 4  ;;  %s1609_s15 = scalar_lea.hbm %s2101_s2, 512  ;;  %s1192_s5 = int_to_ptr.hbm [resolvable:$true] %s1191_s5 }
 0x1d8   : > { %s1603_s7 = sshra.s32 %s1192_s5, 4  ;;  %s1604_s7 = int_to_ptr.hbm [resolvable:$true] %s1603_s7 }
 0x1d9   : > { %s1605_s8 = scalar_lea.hbm %s1604_s7, 256  ;;  %p1610_p10 = scmp.lt.s32.totalorder %s1604_s7, %s2101_s2 }
 0x1da   : > { %p1606_p6 = scmp.ne.s32.totalorder %s1604_s7, %s1605_s8  ;;  %p1611_p11 = scmp.lt.s32.totalorder %s1609_s15, %s1605_s8 }
 0x1dc   : > { %p1607_p8 = pnand %p1606_p6, %p1791_p7  ;;  %p1612_p13 = por %p1611_p11, %p1610_p10 }
 0x1de   : > { %p1608_p9 = pneg %p1607_p8 }
 0x1e0   : > { %p1613_p0 = pnand %p1612_p13, %p1608_p9 }
 0x1e2   : > { %1616 = shalt.err (!%p1613_p0)
}
 0x1e3   : > { %s1702_s28 = smov 128   ;;  %s1703_s26 = smov 8  }
 0x1e4   : > { %1499 = dma.vmem_to_hbm [thread:$0]  (%p1791_p7), %s1190_s29, 4096, %s1192_s5, %s1174_s6, %s1702_s28, %s1702_s28, %s1703_s26  }
 0x1e5 PF: > { %p1505_p1 = scmp.ge.s32.totalorder %s1699_s18, 2  ;;  %s1206_s12 = sand.u32 1, %s1663_s9  }
 0x1e6   : > { %s1207_s23 = scalar_lea.sflag [#allocation5], %s1206_s12 }
 0x1e7   : > { %p1502_p2 = pnand %p1505_p1, %p1799_p12 }
 0x1e9   : > { %p1503_p3 = pneg %p1502_p2 }
 0x1eb   : > { %1658 = dma.done.wait (%p1503_p3), %s1207_s23, 4096  }
 0x1ec   : > { %1660 = vsyncadd (%p1503_p3), %s1207_s23, 4294963200  ;;  %s15_s18 = sadd.s32 1, %s1699_s18   ;;  %s2105_s9 = smov %s1667_s10 }
 0x1ed   : > { %p12_p4 = scmp.ge.s32.totalorder %s15_s18, 6   ;;  %s2106_s10 = smov %s1671_s11 }
 0x1ee   : > { %s2107_s11 = smov %s1804_s3  ;;  %s2108_s12 = smov %s1679_s13 }
 0x1ef   : > { %s2109_s13 = smov %s1807_s4  ;;  %s2110_s14 = smov %s1691_s16 }
 0x1f0   : > { %s2111_s15 = smov %s1695_s17  ;;  %s2112_s16 = smov %s2115_s21 }
 0x1f1   : > { %s2113_s17 = smov %s2119_s22  ;;  %14 = sbr.rel (!%p12_p4) target bundleno = 6 (0x6), region = 120 }
 0x1f6   :  { %1213 = vsyncpa [#allocation5], 1 }
 0x1f7   :  { %1215 = vsyncpa [#allocation5 + $0x1], 1 }

</bundles_post_ra>
